<compile_context>
chip_gen: v5e
topology: v5e:2x2
jax: 0.10.0
libtpu: 0.0.40
codegen_flags: <defaults>
</compile_context>

<pallas_src>
import functools

import jax
import jax.numpy as jnp
from jax import lax
from jax.experimental import pallas as pl
from jax.experimental.pallas import tpu as pltpu


def _space_to_dim_kernel(x_ref, o_ref, *, scale: int, chunk_rows: int,
                         num_chunks: int):
    """x_ref: (bn, C, TH, W) NCHW tile.  o_ref: (bn, s, s, C, TH//s, W//s)."""
    s = scale
    bn, c, _, w = x_ref.shape
    ws = w // s
    chs = chunk_rows // s

    def extract_phases(h0_in, h0_out):
        # One bounded-size chunk: load dense rows, split both spatial axes with
        # a row-major reshape, then write every (i, j) phase as a lane-dense
        # slab.  All slices are unit-stride (Mosaic-safe); the minor-dim-s
        # intermediate is at most `chunk_rows` input rows.
        xc = x_ref[:, :, pl.ds(h0_in, chunk_rows), :]          # (bn, C, ch, W)
        yc = xc.reshape(bn, c, chs, s, ws, s)
        for i in range(s):
            for j in range(s):
                o_ref[:, i, j, :, pl.ds(h0_out, chs), :] = yc[:, :, :, i, :, j]

    if num_chunks == 1:
        extract_phases(0, 0)
    elif num_chunks <= 8:
        for k in range(num_chunks):                            # static unroll
            extract_phases(k * chunk_rows, k * chs)
    else:
        def body(k, carry):
            h0 = pl.multiple_of(k * chunk_rows, chunk_rows)
            o0 = pl.multiple_of(k * chs, chs)
            extract_phases(h0, o0)
            return carry
        lax.fori_loop(0, num_chunks, body, 0)


def _vmem_config():
    """Per-generation scoped-VMEM limit and block budget (with 2x headroom)."""
    phys = 64 * 1024 * 1024                      # conservative default (v7x-sized)
    try:
        info = pltpu.get_tpu_info()
        phys = int(getattr(info, "vmem_capacity_bytes", phys))
    except Exception:
        pass
    limit = min(phys // 2, 64 * 1024 * 1024)     # v5e/v6e: 64 MiB, v7x: 32 MiB
    budget = limit // 2                          # blocks use <= half the limit
    return limit, budget


def _plan_tiles(n, c, h, w, s, itemsize, budget_bytes, max_chunk_bytes):
    """Pick (bn, th, ch): N-batch per block, H rows per block, H rows per chunk."""
    ws = w // s
    lane = lambda d: -(-d // 128) * 128              # lane (128) padding in VMEM
    q = 8 * s                                        # keeps th and th//s 8-aligned

    def block_bytes(bn, th):
        ths = th // s
        in_b = bn * c * th * lane(w) * itemsize
        out_b = bn * s * s * c * ths * lane(ws) * itemsize   # Ws lane-pads to 128
        return 2 * (in_b + out_b)                            # double-buffered I/O

    cap = min(budget_bytes, 8 * 1024 * 1024)         # ~2-8 MiB blocks ride the roofline
    th_cands = [d for d in range(q, h + 1, q) if h % d == 0]
    if not th_cands:
        th_cands = [h]                               # fallback: whole image (see TODO)
    th = th_cands[0]
    for d in th_cands:                               # largest aligned divisor that fits
        if block_bytes(1, d) <= cap:
            th = d
    bn = 1
    for d in range(1, n + 1):                        # batch small images per block
        if n % d == 0 and block_bytes(d, th) <= cap:
            bn = d

    # v7x has 2 TensorCores: make sure non-trivial problems give both work.
    if (n // bn) * (h // th) < 2 and n * c * h * w * itemsize >= (1 << 20):
        if n >= 2:
            bn = max(d for d in range(1, n) if n % d == 0 and n // d >= 2)
        elif len(th_cands) >= 2:
            th = max(d for d in th_cands if h // d >= 2)

    # In-kernel H chunk: bounds deinterleave temporaries independent of tile size.
    ch_cands = [d for d in range(q, th + 1, q) if th % d == 0]
    ch = th
    if ch_cands:
        ch = ch_cands[0]
        for d in ch_cands:
            if bn * c * d * lane(w) * itemsize <= max_chunk_bytes:
                ch = d
    return bn, th, ch


def space_to_dim(x_nchw: jax.Array, scale_factor: int, *,
                 vmem_block_budget_bytes: int | None = None,
                 max_chunk_bytes: int = 256 * 1024) -> jax.Array:
    """SpaceToDim(scale_factor, dims=(-2,-1), dim=0) forward for 4-D NCHW input."""
    n, c, h, w = x_nchw.shape
    s = int(scale_factor)
    if s == 1:
        return x_nchw
    if h % s or w % s:
        raise ValueError("spatial dims must be divisible by scale_factor")
    hs, ws = h // s, w // s
    itemsize = jnp.dtype(x_nchw.dtype).itemsize

    vmem_limit, budget = _vmem_config()
    if vmem_block_budget_bytes is not None:
        budget = vmem_block_budget_bytes
    bn, th, ch = _plan_tiles(n, c, h, w, s, itemsize, budget, max_chunk_bytes)
    ths = th // s
    grid = (n // bn, h // th)

    out6 = pl.pallas_call(
        functools.partial(_space_to_dim_kernel, scale=s, chunk_rows=ch,
                          num_chunks=th // ch),
        out_shape=jax.ShapeDtypeStruct((n, s, s, c, hs, ws), x_nchw.dtype),
        grid=grid,
        in_specs=[pl.BlockSpec((bn, c, th, w), lambda b, t: (b, 0, t, 0))],
        out_specs=pl.BlockSpec((bn, s, s, c, ths, ws),
                               lambda b, t: (b, 0, 0, 0, t, 0)),
        compiler_params=pltpu.CompilerParams(
            dimension_semantics=("parallel", "parallel"),
            vmem_limit_bytes=vmem_limit,
        ),
    )(x_nchw)

    # Free (layout-preserving) reshape: (N, s, s, C, Hs, Ws) -> (N*s*s, C, Hs, Ws).
    return out6.reshape(n * s * s, c, hs, ws)


def space_to_dim_ref(x_nchw: jax.Array, scale_factor: int) -> jax.Array:
    """Pure-JAX transcription of the PyTorch forward (dims=(-2,-1), dim=0)."""
    n, c, h, w = x_nchw.shape
    s = int(scale_factor)
    xr = x_nchw.reshape(n, c, h // s, s, w // s, s)
    xp = jnp.transpose(xr, (0, 3, 5, 1, 2, 4))       # matches torch permute(0,3,5,1,2,4)
    return xp.reshape(n * s * s, c, h // s, w // s)


if __name__ == "__main__":
    key = jax.random.PRNGKey(0)
    k1, k2, k3, k4 = jax.random.split(key, 4)

    # Case 1: nominal small shape (N batched into a single block).
    scale = 2
    x = jax.random.normal(k1, (2, 4, 16, 16), dtype=jnp.float32)
    out = jax.block_until_ready(space_to_dim(x, scale))
    ref = space_to_dim_ref(x, scale)
    assert out.shape == (2 * scale * scale, 4, 8, 8), out.shape
    assert out.dtype == x.dtype
    assert bool(jnp.array_equal(out, ref)), "mismatch (single-block path)"

    # Case 2: tiny block budget forces the H/N-tiled path (grid = (2, 2)).
    x2 = jax.random.normal(k2, (2, 4, 32, 16), dtype=jnp.float32)
    out2 = jax.block_until_ready(
        space_to_dim(x2, scale, vmem_block_budget_bytes=128 * 1024))
    ref2 = space_to_dim_ref(x2, scale)
    assert bool(jnp.array_equal(out2, ref2)), "mismatch (tiled path)"

    # Case 3: tiny chunk budget forces the in-kernel fori_loop chunking path.
    x3 = jax.random.normal(k3, (1, 2, 256, 16), dtype=jnp.float32)
    out3 = jax.block_until_ready(
        space_to_dim(x3, scale, max_chunk_bytes=8 * 1024))
    ref3 = space_to_dim_ref(x3, scale)
    assert bool(jnp.array_equal(out3, ref3)), "mismatch (chunked path)"

    # Case 4: scale_factor=4 with non-8*s-aligned H (whole-image fallback).
    x4 = jax.random.normal(k4, (1, 3, 16, 16), dtype=jnp.float32)
    out4 = jax.block_until_ready(space_to_dim(x4, 4))
    ref4 = space_to_dim_ref(x4, 4)
    assert out4.shape == (16, 3, 4, 4), out4.shape
    assert bool(jnp.array_equal(out4, ref4)), "mismatch (s=4 fallback path)"

    print("KERNEL_OK")
</pallas_src>

<mosaic_0001>
module attributes {stable_mosaic.version = 11 : i64} {
  func.func @_space_to_dim_kernel(%arg0: i32, %arg1: i32, %arg2: memref<2x4x16x16xf32, #tpu.memory_space<vmem>>, %arg3: memref<2x2x2x4x8x8xf32, #tpu.memory_space<vmem>>) attributes {dimension_semantics = [#tpu.dimension_semantics<parallel>, #tpu.dimension_semantics<parallel>], iteration_bounds = array<i64: 1, 1>, scalar_prefetch = 0 : i64, scratch_operands = 0 : i64, tpu.core_type = #tpu.core_type<tc>, window_params = [{transform_indices = @transform_0, window_bounds = array<i64: 2, 4, 16, 16>}, {transform_indices = @transform_1, window_bounds = array<i64: 2, 2, 2, 4, 8, 8>}]} {
    %c0 = arith.constant 0 : index
    %c0_0 = arith.constant 0 : index
    %c0_1 = arith.constant 0 : index
    %c0_2 = arith.constant 0 : index
    %0 = vector.load %arg2[%c0, %c0_0, %c0_1, %c0_2] : memref<2x4x16x16xf32, #tpu.memory_space<vmem>>, vector<2x4x16x16xf32>
    %1 = vector.shape_cast %0 : vector<2x4x16x16xf32> to vector<2x4x8x2x8x2xf32>
    %2 = vector.extract_strided_slice %1 {offsets = [0, 0, 0, 0, 0, 0], sizes = [2, 4, 8, 1, 8, 1], strides = [1, 1, 1, 1, 1, 1]} : vector<2x4x8x2x8x2xf32> to vector<2x4x8x1x8x1xf32>
    %3 = vector.shape_cast %2 : vector<2x4x8x1x8x1xf32> to vector<2x4x8x8xf32>
    %c0_3 = arith.constant 0 : index
    %c0_4 = arith.constant 0 : index
    %c0_5 = arith.constant 0 : index
    %c0_6 = arith.constant 0 : index
    %c0_7 = arith.constant 0 : index
    %c0_8 = arith.constant 0 : index
    %4 = vector.load %arg3[%c0_3, %c0_4, %c0_5, %c0_6, %c0_7, %c0_8] : memref<2x2x2x4x8x8xf32, #tpu.memory_space<vmem>>, vector<2x1x1x4x8x8xf32>
    %5 = vector.shape_cast %4 : vector<2x1x1x4x8x8xf32> to vector<2x4x8x8xf32>
    %6 = vector.shape_cast %3 : vector<2x4x8x8xf32> to vector<2x1x1x4x8x8xf32>
    tpu.vector_store %arg3[%c0_3, %c0_4, %c0_5, %c0_6, %c0_7, %c0_8], %6 {strides = array<i32>} : memref<2x2x2x4x8x8xf32, #tpu.memory_space<vmem>>, vector<2x1x1x4x8x8xf32>,
    %7 = vector.extract_strided_slice %1 {offsets = [0, 0, 0, 0, 0, 1], sizes = [2, 4, 8, 1, 8, 1], strides = [1, 1, 1, 1, 1, 1]} : vector<2x4x8x2x8x2xf32> to vector<2x4x8x1x8x1xf32>
    %8 = vector.shape_cast %7 : vector<2x4x8x1x8x1xf32> to vector<2x4x8x8xf32>
    %c0_9 = arith.constant 0 : index
    %c0_10 = arith.constant 0 : index
    %c1 = arith.constant 1 : index
    %c0_11 = arith.constant 0 : index
    %c0_12 = arith.constant 0 : index
    %c0_13 = arith.constant 0 : index
    %9 = vector.load %arg3[%c0_9, %c0_10, %c1, %c0_11, %c0_12, %c0_13] : memref<2x2x2x4x8x8xf32, #tpu.memory_space<vmem>>, vector<2x1x1x4x8x8xf32>
    %10 = vector.shape_cast %9 : vector<2x1x1x4x8x8xf32> to vector<2x4x8x8xf32>
    %11 = vector.shape_cast %8 : vector<2x4x8x8xf32> to vector<2x1x1x4x8x8xf32>
    tpu.vector_store %arg3[%c0_9, %c0_10, %c1, %c0_11, %c0_12, %c0_13], %11 {strides = array<i32>} : memref<2x2x2x4x8x8xf32, #tpu.memory_space<vmem>>, vector<2x1x1x4x8x8xf32>,
    %12 = vector.extract_strided_slice %1 {offsets = [0, 0, 0, 1, 0, 0], sizes = [2, 4, 8, 1, 8, 1], strides = [1, 1, 1, 1, 1, 1]} : vector<2x4x8x2x8x2xf32> to vector<2x4x8x1x8x1xf32>
    %13 = vector.shape_cast %12 : vector<2x4x8x1x8x1xf32> to vector<2x4x8x8xf32>
    %c0_14 = arith.constant 0 : index
    %c1_15 = arith.constant 1 : index
    %c0_16 = arith.constant 0 : index
    %c0_17 = arith.constant 0 : index
    %c0_18 = arith.constant 0 : index
    %c0_19 = arith.constant 0 : index
    %14 = vector.load %arg3[%c0_14, %c1_15, %c0_16, %c0_17, %c0_18, %c0_19] : memref<2x2x2x4x8x8xf32, #tpu.memory_space<vmem>>, vector<2x1x1x4x8x8xf32>
    %15 = vector.shape_cast %14 : vector<2x1x1x4x8x8xf32> to vector<2x4x8x8xf32>
    %16 = vector.shape_cast %13 : vector<2x4x8x8xf32> to vector<2x1x1x4x8x8xf32>
    tpu.vector_store %arg3[%c0_14, %c1_15, %c0_16, %c0_17, %c0_18, %c0_19], %16 {strides = array<i32>} : memref<2x2x2x4x8x8xf32, #tpu.memory_space<vmem>>, vector<2x1x1x4x8x8xf32>,
    %17 = vector.extract_strided_slice %1 {offsets = [0, 0, 0, 1, 0, 1], sizes = [2, 4, 8, 1, 8, 1], strides = [1, 1, 1, 1, 1, 1]} : vector<2x4x8x2x8x2xf32> to vector<2x4x8x1x8x1xf32>
    %18 = vector.shape_cast %17 : vector<2x4x8x1x8x1xf32> to vector<2x4x8x8xf32>
    %c0_20 = arith.constant 0 : index
    %c1_21 = arith.constant 1 : index
    %c1_22 = arith.constant 1 : index
    %c0_23 = arith.constant 0 : index
    %c0_24 = arith.constant 0 : index
    %c0_25 = arith.constant 0 : index
    %19 = vector.load %arg3[%c0_20, %c1_21, %c1_22, %c0_23, %c0_24, %c0_25] : memref<2x2x2x4x8x8xf32, #tpu.memory_space<vmem>>, vector<2x1x1x4x8x8xf32>
    %20 = vector.shape_cast %19 : vector<2x1x1x4x8x8xf32> to vector<2x4x8x8xf32>
    %21 = vector.shape_cast %18 : vector<2x4x8x8xf32> to vector<2x1x1x4x8x8xf32>
    tpu.vector_store %arg3[%c0_20, %c1_21, %c1_22, %c0_23, %c0_24, %c0_25], %21 {strides = array<i32>} : memref<2x2x2x4x8x8xf32, #tpu.memory_space<vmem>>, vector<2x1x1x4x8x8xf32>,
    return
  }
  func.func @transform_0(%arg0: i32, %arg1: i32) -> (i32, i32, i32, i32) {
    %c0_i32 = arith.constant 0 : i32
    %c0_i32_0 = arith.constant 0 : i32
    %c0_i32_1 = arith.constant 0 : i32
    return %arg0, %c0_i32, %arg1, %c0_i32_0 : i32, i32, i32, i32
  }
  func.func @transform_1(%arg0: i32, %arg1: i32) -> (i32, i32, i32, i32, i32, i32) {
    %c0_i32 = arith.constant 0 : i32
    %c0_i32_0 = arith.constant 0 : i32
    %c0_i32_1 = arith.constant 0 : i32
    %c0_i32_2 = arith.constant 0 : i32
    %c0_i32_3 = arith.constant 0 : i32
    return %arg0, %c0_i32, %c0_i32_0, %c0_i32_1, %arg1, %c0_i32_2 : i32, i32, i32, i32, i32, i32
  }
}

</mosaic_0001>

<bundles_post_ra>
// kernel: tpu_custom_call.1
= control target key start
LH: loop header
LB: loop body
LE: loop exit
PB: predicated region body
PF: predicated region fallthrough
CT: control target
= control target key end

     0   :  { %6 = vsyncpa [#allocation3], 0  ;;  %s7411_s0 = inlined_call_operand.hbm [shape: f32[2,4,16,16], index: 0, kind: input, shape index: {}]   ;;  %s7412_s1 = inlined_call_operand.hbm [shape: f32[2,2,2,4,8,8], index: 1, kind: output, shape index: {}]  }
   0x1   :  { %7 = vsyncpa [#allocation4], 0  ;;  %s12_s8 = sshll.u32 %s7411_s0, 4  ;;  %s3736_s9 = smov [#allocation2]   ;;  %s13_s8 = int_to_ptr.hbm [resolvable:$true] %s12_s8 }
   0x2   :  { %s14_s10 = sshll.u32 %s3736_s9, 4  ;;  %s3737_s11 = smov 128   ;;  %s15_s10 = int_to_ptr.vmem [resolvable:$true] %s14_s10 }
   0x3   :  { %s3738_s12 = smov 8  }
   0x4   :  { %20 = dma.hbm_to_vmem [thread:$0]  %s13_s8, 2048, %s15_s10, [#allocation3], %s3737_s11, %s3737_s11, %s3738_s12  }
   0x5   :  { %3732 = dma.done.wait [#allocation3], 2048  }
   0x6   :  { %3733 = vsyncadd [#allocation3], 4294965248  ;;  %v3767_v0 = vld [vmem:[#allocation2 + $0x20] sm:$0xff]  ;;  %v3769_v1 = vld [vmem:[#allocation2 + $0x10] sm:$0xff]  ;;  %s3739_s13 = smov 126   ;;  %s3740_s0 = smov 124  }
   0x7   :  { %v3771_v2 = vld [vmem:[#allocation2] sm:$0xff]  ;;  %65 = vrot.lane.b32.xlu2 %v3767_v0, %s3739_s13  ;;  %61 = vrot.lane.b32.xlu1 %v3769_v1, %s3739_s13  ;;  %v3779_v3 = vld [vmem:[#allocation2 + $0x28] sm:$0xff]  ;;  %v3781_v4 = vld [vmem:[#allocation2 + $0x18] sm:$0xff]  ;;  %s3741_s14 = smov 122   ;;  %s3742_s15 = smov 120   ;;  %vm394_vm0 = vcmask 1047556  }
   0x8   :  { %57 = vrot.lane.b32.xlu0 %v3771_v2, %s3739_s13  ;;  %v3783_v5 = vld [vmem:[#allocation2 + $0x8] sm:$0xff]  ;;  %v3791_v6 = vld [vmem:[#allocation2 + $0x40] sm:$0xff]  ;;  %v3793_v7 = vld [vmem:[#allocation2 + $0x38] sm:$0xff]  ;;  %s3743_s16 = smov 118   ;;  %s3744_s17 = smov 116   ;;  %vm2508_vm1 = vcmask 1041409  }
   0x9   :  { %v3795_v8 = vld [vmem:[#allocation2 + $0x30] sm:$0xff]  ;;  %v3803_v9 = vld [vmem:[#allocation2 + $0x58] sm:$0xff]  ;;  %v3807_v11 = vld [vmem:[#allocation2 + $0x48] sm:$0xff]  ;;  %s3745_s18 = smov 114   ;;  %vm2510_vm2 = vcmask 1042434   ;;  %vm2512_vm3 = vcmask 1043459  }
   0xa   :  { %v3805_v10 = vld [vmem:[#allocation2 + $0x50] sm:$0xff]  ;;  %v3817_v13 = vld [vmem:[#allocation2 + $0x68] sm:$0xff]  ;;  %v3819_v14 = vld [vmem:[#allocation2 + $0x60] sm:$0xff]  ;;  %vm2514_vm4 = vcmask 1044484   ;;  %vm2516_vm5 = vcmask 1045509   ;;  %vm2518_vm6 = vcmask 1046534  }
   0xb   :  { %v3815_v12 = vld [vmem:[#allocation2 + $0x70] sm:$0xff]  ;;  %v3827_v15 = vld [vmem:[#allocation2 + $0x78] sm:$0xff]  ;;  %vm2520_vm7 = vcmask 1047559   ;;  %vm2579_vm8 = vcmask 64512   ;;  %s3750_s19 = smov [#allocation5]   ;;  %s3645_s23 = sshll.u32 %s7412_s1, 4  ;;  %s3646_s23 = int_to_ptr.hbm [resolvable:$true] %s3645_s23 }
   0xc   :  { %7716 = vst [vmem:[#allocation8_spill] sm:$0xff] %v3827_v15  ;;  %s3643_s20 = sshll.u32 %s3750_s19, 4  ;;  %s3644_s20 = int_to_ptr.vmem [resolvable:$true] %s3643_s20 }
   0xf   :  { %67 = vrot.lane.b32.xlu2 %v3779_v3, %s3739_s13  ;;  %63 = vrot.lane.b32.xlu1 %v3781_v4, %s3739_s13 }
  0x10   :  { %59 = vrot.lane.b32.xlu0 %v3783_v5, %s3739_s13 }
  0x17   :  { %73 = vrot.lane.b32.xlu2 %v3791_v6, %s3739_s13  ;;  %71 = vrot.lane.b32.xlu1 %v3793_v7, %s3739_s13 }
  0x18   :  { %69 = vrot.lane.b32.xlu0 %v3795_v8, %s3739_s13 }
  0x1f   :  { %79 = vrot.lane.b32.xlu2 %v3803_v9, %s3739_s13  ;;  %77 = vrot.lane.b32.xlu1 %v3805_v10, %s3739_s13 }
  0x20   :  { %75 = vrot.lane.b32.xlu0 %v3807_v11, %s3739_s13 }
  0x27   :  { %85 = vrot.lane.b32.xlu2 %v3815_v12, %s3739_s13  ;;  %83 = vrot.lane.b32.xlu1 %v3817_v13, %s3739_s13 }
  0x28   :  { %81 = vrot.lane.b32.xlu0 %v3819_v14, %s3739_s13 }
  0x2f   :  { %107 = vrot.lane.b32.xlu2 %v3783_v5, %s3740_s0  ;;  %105 = vrot.lane.b32.xlu1 %v3771_v2, %s3740_s0 }
  0x30   :  { %87 = vrot.lane.b32.xlu0 %v3827_v15, %s3739_s13 }
  0x37   :  { %113 = vrot.lane.b32.xlu2 %v3767_v0, %s3740_s0  ;;  %111 = vrot.lane.b32.xlu1 %v3781_v4, %s3740_s0 }
  0x38   :  { %109 = vrot.lane.b32.xlu0 %v3769_v1, %s3740_s0 }
  0x3f   :  { %119 = vrot.lane.b32.xlu2 %v3793_v7, %s3740_s0  ;;  %117 = vrot.lane.b32.xlu1 %v3795_v8, %s3740_s0 }
  0x40   :  { %115 = vrot.lane.b32.xlu0 %v3779_v3, %s3740_s0 }
  0x47   :  { %125 = vrot.lane.b32.xlu2 %v3805_v10, %s3740_s0  ;;  %123 = vrot.lane.b32.xlu1 %v3807_v11, %s3740_s0 }
  0x48   :  { %121 = vrot.lane.b32.xlu0 %v3791_v6, %s3740_s0 }
  0x4f   :  { %131 = vrot.lane.b32.xlu2 %v3817_v13, %s3740_s0  ;;  %129 = vrot.lane.b32.xlu1 %v3819_v14, %s3740_s0 }
  0x50   :  { %127 = vrot.lane.b32.xlu0 %v3803_v9, %s3740_s0 }
  0x57   :  { %153 = vrot.lane.b32.xlu2 %v3771_v2, %s3741_s14  ;;  %135 = vrot.lane.b32.xlu1 %v3827_v15, %s3740_s0 }
  0x58   :  { %133 = vrot.lane.b32.xlu0 %v3815_v12, %s3740_s0 }
  0x5f   :  { %159 = vrot.lane.b32.xlu2 %v3781_v4, %s3741_s14  ;;  %157 = vrot.lane.b32.xlu1 %v3769_v1, %s3741_s14 }
  0x60   :  { %155 = vrot.lane.b32.xlu0 %v3783_v5, %s3741_s14 }
  0x61   :  { %v3851_v16 = vpop.permute.xlu2 %65 }
  0x62   :  { %7717 = vst [vmem:[#allocation9_spill] sm:$0xff] %v3851_v16 }
  0x67   :  { %165 = vrot.lane.b32.xlu2 %v3795_v8, %s3741_s14  ;;  %163 = vrot.lane.b32.xlu1 %v3779_v3, %s3741_s14 }
  0x68   :  { %161 = vrot.lane.b32.xlu0 %v3767_v0, %s3741_s14 }
  0x69   :  { %v3856_v17 = vpop.permute.xlu2 %67 }
  0x6a   :  { %7718 = vst [vmem:[#allocation10_spill] sm:$0xff] %v3856_v17  ;;  %v396_v17 = vrot.slane %v3771_v2, 4 }
  0x6f   :  { %171 = vrot.lane.b32.xlu2 %v3807_v11, %s3741_s14  ;;  %169 = vrot.lane.b32.xlu1 %v3791_v6, %s3741_s14 }
  0x70   :  { %167 = vrot.lane.b32.xlu0 %v3793_v7, %s3741_s14 }
  0x71   :  { %v3861_v18 = vpop.permute.xlu2 %73 }
  0x72   :  { %7719 = vst [vmem:[#allocation11_spill] sm:$0xff] %v3861_v18 }
  0x77   :  { %177 = vrot.lane.b32.xlu2 %v3819_v14, %s3741_s14  ;;  %175 = vrot.lane.b32.xlu1 %v3803_v9, %s3741_s14 }
  0x78   :  { %173 = vrot.lane.b32.xlu0 %v3805_v10, %s3741_s14 }
  0x79   :  { %v3866_v19 = vpop.permute.xlu2 %79  ;;  %v3868_v20 = vpop.permute.xlu1 %61 }
  0x7a   :  { %7720 = vst [vmem:[#allocation12_spill] sm:$0xff] %v3866_v19  ;;  %v3870_v21 = vpop.permute.xlu0 %57 }
  0x7f   :  { %183 = vrot.lane.b32.xlu2 %v3827_v15, %s3741_s14  ;;  %181 = vrot.lane.b32.xlu1 %v3815_v12, %s3741_s14 }
  0x80   :  { %179 = vrot.lane.b32.xlu0 %v3817_v13, %s3741_s14 }
  0x81   :  { %v3875_v22 = vpop.permute.xlu2 %85  ;;  %v3877_v23 = vpop.permute.xlu1 %63 }
  0x82   :  { %7721 = vst [vmem:[#allocation13_spill] sm:$0xff] %v3875_v22  ;;  %v3879_v24 = vpop.permute.xlu0 %59 }
  0x87   :  { %205 = vrot.lane.b32.xlu2 %v3769_v1, %s3742_s15  ;;  %203 = vrot.lane.b32.xlu1 %v3783_v5, %s3742_s15 }
  0x88   :  { %201 = vrot.lane.b32.xlu0 %v3771_v2, %s3742_s15 }
  0x89   :  { %v3887_v25 = vpop.permute.xlu1 %71  ;;  %v3889_v26 = vpop.permute.xlu2 %107 }
  0x8a   :  { %7722 = vst [vmem:[#allocation14_spill] sm:$0xff] %v3887_v25  ;;  %v3891_v27 = vpop.permute.xlu0 %69 }
  0x8f   :  { %211 = vrot.lane.b32.xlu2 %v3779_v3, %s3742_s15  ;;  %209 = vrot.lane.b32.xlu1 %v3767_v0, %s3742_s15 }
  0x90   :  { %207 = vrot.lane.b32.xlu0 %v3781_v4, %s3742_s15 }
  0x91   :  { %v3899_v28 = vpop.permute.xlu1 %77  ;;  %v3901_v29 = vpop.permute.xlu2 %113 }
  0x92   :  { %7723 = vst [vmem:[#allocation15_spill] sm:$0xff] %v3899_v28  ;;  %v3903_v30 = vpop.permute.xlu0 %75 }
  0x97   :  { %217 = vrot.lane.b32.xlu2 %v3791_v6, %s3742_s15  ;;  %215 = vrot.lane.b32.xlu1 %v3793_v7, %s3742_s15 }
  0x98   :  { %213 = vrot.lane.b32.xlu0 %v3795_v8, %s3742_s15 }
  0x99   :  { %v3911_v31 = vpop.permute.xlu1 %83  ;;  %v3913_v32 = vpop.permute.xlu2 %119 }
  0x9a   :  { %7724 = vst [vmem:[#allocation16_spill] sm:$0xff] %v3911_v31  ;;  %v3915_v33 = vpop.permute.xlu0 %81 }
  0x9f   :  { %223 = vrot.lane.b32.xlu2 %v3803_v9, %s3742_s15  ;;  %221 = vrot.lane.b32.xlu1 %v3805_v10, %s3742_s15 }
  0xa0   :  { %219 = vrot.lane.b32.xlu0 %v3807_v11, %s3742_s15 }
  0xa1   :  { %v3923_v34 = vpop.permute.xlu2 %125  ;;  %v3925_v35 = vpop.permute.xlu1 %105 }
  0xa2   :  { %v3927_v36 = vpop.permute.xlu0 %87  ;;  %v1066_v22 = vrot.slane %v3923_v34, 4 }
  0xa3   :  { %7725 = vst [vmem:[#allocation17_spill] sm:$0xff] %v3927_v36 }
  0xa4   :  { %v1067_v18 = vsel %vm394_vm0, %v1066_v22, %v3805_v10 }
  0xa7   :  { %229 = vrot.lane.b32.xlu2 %v3815_v12, %s3742_s15  ;;  %227 = vrot.lane.b32.xlu1 %v3817_v13, %s3742_s15 }
  0xa8   :  { %225 = vrot.lane.b32.xlu0 %v3819_v14, %s3742_s15 }
  0xa9   :  { %v3935_v37 = vpop.permute.xlu2 %131  ;;  %v3937_v38 = vpop.permute.xlu1 %111 }
  0xaa   :  { %v3939_v39 = vpop.permute.xlu0 %109  ;;  %v954_v22 = vrot.slane %v3937_v38, 4 }
  0xaf   :  { %251 = vrot.lane.b32.xlu2 %v3783_v5, %s3743_s16  ;;  %249 = vrot.lane.b32.xlu1 %v3771_v2, %s3743_s16 }
  0xb0   :  { %231 = vrot.lane.b32.xlu0 %v3827_v15, %s3742_s15 }
  0xb1   :  { %v3947_v40 = vpop.permute.xlu2 %153  ;;  %v3949_v41 = vpop.permute.xlu1 %117 }
  0xb2   :  { %v3951_v42 = vpop.permute.xlu0 %115 }
  0xb7   :  { %257 = vrot.lane.b32.xlu2 %v3767_v0, %s3743_s16  ;;  %255 = vrot.lane.b32.xlu1 %v3781_v4, %s3743_s16 }
  0xb8   :  { %253 = vrot.lane.b32.xlu0 %v3769_v1, %s3743_s16 }
  0xb9   :  { %v3959_v43 = vpop.permute.xlu2 %159  ;;  %v3961_v44 = vpop.permute.xlu1 %123 }
  0xba   :  { %v3963_v45 = vpop.permute.xlu0 %121 }
  0xbf   :  { %263 = vrot.lane.b32.xlu2 %v3793_v7, %s3743_s16  ;;  %261 = vrot.lane.b32.xlu1 %v3795_v8, %s3743_s16 }
  0xc0   :  { %259 = vrot.lane.b32.xlu0 %v3779_v3, %s3743_s16 }
  0xc1   :  { %v3971_v46 = vpop.permute.xlu2 %165  ;;  %v3973_v47 = vpop.permute.xlu1 %129 }
  0xc2   :  { %v3975_v48 = vpop.permute.xlu0 %127 }
  0xc7   :  { %269 = vrot.lane.b32.xlu2 %v3805_v10, %s3743_s16  ;;  %267 = vrot.lane.b32.xlu1 %v3807_v11, %s3743_s16 }
  0xc8   :  { %265 = vrot.lane.b32.xlu0 %v3791_v6, %s3743_s16 }
  0xc9   :  { %v3983_v49 = vpop.permute.xlu2 %171  ;;  %v3985_v50 = vpop.permute.xlu1 %135 }
  0xca   :  { %7726 = vst [vmem:[#allocation18_spill] sm:$0xff] %v3985_v50  ;;  %v3987_v51 = vpop.permute.xlu0 %133 }
  0xcb   :  { %7727 = vst [vmem:[#allocation19_spill] sm:$0xff] %v3987_v51 }
  0xcf   :  { %275 = vrot.lane.b32.xlu2 %v3817_v13, %s3743_s16  ;;  %273 = vrot.lane.b32.xlu1 %v3819_v14, %s3743_s16 }
  0xd0   :  { %271 = vrot.lane.b32.xlu0 %v3803_v9, %s3743_s16 }
  0xd1   :  { %v3995_v52 = vpop.permute.xlu2 %177  ;;  %v3997_v53 = vpop.permute.xlu1 %157 }
  0xd2   :  { %v3999_v54 = vpop.permute.xlu0 %155 }
  0xd7   :  { %297 = vrot.lane.b32.xlu2 %v3771_v2, %s3744_s17  ;;  %279 = vrot.lane.b32.xlu1 %v3827_v15, %s3743_s16 }
  0xd8   :  { %277 = vrot.lane.b32.xlu0 %v3815_v12, %s3743_s16 }
  0xd9   :  { %v4007_v55 = vpop.permute.xlu2 %183  ;;  %v4009_v56 = vpop.permute.xlu1 %163 }
  0xda   :  { %7728 = vst [vmem:[#allocation20_spill] sm:$0xff] %v4007_v55  ;;  %v4011_v57 = vpop.permute.xlu0 %161  ;;  %v3746_v55 = vmov 1983009808  }
  0xdb   :  { %7729 = vst [vmem:[#allocation21_spill] sm:$0xff] %v4009_v56  ;;  %v399_v56 = vunpack.c.l.s4 %v3746_v55  ;;  %v1292_v55 = vrot.slane %v3767_v0, 4 }
  0xdc   :  { %7730 = vst [vmem:[#allocation22_spill] sm:$0xff] %v4011_v57 }
  0xdf   :  { %303 = vrot.lane.b32.xlu2 %v3781_v4, %s3744_s17  ;;  %301 = vrot.lane.b32.xlu1 %v3769_v1, %s3744_s17 }
  0xe0   :  { %299 = vrot.lane.b32.xlu0 %v3783_v5, %s3744_s17 }
  0xe1   :  { %v4019_v58 = vpop.permute.xlu2 %205  ;;  %v4021_v59 = vpop.permute.xlu1 %169 }
  0xe2   :  { %7731 = vst [vmem:[#allocation23_spill] sm:$0xff] %v4019_v58  ;;  %v4023_v60 = vpop.permute.xlu0 %167 }
  0xe3   :  { %7732 = vst [vmem:[#allocation24_spill] sm:$0xff] %v4021_v59 }
  0xe4   :  { %7733 = vst [vmem:[#allocation25_spill] sm:$0xff] %v4023_v60 }
  0xe7   :  { %309 = vrot.lane.b32.xlu2 %v3795_v8, %s3744_s17  ;;  %307 = vrot.lane.b32.xlu1 %v3779_v3, %s3744_s17 }
  0xe8   :  { %305 = vrot.lane.b32.xlu0 %v3767_v0, %s3744_s17 }
  0xe9   :  { %v4031_v61 = vpop.permute.xlu2 %211  ;;  %v4033_v62 = vpop.permute.xlu1 %175 }
  0xea   :  { %7734 = vst [vmem:[#allocation26_spill] sm:$0xff] %v4031_v61  ;;  %v4035_v63 = vpop.permute.xlu0 %173 }
  0xeb   :  { %7735 = vst [vmem:[#allocation27_spill] sm:$0xff] %v4033_v62 }
  0xec   :  { %7736 = vst [vmem:[#allocation28_spill] sm:$0xff] %v4035_v63 }
  0xef   :  { %315 = vrot.lane.b32.xlu2 %v3807_v11, %s3744_s17  ;;  %313 = vrot.lane.b32.xlu1 %v3791_v6, %s3744_s17 }
  0xf0   :  { %311 = vrot.lane.b32.xlu0 %v3793_v7, %s3744_s17 }
  0xf1   :  { %v4043_v60 = vpop.permute.xlu1 %181  ;;  %v4047_v58 = vpop.permute.xlu2 %217 }
  0xf2   :  { %7737 = vst [vmem:[#allocation29_spill] sm:$0xff] %v4043_v60  ;;  %v4045_v59 = vpop.permute.xlu0 %179 }
  0xf3   :  { %7738 = vst [vmem:[#allocation30_spill] sm:$0xff] %v4045_v59 }
  0xf4   :  { %7739 = vst [vmem:[#allocation31_spill] sm:$0xff] %v4047_v58 }
  0xf7   :  { %321 = vrot.lane.b32.xlu2 %v3819_v14, %s3744_s17  ;;  %319 = vrot.lane.b32.xlu1 %v3803_v9, %s3744_s17 }
  0xf8   :  { %317 = vrot.lane.b32.xlu0 %v3805_v10, %s3744_s17 }
  0xf9   :  { %v4055_v63 = vpop.permute.xlu1 %203  ;;  %v4059_v61 = vpop.permute.xlu2 %223 }
  0xfa   :  { %7740 = vst [vmem:[#allocation32_spill] sm:$0xff] %v4055_v63  ;;  %v4057_v62 = vpop.permute.xlu0 %201 }
  0xfb   :  { %7741 = vst [vmem:[#allocation33_spill] sm:$0xff] %v4057_v62 }
  0xfc   :  { %7742 = vst [vmem:[#allocation34_spill] sm:$0xff] %v4059_v61 }
  0xff   :  { %327 = vrot.lane.b32.xlu2 %v3827_v15, %s3744_s17  ;;  %325 = vrot.lane.b32.xlu1 %v3815_v12, %s3744_s17 }
 0x100   :  { %323 = vrot.lane.b32.xlu0 %v3817_v13, %s3744_s17 }
 0x101   :  { %v4067_v59 = vpop.permute.xlu1 %209  ;;  %v4071_v58 = vpop.permute.xlu2 %229 }
 0x102   :  { %7743 = vst [vmem:[#allocation35_spill] sm:$0xff] %v4067_v59  ;;  %v4069_v60 = vpop.permute.xlu0 %207 }
 0x103   :  { %7744 = vst [vmem:[#allocation36_spill] sm:$0xff] %v4069_v60 }
 0x104   :  { %7745 = vst [vmem:[#allocation37_spill] sm:$0xff] %v4071_v58 }
 0x107   :  { %349 = vrot.lane.b32.xlu2 %v3769_v1, %s3745_s18  ;;  %347 = vrot.lane.b32.xlu1 %v3783_v5, %s3745_s18 }
 0x108   :  { %345 = vrot.lane.b32.xlu0 %v3771_v2, %s3745_s18 }
 0x109   :  { %v4076_v61 = vpop.permute.xlu1 %215  ;;  %v4083_v59 = vpop.permute.xlu2 %251 }
 0x10a   :  { %7746 = vst [vmem:[#allocation38_spill] sm:$0xff] %v4076_v61  ;;  %v4078_v63 = vpop.permute.xlu0 %213 }
 0x10b   :  { %7747 = vst [vmem:[#allocation39_spill] sm:$0xff] %v4078_v63 }
 0x10c   :  { %7748 = vst [vmem:[#allocation40_spill] sm:$0xff] %v4083_v59 }
 0x10f   :  { %355 = vrot.lane.b32.xlu2 %v3779_v3, %s3745_s18  ;;  %353 = vrot.lane.b32.xlu1 %v3767_v0, %s3745_s18 }
 0x110   :  { %351 = vrot.lane.b32.xlu0 %v3781_v4, %s3745_s18 }
 0x111   :  { %v4085_v58 = vpop.permute.xlu1 %221  ;;  %v4096_v36 = vpop.permute.xlu2 %257 }
 0x112   :  { %7749 = vst [vmem:[#allocation41_spill] sm:$0xff] %v4085_v58  ;;  %v4087_v60 = vpop.permute.xlu0 %219 }
 0x113   :  { %7750 = vst [vmem:[#allocation42_spill] sm:$0xff] %v4087_v60 }
 0x114   :  { %7753 = vst [vmem:[#allocation45_spill] sm:$0xff] %v4096_v36 }
 0x117   :  { %361 = vrot.lane.b32.xlu2 %v3791_v6, %s3745_s18  ;;  %359 = vrot.lane.b32.xlu1 %v3793_v7, %s3745_s18 }
 0x118   :  { %357 = vrot.lane.b32.xlu0 %v3795_v8, %s3745_s18 }
 0x119   :  { %v4092_v61 = vpop.permute.xlu1 %227  ;;  %v4105_v59 = vpop.permute.xlu2 %263 }
 0x11a   :  { %7751 = vst [vmem:[#allocation43_spill] sm:$0xff] %v4092_v61  ;;  %v4094_v63 = vpop.permute.xlu0 %225 }
 0x11b   :  { %7752 = vst [vmem:[#allocation44_spill] sm:$0xff] %v4094_v63 }
 0x11c   :  { %7756 = vst [vmem:[#allocation48_spill] sm:$0xff] %v4105_v59 }
 0x11f   :  { %367 = vrot.lane.b32.xlu2 %v3803_v9, %s3745_s18  ;;  %365 = vrot.lane.b32.xlu1 %v3805_v10, %s3745_s18 }
 0x120   :  { %363 = vrot.lane.b32.xlu0 %v3807_v11, %s3745_s18 }
 0x121   :  { %v4101_v58 = vpop.permute.xlu1 %249  ;;  %v4114_v36 = vpop.permute.xlu2 %269 }
 0x122   :  { %7754 = vst [vmem:[#allocation46_spill] sm:$0xff] %v4101_v58  ;;  %v4103_v60 = vpop.permute.xlu0 %231 }
 0x123   :  { %7755 = vst [vmem:[#allocation47_spill] sm:$0xff] %v4103_v60 }
 0x124   :  { %7759 = vst [vmem:[#allocation51_spill] sm:$0xff] %v4114_v36  ;;  %v1850_v36 = vrot.slane %v3913_v32, 4 }
 0x126   :  { %v1851_v16 = vsel %vm394_vm0, %v1850_v36, %v3793_v7  ;;  %v1404_v36 = vrot.slane %v3779_v3, 4 }
 0x127   :  { %373 = vrot.lane.b32.xlu2 %v3815_v12, %s3745_s18  ;;  %371 = vrot.lane.b32.xlu1 %v3817_v13, %s3745_s18 }
 0x128   :  { %369 = vrot.lane.b32.xlu0 %v3819_v14, %s3745_s18 }
 0x129   :  { %v4110_v61 = vpop.permute.xlu1 %255  ;;  %v4121_v60 = vpop.permute.xlu2 %275 }
 0x12a   :  { %7757 = vst [vmem:[#allocation49_spill] sm:$0xff] %v4110_v61  ;;  %v4112_v63 = vpop.permute.xlu0 %253  ;;  %v508_v61 = vrot.slane %v3783_v5, 4 }
 0x12b   :  { %7758 = vst [vmem:[#allocation50_spill] sm:$0xff] %v4112_v63  ;;  %v506_v63 = vrot.slane %v3889_v26, 4 }
 0x12c   :  { %7762 = vst [vmem:[#allocation54_spill] sm:$0xff] %v4121_v60  ;;  %v4135_v60 = vunpack.c.0.s8 %v399_v56  ;;  %v3747_v56 = vmov 1934713408  }
 0x12d   :  { %v447_v25 = vunpack.c.l.s4 %v3747_v56 }
 0x130   :  { %375 = vrot.lane.b32.xlu0 %v3827_v15, %s3745_s18 }
 0x131   :  { %v4117_v57 = vpop.permute.xlu1 %261  ;;  %v4141_v15 = vpop.permute.xlu2 %297 }
 0x132   :  { %7760 = vst [vmem:[#allocation52_spill] sm:$0xff] %v4117_v57  ;;  %v4119_v58 = vpop.permute.xlu0 %259 }
 0x133   :  { %7761 = vst [vmem:[#allocation53_spill] sm:$0xff] %v4119_v58 }
 0x134   :  { %7767 = vst [vmem:[#allocation59_spill] sm:$0xff] %v4141_v15  ;;  %v1628_v15 = vrot.slane %v3817_v13, 4 }
 0x139   :  { %v4123_v59 = vpop.permute.xlu1 %267 }
 0x13a   :  { %7763 = vst [vmem:[#allocation55_spill] sm:$0xff] %v4123_v59  ;;  %v4125_v62 = vpop.permute.xlu0 %265  ;;  %v509_v59 = vsel %vm394_vm0, %v3889_v26, %v508_v61  ;;  %v1852_v26 = vrot.slane %v3793_v7, 4  ;;  %v1068_v61 = vrot.slane %v3805_v10, 4  ;;  %v397_v7 = vsel %vm394_vm0, %v3925_v35, %v396_v17 }
 0x13b   :  { %7764 = vst [vmem:[#allocation56_spill] sm:$0xff] %v4125_v62  ;;  %v1290_v62 = vrot.slane %v3901_v29, 4  ;;  %v1740_v17 = vrot.slane %v3795_v8, 4  ;;  %v4218_v10 = vperm.slane %v397_v7, %v4135_v60  ;;  %v1629_v7 = vsel %vm394_vm0, %v3935_v37, %v1628_v15 }
 0x13c   :  { %v842_v15 = vrot.slane %v3939_v39, 4 }
 0x141   :  { %v4129_v51 = vpop.permute.xlu1 %273 }
 0x142   :  { %7765 = vst [vmem:[#allocation57_spill] sm:$0xff] %v4129_v51  ;;  %v4133_v58 = vpop.permute.xlu0 %271  ;;  %v4155_v51 = vperm.slane %v509_v59, %v4135_v60  ;;  %v844_v59 = vrot.slane %v3769_v1, 4 }
 0x143   :  { %7766 = vst [vmem:[#allocation58_spill] sm:$0xff] %v4133_v58  ;;  %v507_v58 = vsel %vm394_vm0, %v506_v63, %v3783_v5  ;;  %v1291_v5 = vsel %vm394_vm0, %v1290_v62, %v3767_v0  ;;  %v1293_v63 = vsel %vm394_vm0, %v3901_v29, %v1292_v55  ;;  %v393_v0 = vrot.slane %v3925_v35, 4 }
 0x144   :  { %v4159_v57 = vperm.slane %v507_v58, %v4135_v60  ;;  %v1853_v58 = vsel %vm394_vm0, %v3913_v32, %v1852_v26  ;;  %v4177_v29 = vperm.slane %v1291_v5, %v4135_v60  ;;  %v4180_v55 = vperm.slane %v1293_v63, %v4135_v60  ;;  %v4206_v26 = vpop.permute.xlu2 %303 }
 0x145   :  { %v4191_v5 = vperm.slane %v1853_v58, %v4135_v60  ;;  %v1069_v63 = vsel %vm394_vm0, %v3923_v34, %v1068_v61  ;;  %v4200_v32 = vperm.slane %v1851_v16, %v4135_v60  ;;  %v395_v58 = vsel %vm394_vm0, %v393_v0, %v3771_v2 }
 0x146   :  { %v4211_v35 = vunpack.c.0.s8 %v447_v25  ;;  %v4215_v16 = vperm.slane %v1069_v63, %v4135_v60  ;;  %v620_v2 = vrot.slane %v3791_v6, 4  ;;  %v4224_v34 = vperm.slane %v1067_v18, %v4135_v60 }
 0x147   :  { %7770 = vst [vmem:[#allocation62_spill] sm:$0xff] %v4191_v5  ;;  %v4227_v25 = vperm.slane %v395_v58, %v4135_v60  ;;  %v1626_v63 = vrot.slane %v3935_v37, 4  ;;  %v406_v61 = vrot.slane %v3947_v40, 4  ;;  %v732_v0 = vrot.slane %v3807_v11, 4 }
 0x148   :  { %7771 = vst [vmem:[#allocation63_spill] sm:$0xff] %v4200_v32  ;;  %v456_v5 = vrot.slane %v4218_v10, 4  ;;  %v845_v37 = vsel %vm394_vm0, %v3939_v39, %v844_v59  ;;  %v1738_v59 = vrot.slane %v3949_v41, 4 }
 0x149   :  { %v4174_v62 = vpop.permute.xlu1 %279  ;;  %7772 = vst [vmem:[#allocation64_spill] sm:$0xff] %v4215_v16  ;;  %v444_v28 = vrot.slane %v4227_v25, 4  ;;  %v1627_v56 = vsel %vm394_vm0, %v1626_v63, %v3817_v13  ;;  %v407_v39 = vsel %vm394_vm0, %v406_v61, %v3870_v21  ;;  %v4268_v32 = vperm.slane %v845_v37, %v4135_v60 }
 0x14a   :  { %7768 = vst [vmem:[#allocation60_spill] sm:$0xff] %v4174_v62  ;;  %v4184_v19 = vpop.permute.xlu0 %277  ;;  %v956_v62 = vrot.slane %v3781_v4, 4  ;;  %v843_v13 = vsel %vm394_vm0, %v842_v15, %v3769_v1  ;;  %v1402_v61 = vrot.slane %v3951_v42, 4  ;;  %v1405_v37 = vsel %vm394_vm0, %v3951_v42, %v1404_v36 }
 0x14b   :  { %7769 = vst [vmem:[#allocation61_spill] sm:$0xff] %v4184_v19  ;;  %v7777_v36 = vrot.slane %v3877_v23, 4 }
 0x14c   :  { %7773 = vst [vmem:[#allocation65_spill] sm:$0xff] %v4224_v34  ;;  %v957_v18 = vsel %vm394_vm0, %v3937_v38, %v956_v62  ;;  %v4251_v38 = vperm.slane %v1629_v7, %v4135_v60  ;;  %v7775_v62 = vrot.slane %v3870_v21, 4  ;;  %v955_v7 = vsel %vm394_vm0, %v954_v22, %v3781_v4 }
 0x14d   :  { %v4260_v16 = vperm.slane %v957_v18, %v4135_v60  ;;  %v966_v34 = vrot.slane %v3959_v43, 4  ;;  %v1741_v21 = vsel %vm394_vm0, %v3949_v41, %v1740_v17  ;;  %v4278_v18 = vpop.permute.xlu2 %309  ;;  %v4281_v4 = vperm.slane %v1627_v56, %v4135_v60 }
 0x14e   :  { %7774 = vst [vmem:[#allocation66_spill] sm:$0xff] %v4251_v38  ;;  %v409_v58 = vsel %vm394_vm0, %v3947_v40, %v7775_v62  ;;  %v413_v22 = vperm.slane %v407_v39, %v4135_v60  ;;  %v1739_v17 = vsel %vm394_vm0, %v1738_v59, %v3795_v8  ;;  %v4295_v56 = vperm.slane %v843_v13, %v4135_v60 }
 0x14f   :  { %v417_v63 = vperm.slane %v409_v58, %v4135_v60  ;;  %7776 = vst [vmem:[#allocation67_spill] sm:$0xff] %v4281_v4  ;;  %v961_v58 = vperm.slane %v955_v7, %v4135_v60  ;;  %v1016_v41 = vrot.slane %v4260_v16, 4  ;;  %v4298_v39 = vperm.slane %v1741_v21, %v4135_v60 }
 0x150   :  { %v967_v42 = vsel %vm394_vm0, %v966_v34, %v3877_v23  ;;  %v969_v7 = vsel %vm394_vm0, %v3959_v43, %v7777_v36  ;;  %v1403_v13 = vsel %vm394_vm0, %v1402_v61, %v3779_v3  ;;  %v4312_v62 = vperm.slane %v1405_v37, %v4135_v60 }
 0x151   :  { %v4234_v19 = vpop.permute.xlu1 %301  ;;  %v454_v59 = vrot.slane %v417_v63, 4  ;;  %v442_v21 = vrot.slane %v413_v22, 4  ;;  %v4315_v40 = vperm.slane %v1739_v17, %v4135_v60  ;;  %v730_v23 = vrot.slane %v3961_v44, 4 }
 0x152   :  { %v4241_v31 = vpop.permute.xlu0 %299  ;;  %7778 = vst [vmem:[#allocation68_spill] sm:$0xff] %v4312_v62  ;;  %v733_v43 = vsel %vm394_vm0, %v3961_v44, %v732_v0  ;;  %v973_v34 = vperm.slane %v967_v42, %v4135_v60  ;;  %v977_v36 = vperm.slane %v969_v7, %v4135_v60  ;;  %v618_v8 = vrot.slane %v3963_v45, 4 }
 0x153   :  { %v621_v3 = vsel %vm394_vm0, %v3963_v45, %v620_v2  ;;  %v1004_v61 = vrot.slane %v961_v58, 4  ;;  %v4328_v4 = vperm.slane %v1403_v13, %v4135_v60  ;;  %v445_v44 = vsel %vm394_vm0, %v413_v22, %v444_v28 }
 0x154   :  { %v455_v0 = vsel %vm394_vm0, %v454_v59, %v4218_v10  ;;  %v457_v42 = vsel %vm394_vm0, %v417_v63, %v456_v5  ;;  %v731_v45 = vsel %vm394_vm0, %v730_v23, %v3807_v11  ;;  %v4338_v2 = vperm.slane %v733_v43, %v4135_v60 }
 0x155   :  { %v4341_v7 = vperm.slane %v621_v3, %v4135_v60  ;;  %v443_v13 = vsel %vm394_vm0, %v442_v21, %v4227_v25  ;;  %v1002_v28 = vrot.slane %v973_v34, 4  ;;  %v1014_v22 = vrot.slane %v977_v36, 4  ;;  %v4348_v5 = vpop.permute.xlu2 %315 }
 0x156   :  { %7779 = vst [vmem:[#allocation69_spill] sm:$0xff] %v4338_v2  ;;  %v619_v10 = vsel %vm394_vm0, %v618_v8, %v3791_v6  ;;  %v4356_v23 = vperm.slane %v445_v44, %v4211_v35  ;;  %v4359_v25 = vperm.slane %v455_v0, %v4211_v35  ;;  %v4362_v21 = vperm.slane %v457_v42, %v4211_v35 }
 0x157   :  { %7780 = vst [vmem:[#allocation70_spill] sm:$0xff] %v4341_v7  ;;  %v4365_v43 = vperm.slane %v731_v45, %v4135_v60  ;;  %v1750_v6 = vrot.slane %v3971_v46, 4  ;;  %v7786_v8 = vrot.slane %v3891_v27, 4  ;;  %v4373_v17 = vperm.slane %v443_v13, %v4211_v35 }
 0x158   :  { %7781 = vst [vmem:[#allocation71_spill] sm:$0xff] %v4348_v5  ;;  %v4377_v0 = vperm.slane %v619_v10, %v4135_v60  ;;  %v1005_v45 = vsel %vm394_vm0, %v973_v34, %v1004_v61  ;;  %v1514_v11 = vrot.slane %v3973_v47, 4  ;;  %v1003_v37 = vsel %vm394_vm0, %v1002_v28, %v961_v58 }
 0x159   :  { %v4292_v15 = vpop.permute.xlu1 %307  ;;  %7784 = vst [vmem:[#allocation74_spill] sm:$0xff] %v4359_v25  ;;  %v1753_v3 = vsel %vm394_vm0, %v3971_v46, %v7786_v8  ;;  %v1017_v38 = vsel %vm394_vm0, %v977_v36, %v1016_v41  ;;  %v1015_v46 = vsel %vm394_vm0, %v1014_v22, %v4260_v16  ;;  %v7789_v8 = vrot.slane %v3819_v14, 4 }
 0x15a   :  { %v4306_v1 = vpop.permute.xlu0 %305  ;;  %7785 = vst [vmem:[#allocation75_spill] sm:$0xff] %v4362_v21  ;;  %v4387_v13 = vperm.slane %v1753_v3, %v4135_v60  ;;  %v7790_v42 = vrot.slane %v3803_v9, 4  ;;  %v1751_v41 = vsel %vm394_vm0, %v1750_v6, %v3891_v27  ;;  %v1178_v16 = vrot.slane %v3975_v48, 4 }
 0x15b   :  { %7787 = vst [vmem:[#allocation76_spill] sm:$0xff] %v4373_v17  ;;  %v1517_v10 = vsel %vm394_vm0, %v3973_v47, %v7789_v8  ;;  %v7485_v36 = vmov 0   ;;  %v4404_v61 = vperm.slane %v1005_v45, %v4211_v35  ;;  %v742_v28 = vrot.slane %v3983_v49, 4 }
 0x15c   :  { %7788 = vst [vmem:[#allocation77_spill] sm:$0xff] %v4377_v0  ;;  %v1181_v34 = vsel %vm394_vm0, %v3975_v48, %v7790_v42  ;;  %3675 = vset.pattern.permute.xlu0 %v7485_v36  ;;  %3674 = vset.pattern.permute.xlu2 %v7485_v36  ;;  %v4410_v22 = vperm.slane %v1017_v38, %v4211_v35  ;;  %v7797_v8 = vrot.slane %v3868_v20, 4  ;;  %v1526_v47 = vrot.slane %v3995_v52, 4 }
 0x15d   :  { %7791 = vst [vmem:[#allocation78_spill] sm:$0xff] %v4404_v61  ;;  %3673 = vset.pattern.permute.xlu1 %v7485_v36  ;;  %v4413_v27 = vperm.slane %v1015_v46, %v4211_v35  ;;  %v1515_v48 = vsel %vm394_vm0, %v1514_v11, %v3819_v14  ;;  %v4418_v6 = vperm.slane %v1517_v10, %v4135_v60  ;;  %v7798_v11 = vrot.slane %v3879_v24, 4 }
 0x15e   :  { %7792 = vst [vmem:[#allocation79_spill] sm:$0xff] %v4410_v22  ;;  %v4421_v3 = vperm.slane %v1181_v34, %v4135_v60  ;;  %v4426_v45 = vperm.slane %v1003_v37, %v4211_v35  ;;  %v4429_v38 = vperm.slane %v1751_v41, %v4135_v60  ;;  %v857_v14 = vsel %vm394_vm0, %v3997_v53, %v7797_v8  ;;  %v4450_v8 = vpop.permute.xlu2 %321 }
 0x15f   :  { %7793 = vst [vmem:[#allocation80_spill] sm:$0xff] %v4413_v27  ;;  %v521_v10 = vsel %vm394_vm0, %v3999_v54, %v7798_v11  ;;  %v1179_v37 = vsel %vm394_vm0, %v1178_v16, %v3803_v9  ;;  %v7800_v41 = vrot.slane %v3903_v30, 4  ;;  %v854_v44 = vrot.slane %v3997_v53, 4  ;;  %v7803_v9 = vld [vmem:[#allocation19_spill] sm:$0xff] }
 0x160   :  { %7794 = vst [vmem:[#allocation81_spill] sm:$0xff] %v4418_v6  ;;  %v4453_v58 = vperm.slane %v1515_v48, %v4135_v60  ;;  %v743_v11 = vsel %vm394_vm0, %v742_v28, %v3903_v30  ;;  %v2074_v46 = vrot.slane %v3985_v50, 4  ;;  %v1962_v16 = vrot.slane %v7803_v9, 4  ;;  %v7808_v50 = vld [vmem:[#allocation8_spill] sm:$0xff] }
 0x161   :  { %v4350_v63 = vpop.permute.xlu1 %313  ;;  %7795 = vst [vmem:[#allocation82_spill] sm:$0xff] %v4421_v3  ;;  %v745_v36 = vsel %vm394_vm0, %v3983_v49, %v7800_v41  ;;  %v865_v49 = vperm.slane %v857_v14, %v4135_v60  ;;  %v518_v41 = vrot.slane %v3999_v54, 4  ;;  %v529_v53 = vperm.slane %v521_v10, %v4135_v60 }
 0x162   :  { %7782 = vst [vmem:[#allocation72_spill] sm:$0xff] %v4350_v63  ;;  %v4353_v59 = vpop.permute.xlu0 %311  ;;  %v4468_v0 = vperm.slane %v745_v36, %v4135_v60  ;;  %v7806_v30 = vrot.slane %v3915_v33, 4  ;;  %v7807_v54 = vrot.slane %v3815_v12, 4  ;;  %v1527_v10 = vsel %vm394_vm0, %v1526_v47, %v3915_v33 }
 0x163   :  { %7783 = vst [vmem:[#allocation73_spill] sm:$0xff] %v4353_v59  ;;  %v855_v36 = vsel %vm394_vm0, %v854_v44, %v3868_v20  ;;  %v519_v33 = vsel %vm394_vm0, %v518_v41, %v3879_v24  ;;  %v566_v47 = vrot.slane %v529_v53, 4  ;;  %v7816_v20 = vld [vmem:[#allocation59_spill] sm:$0xff]  ;;  %v7817_v48 = vrot.slane %v4155_v51, 4  ;;  %v7822_v24 = vld [vmem:[#allocation10_spill] sm:$0xff]  ;;  %v7839_v59 = vld [vmem:[#allocation40_spill] sm:$0xff] }
 0x164   :  { %7801 = vst [vmem:[#allocation85_spill] sm:$0xff] %v4450_v8  ;;  %v4464_v8 = vperm.slane %v1179_v37, %v4135_v60  ;;  %v1529_v28 = vsel %vm394_vm0, %v3995_v52, %v7806_v30  ;;  %v1965_v14 = vsel %vm394_vm0, %v7803_v9, %v7807_v54  ;;  %v2075_v52 = vsel %vm394_vm0, %v2074_v46, %v7808_v50 }
 0x165   :  { %7802 = vst [vmem:[#allocation86_spill] sm:$0xff] %v4453_v58  ;;  %v4492_v30 = vperm.slane %v1529_v28, %v4135_v60  ;;  %v902_v9 = vrot.slane %v865_v49, 4  ;;  %v4500_v44 = vperm.slane %v1965_v14, %v4135_v60  ;;  %v4503_v50 = vperm.slane %v1527_v10, %v4135_v60  ;;  %v7836_v58 = vld [vmem:[#allocation17_spill] sm:$0xff] }
 0x166   :  { %7804 = vst [vmem:[#allocation19_spill] sm:$0xff] %v4464_v8  ;;  %v4513_v41 = vperm.slane %v2075_v52, %v4135_v60  ;;  %v525_v14 = vperm.slane %v519_v33, %v4135_v60  ;;  %v418_v10 = vrot.slane %v7816_v20, 4  ;;  %v7818_v37 = vrot.slane %v4268_v32, 4 }
 0x167   :  { %7805 = vst [vmem:[#allocation87_spill] sm:$0xff] %v4468_v0  ;;  %v567_v52 = vsel %vm394_vm0, %v566_v47, %v4155_v51  ;;  %v7820_v33 = vrot.slane %v4315_v40, 4  ;;  %v7824_v47 = vld [vmem:[#allocation20_spill] sm:$0xff] }
 0x168   :  { %7809 = vst [vmem:[#allocation8_spill] sm:$0xff] %v4492_v30  ;;  %v4560_v3 = vperm.slane %v567_v52, %v4211_v35  ;;  %v7834_v52 = vld [vmem:[#allocation9_spill] sm:$0xff] }
 0x169   :  { %v4423_v42 = vpop.permute.xlu1 %319  ;;  %7811 = vst [vmem:[#allocation89_spill] sm:$0xff] %v4500_v44  ;;  %v4527_v44 = vpop.permute.xlu2 %327  ;;  %v7835_v63 = vrot.slane %v7834_v52, 4 }
 0x16a   :  { %7796 = vst [vmem:[#allocation83_spill] sm:$0xff] %v4423_v42  ;;  %v4440_v34 = vpop.permute.xlu0 %317  ;;  %v4475_v42 = vperm.slane %v743_v11, %v4135_v60  ;;  %v1963_v11 = vsel %vm394_vm0, %v1962_v16, %v3815_v12  ;;  %v4506_v12 = vperm.slane %v855_v36, %v4135_v60  ;;  %v569_v36 = vsel %vm394_vm0, %v529_v53, %v7817_v48  ;;  %v7821_v48 = vld [vmem:[#allocation21_spill] sm:$0xff] }
 0x16b   :  { %7799 = vst [vmem:[#allocation84_spill] sm:$0xff] %v4440_v34  ;;  %v4516_v28 = vperm.slane %v1963_v11, %v4135_v60  ;;  %v905_v16 = vsel %vm394_vm0, %v865_v49, %v7818_v37  ;;  %v903_v11 = vsel %vm394_vm0, %v902_v9, %v4268_v32  ;;  %v1414_v37 = vrot.slane %v7821_v48, 4  ;;  %v7832_v34 = vld [vmem:[#allocation46_spill] sm:$0xff] }
 0x16c   :  { %7812 = vst [vmem:[#allocation90_spill] sm:$0xff] %v4503_v50  ;;  %v890_v49 = vrot.slane %v4506_v12, 4  ;;  %v4548_v32 = vperm.slane %v569_v36, %v4211_v35  ;;  %v7826_v9 = vrot.slane %v4295_v56, 4  ;;  %v4555_v53 = vperm.slane %v905_v16, %v4211_v35 }
 0x16d   :  { %7814 = vst [vmem:[#allocation92_spill] sm:$0xff] %v4513_v41  ;;  %v7823_v41 = vrot.slane %v7822_v24, 4  ;;  %v7833_v16 = vrot.slane %v4159_v57, 4 }
 0x16e   :  { %7815 = vst [vmem:[#allocation93_spill] sm:$0xff] %v4516_v28  ;;  %v4537_v28 = vsel %vm394_vm0, %v4429_v38, %v7820_v33  ;;  %v893_v33 = vsel %vm394_vm0, %v4506_v12, %v7826_v9  ;;  %v432_v12 = vrot.slane %v7832_v34, 4 }
 0x16f   :  { %7819 = vst [vmem:[#allocation59_spill] sm:$0xff] %v4527_v44  ;;  %v1417_v51 = vsel %vm394_vm0, %v7821_v48, %v7823_v41  ;;  %v554_v44 = vrot.slane %v525_v14, 4  ;;  %v4563_v41 = vperm.slane %v903_v11, %v4211_v35  ;;  %v7831_v48 = vld [vmem:[#allocation22_spill] sm:$0xff]  ;;  %v557_v7 = vsel %vm394_vm0, %v525_v14, %v7833_v16  ;;  %v7838_v16 = vld [vmem:[#allocation32_spill] sm:$0xff] }
 0x170   :  { %7825 = vst [vmem:[#allocation21_spill] sm:$0xff] %v4548_v32  ;;  %v4566_v36 = vperm.slane %v1417_v51, %v4135_v60  ;;  %v1305_v11 = vsel %vm394_vm0, %v7831_v48, %v7835_v63 }
 0x171   :  { %v4496_v54 = vpop.permute.xlu1 %325  ;;  %7827 = vst [vmem:[#allocation10_spill] sm:$0xff] %v4555_v53 }
 0x172   :  { %7810 = vst [vmem:[#allocation88_spill] sm:$0xff] %v4496_v54  ;;  %v4508_v46 = vpop.permute.xlu0 %323  ;;  %v2086_v54 = vrot.slane %v7824_v47, 4  ;;  %v1302_v47 = vrot.slane %v7831_v48, 4 }
 0x173   :  { %7813 = vst [vmem:[#allocation91_spill] sm:$0xff] %v4508_v46  ;;  %v7828_v46 = vld [vmem:[#allocation33_spill] sm:$0xff] }
 0x174   :  { %v419_v8 = vsel %vm394_vm0, %v418_v10, %v7828_v46  ;;  %7829 = vst [vmem:[#allocation33_spill] sm:$0xff] %v4563_v41  ;;  %v1415_v10 = vsel %vm394_vm0, %v1414_v37, %v7822_v24  ;;  %v420_v51 = vrot.slane %v7828_v46, 4  ;;  %v4582_v30 = vsel %vm394_vm0, %v2086_v54, %v7836_v58  ;;  %v4605_v58 = vpop.permute.xlu2 %349 }
 0x175   :  { %7830 = vst [vmem:[#allocation94_spill] sm:$0xff] %v4566_v36  ;;  %v425_v6 = vperm.slane %v419_v8, %v4135_v60  ;;  %v532_v24 = vrot.slane %v7838_v16, 4  ;;  %v4593_v48 = vperm.slane %v1415_v10, %v4135_v60  ;;  %v1313_v54 = vperm.slane %v1305_v11, %v4135_v60 }
 0x176   :  { %7837 = vst [vmem:[#allocation22_spill] sm:$0xff] %v4582_v30  ;;  %v421_v37 = vsel %vm394_vm0, %v7816_v20, %v420_v51  ;;  %v544_v8 = vrot.slane %v7839_v59, 4 }
 0x177   :  { %v533_v20 = vsel %vm394_vm0, %v4241_v31, %v532_v24  ;;  %v468_v10 = vrot.slane %v425_v6, 4 }
 0x179   :  { %v348_v9 = vpop.permute.xlu1 %347 }
 0x17a   :  { %v542_v5 = vrot.slane %v348_v9, 4  ;;  %v346_v50 = vpop.permute.xlu0 %345 }
 0x17b   :  { %v430_v27 = vrot.slane %v346_v50, 4  ;;  %v433_v14 = vsel %vm394_vm0, %v346_v50, %v432_v12  ;;  %v555_v50 = vsel %vm394_vm0, %v554_v44, %v4159_v57  ;;  %v530_v12 = vrot.slane %v4241_v31, 4  ;;  %v7840_v31 = vld [vmem:[#allocation50_spill] sm:$0xff] }
 0x17c   :  { %v543_v63 = vsel %vm394_vm0, %v542_v5, %v7839_v59  ;;  %v441_v46 = vperm.slane %v433_v14, %v4135_v60  ;;  %v429_v14 = vperm.slane %v421_v37, %v4135_v60  ;;  %v1462_v57 = vrot.slane %v4566_v36, 4 }
 0x17d   :  { %v431_v5 = vsel %vm394_vm0, %v430_v27, %v7832_v34  ;;  %v4608_v11 = vperm.slane %v543_v63, %v4135_v60  ;;  %v1303_v44 = vsel %vm394_vm0, %v1302_v47, %v7834_v52  ;;  %v880_v24 = vrot.slane %v7840_v31, 4 }
 0x17e   :  { %v478_v51 = vrot.slane %v441_v46, 4  ;;  %v437_v59 = vperm.slane %v431_v5, %v4135_v60  ;;  %v545_v27 = vsel %vm394_vm0, %v348_v9, %v544_v8  ;;  %v1350_v34 = vrot.slane %v1313_v54, 4 }
 0x17f   :  { %v4617_v37 = vperm.slane %v533_v20, %v4135_v60  ;;  %v531_v5 = vsel %vm394_vm0, %v530_v12, %v7838_v16  ;;  %v881_v36 = vsel %vm394_vm0, %v4605_v58, %v880_v24  ;;  %v4626_v47 = vperm.slane %v555_v50, %v4211_v35 }
 0x180   :  { %v469_v30 = vsel %vm394_vm0, %v437_v59, %v468_v10  ;;  %v479_v63 = vsel %vm394_vm0, %v478_v51, %v429_v14  ;;  %v4629_v52 = vperm.slane %v557_v7, %v4211_v35  ;;  %v4632_v9 = vperm.slane %v1303_v44, %v4135_v60 }
 0x181   :  { %7841 = vst [vmem:[#allocation46_spill] sm:$0xff] %v4626_v47  ;;  %v553_v8 = vperm.slane %v545_v27, %v4135_v60  ;;  %v578_v20 = vrot.slane %v4608_v11, 4  ;;  %v4637_v51 = vperm.slane %v893_v33, %v4211_v35  ;;  %v466_v16 = vrot.slane %v437_v59, 4  ;;  %v7846_v27 = vld [vmem:[#allocation23_spill] sm:$0xff] }
 0x182   :  { %7842 = vst [vmem:[#allocation9_spill] sm:$0xff] %v4629_v52  ;;  %v4640_v12 = vperm.slane %v469_v30, %v4211_v35  ;;  %v4643_v50 = vperm.slane %v479_v63, %v4211_v35  ;;  %v891_v7 = vsel %vm394_vm0, %v890_v49, %v4295_v56  ;;  %v537_v10 = vperm.slane %v531_v5, %v4135_v60  ;;  %v4672_v2 = vpop.permute.xlu0 %351 }
 0x183   :  { %v592_v44 = vrot.slane %v4617_v37, 4  ;;  %v4650_v24 = vperm.slane %v881_v36, %v4135_v60  ;;  %v7845_v33 = vrot.slane %v4180_v55, 4  ;;  %v868_v30 = vrot.slane %v7846_v27, 4 }
 0x184   :  { %7843 = vst [vmem:[#allocation32_spill] sm:$0xff] %v4640_v12  ;;  %v480_v22 = vrot.slane %v429_v14, 4  ;;  %v1351_v63 = vsel %vm394_vm0, %v1350_v34, %v4180_v55  ;;  %v1463_v56 = vsel %vm394_vm0, %v1462_v57, %v4312_v62  ;;  %v978_v49 = vrot.slane %v4206_v26, 4 }
 0x185   :  { %7844 = vst [vmem:[#allocation40_spill] sm:$0xff] %v4643_v50  ;;  %v1353_v59 = vsel %vm394_vm0, %v1313_v54, %v7845_v33  ;;  %v866_v5 = vrot.slane %v4234_v19, 4  ;;  %v593_v36 = vsel %vm394_vm0, %v553_v8, %v592_v44  ;;  %v579_v0 = vsel %vm394_vm0, %v578_v20, %v537_v10 }
 0x186   :  { %v869_v54 = vsel %vm394_vm0, %v4234_v19, %v868_v30  ;;  %v494_v33 = vrot.slane %v4640_v12, 4  ;;  %v498_v14 = vrot.slane %v4643_v50, 4  ;;  %v467_v55 = vsel %vm394_vm0, %v466_v16, %v425_v6 }
 0x187   :  { %v878_v34 = vrot.slane %v4605_v58, 4  ;;  %v926_v57 = vrot.slane %v4650_v24, 4  ;;  %v481_v62 = vsel %vm394_vm0, %v441_v46, %v480_v22  ;;  %v4675_v44 = vperm.slane %v467_v55, %v4211_v35 }
 0x188   :  { %v4679_v19 = vsel %vm394_vm0, %v494_v33, %v4356_v23  ;;  %v4683_v20 = vsel %vm394_vm0, %v498_v14, %v4359_v25  ;;  %v4686_v6 = vperm.slane %v579_v0, %v4211_v35  ;;  %v4689_v58 = vperm.slane %v593_v36, %v4211_v35  ;;  %v4712_v25 = vpop.permute.xlu1 %353 }
 0x189   :  { %7847 = vst [vmem:[#allocation50_spill] sm:$0xff] %v4675_v44  ;;  %v1338_v22 = vrot.slane %v4632_v9, 4  ;;  %v590_v46 = vrot.slane %v553_v8, 4  ;;  %2254 = vperm.xlu2 %3674, %v4679_v19   ;;  %2257 = vperm.xlu0 %3675, %v4683_v20   ;;  %v490_v16 = vrot.slane %v4675_v44, 4  ;;  %v4696_v30 = vperm.slane %v891_v7, %v4211_v35  ;;  %v7855_v8 = vld [vmem:[#allocation36_spill] sm:$0xff] }
 0x18a   :  { %7848 = vst [vmem:[#allocation23_spill] sm:$0xff] %v4679_v19  ;;  %v4699_v33 = vperm.slane %v869_v54, %v4135_v60  ;;  %v990_v0 = vrot.slane %v4672_v2, 4  ;;  %v4703_v36 = vperm.slane %v1353_v59, %v4211_v35  ;;  %v4706_v14 = vperm.slane %v1351_v63, %v4211_v35  ;;  %v7859_v19 = vld [vmem:[#allocation11_spill] sm:$0xff] }
 0x18b   :  { %7849 = vst [vmem:[#allocation95_spill] sm:$0xff] %v4683_v20  ;;  %v979_v55 = vsel %vm394_vm0, %v978_v49, %v7855_v8  ;;  %v867_v50 = vsel %vm394_vm0, %v866_v5, %v7846_v27  ;;  %v4716_v7 = vsel %vm394_vm0, %v490_v16, %v4373_v17  ;;  %v4719_v54 = vperm.slane %v481_v62, %v4211_v35  ;;  %v7858_v5 = vld [vmem:[#allocation24_spill] sm:$0xff] }
 0x18c   :  { %7850 = vst [vmem:[#allocation96_spill] sm:$0xff] %v4686_v6  ;;  %v879_v59 = vsel %vm394_vm0, %v878_v34, %v7840_v31  ;;  %2251 = vperm.xlu1 %3673, %v4716_v7   ;;  %v602_v63 = vrot.slane %v4686_v6, 4  ;;  %v614_v49 = vrot.slane %v4689_v58, 4  ;;  %v927_v27 = vsel %vm394_vm0, %v926_v57, %v4699_v33 }
 0x18d   :  { %7851 = vst [vmem:[#allocation97_spill] sm:$0xff] %v4689_v58  ;;  %v630_v44 = vrot.slane %v7858_v5, 4  ;;  %v7860_v16 = vrot.slane %v7859_v19, 4  ;;  %v591_v17 = vsel %vm394_vm0, %v590_v46, %v4617_v37  ;;  %v4736_v31 = vperm.slane %v1463_v56, %v4211_v35 }
 0x18e   :  { %7852 = vst [vmem:[#allocation98_spill] sm:$0xff] %v4696_v30  ;;  %v873_v34 = vperm.slane %v867_v50, %v4135_v60  ;;  %v580_v6 = vrot.slane %v537_v10, 4  ;;  %v1326_v58 = vrot.slane %v4712_v25, 4  ;;  %v4743_v20 = vperm.slane %v979_v55, %v4135_v60 }
 0x18f   :  { %7853 = vst [vmem:[#allocation99_spill] sm:$0xff] %v4703_v36  ;;  %v633_v62 = vsel %vm394_vm0, %v7858_v5, %v7860_v16  ;;  %v885_v12 = vperm.slane %v879_v59, %v4135_v60  ;;  %v502_v5 = vrot.slane %v4719_v54, 4  ;;  %v4748_v37 = vperm.slane %v927_v27, %v4211_v35  ;;  %v7867_v59 = vld [vmem:[#allocation14_spill] sm:$0xff]  ;;  %v7869_v16 = vld [vmem:[#allocation25_spill] sm:$0xff] }
 0x190   :  { %7854 = vst [vmem:[#allocation100_spill] sm:$0xff] %v4706_v14  ;;  %v4752_v56 = vsel %vm394_vm0, %v602_v63, %v4626_v47  ;;  %v4756_v50 = vsel %vm394_vm0, %v614_v49, %v4548_v32  ;;  %v4759_v10 = vperm.slane %v591_v17, %v4211_v35  ;;  %v581_v46 = vsel %vm394_vm0, %v4608_v11, %v580_v6  ;;  %v7870_v6 = vld [vmem:[#allocation45_spill] sm:$0xff] }
 0x191   :  { %7856 = vst [vmem:[#allocation36_spill] sm:$0xff] %v4716_v7  ;;  %v7862_v7 = vld [vmem:[#allocation49_spill] sm:$0xff]  ;;  %v4765_v55 = vperm.slane %v633_v62, %v4135_v60  ;;  %v7868_v27 = vrot.slane %v7867_v59, 4  ;;  %2263 = vperm.xlu2 %3674, %v4752_v56   ;;  %2272 = vperm.xlu0 %3675, %v4756_v50   ;;  %v631_v17 = vsel %vm394_vm0, %v630_v44, %v7859_v19  ;;  %v916_v11 = vrot.slane %v873_v34, 4 }
 0x192   :  { %7857 = vst [vmem:[#allocation101_spill] sm:$0xff] %v4719_v54  ;;  %v991_v57 = vsel %vm394_vm0, %v990_v0, %v7862_v7  ;;  %v1327_v49 = vsel %vm394_vm0, %v1326_v58, %v7870_v6  ;;  %v1339_v62 = vsel %vm394_vm0, %v1338_v22, %v4177_v29  ;;  %v1028_v0 = vrot.slane %v4743_v20, 4 }
 0x193   :  { %7861 = vst [vmem:[#allocation24_spill] sm:$0xff] %v4736_v31  ;;  %v1865_v63 = vsel %vm394_vm0, %v7869_v16, %v7868_v27  ;;  %v997_v47 = vperm.slane %v991_v57, %v4135_v60  ;;  %v1314_v27 = vrot.slane %v4306_v1, 4  ;;  %v4784_v57 = vsel %vm394_vm0, %v502_v5, %v4362_v21 }
 0x194   :  { %7863 = vst [vmem:[#allocation11_spill] sm:$0xff] %v4748_v37  ;;  %v4787_v32 = vperm.slane %v581_v46, %v4211_v35  ;;  %v914_v54 = vrot.slane %v885_v12, 4  ;;  %2260 = vperm.xlu1 %3673, %v4784_v57   ;;  %v610_v44 = vrot.slane %v4759_v10, 4  ;;  %v946_v19 = vrot.slane %v4748_v37, 4 }
 0x195   :  { %7864 = vst [vmem:[#allocation49_spill] sm:$0xff] %v4752_v56  ;;  %v917_v58 = vsel %vm394_vm0, %v885_v12, %v916_v11  ;;  %v1862_v22 = vrot.slane %v7869_v16, 4  ;;  %v4798_v5 = vperm.slane %v1327_v49, %v4135_v60  ;;  %v1029_v46 = vsel %vm394_vm0, %v997_v47, %v1028_v0 }
 0x196   :  { %7865 = vst [vmem:[#allocation102_spill] sm:$0xff] %v4756_v50  ;;  %v4795_v50 = vperm.slane %v1865_v63, %v4135_v60  ;;  %v4802_v21 = vperm.slane %v631_v17, %v4135_v60  ;;  %v7875_v12 = vrot.slane %v4177_v29, 4  ;;  %v980_v63 = vrot.slane %v7855_v8, 4 }
 0x197   :  { %7866 = vst [vmem:[#allocation103_spill] sm:$0xff] %v4759_v10  ;;  %v4806_v10 = vperm.slane %v1339_v62, %v4211_v35  ;;  %v606_v0 = vrot.slane %v4787_v32, 4  ;;  %v4817_v17 = vperm.slane %v917_v58, %v4211_v35  ;;  %v4821_v49 = vsel %vm394_vm0, %v610_v44, %v4560_v3 }
 0x198   :  { %7871 = vst [vmem:[#allocation14_spill] sm:$0xff] %v4784_v57  ;;  %v7873_v57 = vld [vmem:[#allocation35_spill] sm:$0xff]  ;;  %v1341_v16 = vsel %vm394_vm0, %v4632_v9, %v7875_v12  ;;  %v4825_v29 = vsel %vm394_vm0, %v946_v19, %v4563_v41  ;;  %v4828_v9 = vperm.slane %v1029_v46, %v4211_v35  ;;  %v915_v8 = vsel %vm394_vm0, %v914_v54, %v873_v34  ;;  %v4861_v12 = vpop.permute.xlu2 %355 }
 0x199   :  { %7872 = vst [vmem:[#allocation25_spill] sm:$0xff] %v4787_v32  ;;  %v1316_v56 = vrot.slane %v7873_v57, 4  ;;  %v1315_v11 = vsel %vm394_vm0, %v1314_v27, %v7873_v57  ;;  %v1863_v27 = vsel %vm394_vm0, %v1862_v22, %v7867_v59  ;;  %v1362_v57 = vrot.slane %v4798_v5, 4  ;;  %2269 = vperm.xlu2 %3674, %v4821_v49   ;;  %2281 = vperm.xlu0 %3675, %v4825_v29  }
 0x19a   :  { %7874 = vst [vmem:[#allocation45_spill] sm:$0xff] %v4806_v10  ;;  %v1026_v58 = vrot.slane %v997_v47, 4  ;;  %v992_v44 = vrot.slane %v7862_v7, 4  ;;  %v981_v19 = vsel %vm394_vm0, %v4206_v26, %v980_v63  ;;  %v4843_v34 = vperm.slane %v1341_v16, %v4211_v35 }
 0x19b   :  { %7876 = vst [vmem:[#allocation35_spill] sm:$0xff] %v4821_v49  ;;  %v1317_v54 = vsel %vm394_vm0, %v4306_v1, %v1316_v56  ;;  %v4846_v59 = vperm.slane %v1315_v11, %v4135_v60  ;;  %v4850_v47 = vsel %vm394_vm0, %v606_v0, %v4629_v52  ;;  %v942_v22 = vrot.slane %v4817_v17, 4  ;;  %v7882_v56 = vld [vmem:[#allocation53_spill] sm:$0xff]  ;;  %v7909_v52 = vld [vmem:[#allocation87_spill] sm:$0xff]  ;;  %v7925_v49 = vld [vmem:[#allocation80_spill] sm:$0xff] }
 0x19c   :  { %7877 = vst [vmem:[#allocation104_spill] sm:$0xff] %v4825_v29  ;;  %v4854_v7 = vperm.slane %v915_v8, %v4211_v35  ;;  %v4857_v26 = vperm.slane %v1863_v27, %v4135_v60  ;;  %v1328_v1 = vrot.slane %v7870_v6, 4  ;;  %v1440_v46 = vrot.slane %v7882_v56, 4  ;;  %2266 = vperm.xlu1 %3673, %v4850_v47  }
 0x19d   :  { %7878 = vst [vmem:[#allocation105_spill] sm:$0xff] %v4828_v9  ;;  %v1054_v16 = vrot.slane %v4828_v9, 4  ;;  %v928_v63 = vrot.slane %v4699_v33, 4  ;;  %v993_v11 = vsel %vm394_vm0, %v4672_v2, %v992_v44  ;;  %v1027_v0 = vsel %vm394_vm0, %v1026_v58, %v4743_v20 }
 0x19e   :  { %7879 = vst [vmem:[#allocation106_spill] sm:$0xff] %v4843_v34  ;;  %v1363_v8 = vsel %vm394_vm0, %v1362_v57, %v4846_v59  ;;  %v989_v6 = vperm.slane %v981_v19, %v4135_v60  ;;  %v4874_v27 = vperm.slane %v1317_v54, %v4135_v60  ;;  %v1329_v62 = vsel %vm394_vm0, %v4712_v25, %v1328_v1 }
 0x19f   :  { %7880 = vst [vmem:[#allocation107_spill] sm:$0xff] %v4850_v47  ;;  %v7883_v9 = vrot.slane %v4328_v4, 4  ;;  %v929_v2 = vsel %vm394_vm0, %v4650_v24, %v928_v63  ;;  %v1441_v20 = vsel %vm394_vm0, %v4861_v12, %v1440_v46  ;;  %v4888_v57 = vsel %vm394_vm0, %v942_v22, %v4637_v51  ;;  %v7888_v46 = vld [vmem:[#allocation26_spill] sm:$0xff] }
 0x1a0   :  { %7881 = vst [vmem:[#allocation108_spill] sm:$0xff] %v4854_v7  ;;  %v938_v58 = vrot.slane %v4854_v7, 4  ;;  %v1001_v44 = vperm.slane %v993_v11, %v4135_v60  ;;  %v4894_v25 = vsel %vm394_vm0, %v1054_v16, %v4404_v61  ;;  %v4900_v24 = vperm.slane %v1363_v8, %v4211_v35  ;;  %v4953_v7 = vpop.permute.xlu0 %357 }
 0x1a1   :  { %v1453_v33 = vsel %vm394_vm0, %v4593_v48, %v7883_v9  ;;  %7884 = vst [vmem:[#allocation53_spill] sm:$0xff] %v4888_v57  ;;  %v4897_v9 = vperm.slane %v1027_v0, %v4211_v35  ;;  %v1337_v22 = vperm.slane %v1329_v62, %v4135_v60  ;;  %2278 = vperm.xlu2 %3674, %v4888_v57   ;;  %v1428_v16 = vrot.slane %v7888_v46, 4 }
 0x1a2   :  { %7885 = vst [vmem:[#allocation109_spill] sm:$0xff] %v4894_v25  ;;  %2290 = vperm.xlu0 %3675, %v4894_v25   ;;  %v4909_v1 = vperm.slane %v4537_v28, %v4211_v35  ;;  %v1040_v63 = vrot.slane %v989_v6, 4  ;;  %v4913_v11 = vperm.slane %v1453_v33, %v4211_v35  ;;  %v7890_v0 = vrot.slane %v4429_v38, 4 }
 0x1a3   :  { %7886 = vst [vmem:[#allocation110_spill] sm:$0xff] %v4900_v24  ;;  %v1376_v62 = vrot.slane %v4874_v27, 4  ;;  %v4921_v19 = vperm.slane %v1441_v20, %v4135_v60  ;;  %v4925_v28 = vsel %vm394_vm0, %v938_v58, %v4696_v30  ;;  %v4928_v54 = vperm.slane %v929_v2, %v4211_v35 }
 0x1a4   :  { %7887 = vst [vmem:[#allocation111_spill] sm:$0xff] %v4909_v1  ;;  %v1787_v8 = vsel %vm394_vm0, %v7890_v0, %v4315_v40  ;;  %v1038_v61 = vrot.slane %v1001_v44, 4  ;;  %v1041_v33 = vsel %vm394_vm0, %v1001_v44, %v1040_v63  ;;  %2275 = vperm.xlu1 %3673, %v4925_v28   ;;  %v1050_v38 = vrot.slane %v4897_v9, 4 }
 0x1a5   :  { %7889 = vst [vmem:[#allocation26_spill] sm:$0xff] %v4913_v11  ;;  %v1386_v40 = vrot.slane %v4900_v24, 4  ;;  %v1377_v20 = vsel %vm394_vm0, %v1337_v22, %v1376_v62  ;;  %v4937_v37 = vperm.slane %v1787_v8, %v4211_v35  ;;  %v7894_v58 = vrot.slane %v4298_v39, 4 }
 0x1a6   :  { %7891 = vst [vmem:[#allocation112_spill] sm:$0xff] %v4925_v28  ;;  %v1762_v44 = vrot.slane %v4278_v18, 4  ;;  %v1426_v63 = vrot.slane %v4292_v15, 4  ;;  %v1429_v41 = vsel %vm394_vm0, %v4292_v15, %v1428_v16  ;;  %v7895_v0 = vrot.slane %v4387_v13, 4 }
 0x1a7   :  { %7892 = vst [vmem:[#allocation113_spill] sm:$0xff] %v4928_v54  ;;  %v1801_v2 = vsel %vm394_vm0, %v4387_v13, %v7894_v58  ;;  %v1438_v8 = vrot.slane %v4861_v12, 4  ;;  %v1486_v24 = vrot.slane %v4921_v19, 4  ;;  %v950_v58 = vrot.slane %v4928_v54, 4 }
 0x1a8   :  { %7893 = vst [vmem:[#allocation114_spill] sm:$0xff] %v4937_v37  ;;  %v1799_v62 = vsel %vm394_vm0, %v7895_v0, %v4298_v39  ;;  %v4957_v30 = vperm.slane %v1041_v33, %v4211_v35  ;;  %v4961_v32 = vsel %vm394_vm0, %v1050_v38, %v4426_v45  ;;  %v4965_v15 = vsel %vm394_vm0, %v1386_v40, %v4806_v10  ;;  %v7903_v0 = vld [vmem:[#allocation39_spill] sm:$0xff]  ;;  %v4995_v10 = vpop.permute.xlu1 %359 }
 0x1a9   :  { %7897 = vst [vmem:[#allocation116_spill] sm:$0xff] %v4961_v32  ;;  %v4968_v39 = vperm.slane %v1377_v20, %v4211_v35  ;;  %v1039_v13 = vsel %vm394_vm0, %v1038_v61, %v989_v6  ;;  %v1374_v12 = vrot.slane %v1337_v22, 4  ;;  %2287 = vperm.xlu2 %3674, %v4961_v32   ;;  %v4974_v16 = vperm.slane %v1801_v2, %v4211_v35 }
 0x1aa   :  { %7896 = vst [vmem:[#allocation115_spill] sm:$0xff] %v4957_v30  ;;  %2299 = vperm.xlu0 %3675, %v4965_v15   ;;  %v4977_v33 = vperm.slane %v1799_v62, %v4211_v35  ;;  %v7902_v38 = vrot.slane %v4365_v43, 4  ;;  %v1763_v20 = vsel %vm394_vm0, %v1762_v44, %v7903_v0  ;;  %v4986_v61 = vperm.slane %v1429_v41, %v4135_v60  ;;  %v7907_v41 = vld [vmem:[#allocation69_spill] sm:$0xff] }
 0x1ab   :  { %7898 = vst [vmem:[#allocation117_spill] sm:$0xff] %v4965_v15  ;;  %v1774_v6 = vrot.slane %v4953_v7, 4  ;;  %v7904_v22 = vrot.slane %v4475_v42, 4  ;;  %v1427_v62 = vsel %vm394_vm0, %v1426_v63, %v7888_v46  ;;  %v5002_v44 = vperm.slane %v1039_v13, %v4211_v35 }
 0x1ac   :  { %7899 = vst [vmem:[#allocation118_spill] sm:$0xff] %v4968_v39  ;;  %v781_v40 = vsel %vm394_vm0, %v4475_v42, %v7902_v38  ;;  %v4999_v38 = vsel %vm394_vm0, %v950_v58, %v4555_v53  ;;  %v7908_v54 = vrot.slane %v7907_v41, 4  ;;  %v1062_v42 = vrot.slane %v4957_v30, 4  ;;  %v7910_v58 = vld [vmem:[#allocation27_spill] sm:$0xff]  ;;  %v7979_v30 = vld [vmem:[#allocation30_spill] sm:$0xff] }
 0x1ad   :  { %7900 = vst [vmem:[#allocation119_spill] sm:$0xff] %v4974_v16  ;;  %v779_v2 = vsel %vm394_vm0, %v7904_v22, %v4365_v43  ;;  %v1439_v43 = vsel %vm394_vm0, %v1438_v8, %v7882_v56  ;;  %2284 = vperm.xlu1 %3673, %v4999_v38   ;;  %v1398_v46 = vrot.slane %v4968_v39, 4  ;;  %v1487_v63 = vsel %vm394_vm0, %v1486_v24, %v4986_v61  ;;  %v7911_v22 = vld [vmem:[#allocation12_spill] sm:$0xff] }
 0x1ae   :  { %7901 = vst [vmem:[#allocation120_spill] sm:$0xff] %v4977_v33  ;;  %v793_v28 = vsel %vm394_vm0, %v7909_v52, %v7908_v54  ;;  %v1190_v13 = vrot.slane %v7910_v58, 4  ;;  %v7912_v53 = vrot.slane %v7911_v22, 4  ;;  %v5021_v54 = vperm.slane %v1763_v20, %v4135_v60  ;;  %v7913_v24 = vld [vmem:[#allocation52_spill] sm:$0xff] }
 0x1af   :  { %7905 = vst [vmem:[#allocation39_spill] sm:$0xff] %v4999_v38  ;;  %v1375_v56 = vsel %vm394_vm0, %v1374_v12, %v4874_v27  ;;  %v1433_v8 = vperm.slane %v1427_v62, %v4135_v60  ;;  %v1364_v39 = vrot.slane %v4846_v59, 4  ;;  %v1886_v38 = vrot.slane %v4995_v10, 4  ;;  %v7916_v27 = vld [vmem:[#allocation79_spill] sm:$0xff] }
 0x1b0   :  { %7906 = vst [vmem:[#allocation121_spill] sm:$0xff] %v5002_v44  ;;  %v1193_v47 = vsel %vm394_vm0, %v7910_v58, %v7912_v53  ;;  %v1775_v15 = vsel %vm394_vm0, %v1774_v6, %v7913_v24  ;;  %v1445_v32 = vperm.slane %v1439_v43, %v4135_v60  ;;  %v1058_v25 = vrot.slane %v5002_v44, 4  ;;  %v7921_v58 = vld [vmem:[#allocation15_spill] sm:$0xff] }
 0x1b1   :  { %v5033_v53 = vperm.slane %v1487_v63, %v4211_v35  ;;  %v5036_v20 = vperm.slane %v781_v40, %v4211_v35  ;;  %v5040_v12 = vsel %vm394_vm0, %v1062_v42, %v7916_v27  ;;  %v5044_v59 = vsel %vm394_vm0, %v1398_v46, %v4703_v36  ;;  %v7920_v63 = vld [vmem:[#allocation28_spill] sm:$0xff]  ;;  %v7924_v36 = vld [vmem:[#allocation73_spill] sm:$0xff] }
 0x1b2   :  { %7917 = vst [vmem:[#allocation27_spill] sm:$0xff] %v5040_v12  ;;  %v5047_v6 = vperm.slane %v1375_v56, %v4211_v35  ;;  %v1365_v62 = vsel %vm394_vm0, %v4798_v5, %v1364_v39  ;;  %v5052_v43 = vperm.slane %v1193_v47, %v4135_v60  ;;  %v1078_v40 = vrot.slane %v7920_v63, 4  ;;  %2296 = vperm.xlu2 %3674, %v5040_v12   ;;  %v7923_v39 = vld [vmem:[#allocation48_spill] sm:$0xff] }
 0x1b3   :  { %7914 = vst [vmem:[#allocation69_spill] sm:$0xff] %v5033_v53  ;;  %v7922_v44 = vrot.slane %v7921_v58, 4  ;;  %v1781_v57 = vperm.slane %v1775_v15, %v4135_v60  ;;  %2308 = vperm.xlu0 %3675, %v5044_v59   ;;  %v1191_v46 = vsel %vm394_vm0, %v1190_v13, %v7911_v22  ;;  %v1812_v5 = vrot.slane %v5021_v54, 4 }
 0x1b4   :  { %7915 = vst [vmem:[#allocation87_spill] sm:$0xff] %v5036_v20  ;;  %v1476_v47 = vrot.slane %v1433_v8, 4  ;;  %v1887_v56 = vsel %vm394_vm0, %v1886_v38, %v7923_v39  ;;  %v1874_v29 = vrot.slane %v7924_v36, 4  ;;  %v1506_v15 = vrot.slane %v5033_v53, 4 }
 0x1b5   :  { %7918 = vst [vmem:[#allocation12_spill] sm:$0xff] %v5044_v59  ;;  %v1081_v42 = vsel %vm394_vm0, %v7920_v63, %v7922_v44  ;;  %v5070_v44 = vsel %vm394_vm0, %v1058_v25, %v7925_v49  ;;  %v5074_v63 = vperm.slane %v1365_v62, %v4211_v35  ;;  %v1474_v59 = vrot.slane %v1445_v32, 4 }
 0x1b6   :  { %7919 = vst [vmem:[#allocation52_spill] sm:$0xff] %v5047_v6  ;;  %2293 = vperm.xlu1 %3673, %v5070_v44   ;;  %v1394_v13 = vrot.slane %v5047_v6, 4  ;;  %v1477_v22 = vsel %vm394_vm0, %v1445_v32, %v1476_v47  ;;  %v5080_v38 = vperm.slane %v779_v2, %v4211_v35  ;;  %v5083_v12 = vperm.slane %v1081_v42, %v4135_v60  ;;  %v7931_v47 = vld [vmem:[#allocation38_spill] sm:$0xff] }
 0x1b7   :  { %7926 = vst [vmem:[#allocation28_spill] sm:$0xff] %v5070_v44  ;;  %v5086_v25 = vperm.slane %v1887_v56, %v4135_v60  ;;  %v1813_v53 = vsel %vm394_vm0, %v1781_v57, %v1812_v5  ;;  %v7929_v62 = vrot.slane %v4593_v48, 4  ;;  %v5094_v44 = vperm.slane %v1191_v46, %v4135_v60 }
 0x1b8   :  { %7927 = vst [vmem:[#allocation15_spill] sm:$0xff] %v5074_v63  ;;  %v1079_v2 = vsel %vm394_vm0, %v1078_v40, %v7921_v58  ;;  %v5100_v42 = vperm.slane %v793_v28, %v4211_v35  ;;  %v1875_v56 = vsel %vm394_vm0, %v1874_v29, %v7931_v47  ;;  %v5106_v5 = vsel %vm394_vm0, %v1506_v15, %v4736_v31 }
 0x1b9   :  { %7928 = vst [vmem:[#allocation48_spill] sm:$0xff] %v5080_v38  ;;  %v1451_v49 = vsel %vm394_vm0, %v7929_v62, %v4328_v4  ;;  %v1390_v4 = vrot.slane %v5074_v63, 4  ;;  %v5110_v48 = vperm.slane %v1477_v22, %v4211_v35  ;;  %v1810_v46 = vrot.slane %v1781_v57, 4  ;;  %v7957_v63 = vld [vmem:[#allocation8_spill] sm:$0xff] }
 0x1ba   :  { %7930 = vst [vmem:[#allocation73_spill] sm:$0xff] %v5100_v42  ;;  %v5114_v62 = vsel %vm394_vm0, %v1394_v13, %v4706_v14  ;;  %v5117_v28 = vperm.slane %v1813_v53, %v4211_v35  ;;  %v1475_v40 = vsel %vm394_vm0, %v1474_v59, %v1433_v8  ;;  %v5121_v29 = vperm.slane %v1079_v2, %v4135_v60  ;;  %v7942_v13 = vld [vmem:[#allocation56_spill] sm:$0xff] }
 0x1bb   :  { %7932 = vst [vmem:[#allocation38_spill] sm:$0xff] %v5106_v5  ;;  %v1764_v58 = vrot.slane %v7903_v0, 4  ;;  %v1922_v15 = vrot.slane %v5086_v25, 4  ;;  %2305 = vperm.xlu2 %3674, %v5114_v62   ;;  %2317 = vperm.xlu0 %3675, %v5106_v5   ;;  %v5128_v57 = vperm.slane %v1451_v49, %v4211_v35  ;;  %v1876_v53 = vrot.slane %v7931_v47, 4 }
 0x1bc   :  { %7933 = vst [vmem:[#allocation122_spill] sm:$0xff] %v5110_v48  ;;  %v1888_v8 = vrot.slane %v7923_v39, 4  ;;  %v1776_v59 = vrot.slane %v7913_v24, 4  ;;  %v5137_v22 = vperm.slane %v1875_v56, %v4135_v60  ;;  %v5141_v2 = vsel %vm394_vm0, %v1390_v4, %v4843_v34 }
 0x1bd   :  { %7934 = vst [vmem:[#allocation123_spill] sm:$0xff] %v5114_v62  ;;  %v1765_v0 = vsel %vm394_vm0, %v4278_v18, %v1764_v58  ;;  %v5144_v49 = vperm.slane %v1475_v40, %v4211_v35  ;;  %v1877_v47 = vsel %vm394_vm0, %v7924_v36, %v1876_v53  ;;  %v1502_v24 = vrot.slane %v5110_v48, 4  ;;  %v7939_v58 = vld [vmem:[#allocation68_spill] sm:$0xff]  ;;  %v7941_v36 = vld [vmem:[#allocation94_spill] sm:$0xff] }
 0x1be   :  { %7935 = vst [vmem:[#allocation124_spill] sm:$0xff] %v5117_v28  ;;  %2302 = vperm.xlu1 %3673, %v5141_v2   ;;  %v1838_v39 = vrot.slane %v5117_v28, 4  ;;  %v1811_v18 = vsel %vm394_vm0, %v1810_v46, %v5021_v54  ;;  %v1488_v56 = vrot.slane %v4986_v61, 4  ;;  %v1777_v4 = vsel %vm394_vm0, %v4953_v7, %v1776_v59  ;;  %v362_v59 = vpop.permute.xlu2 %361 }
 0x1bf   :  { %7936 = vst [vmem:[#allocation125_spill] sm:$0xff] %v5128_v57  ;;  %v1923_v40 = vsel %vm394_vm0, %v1922_v15, %v5137_v22  ;;  %v7940_v32 = vrot.slane %v7939_v58, 4  ;;  %v656_v31 = vrot.slane %v7942_v13, 4  ;;  %v1773_v28 = vperm.slane %v1765_v0, %v4135_v60 }
 0x1c0   :  { %7937 = vst [vmem:[#allocation126_spill] sm:$0xff] %v5141_v2  ;;  %v1889_v54 = vsel %vm394_vm0, %v4995_v10, %v1888_v8  ;;  %v7943_v61 = vrot.slane %v7909_v52, 4  ;;  %v5171_v46 = vperm.slane %v1877_v47, %v4135_v60  ;;  %v1489_v15 = vsel %vm394_vm0, %v4921_v19, %v1488_v56  ;;  %v7954_v19 = vld [vmem:[#allocation31_spill] sm:$0xff]  ;;  %v7958_v2 = vld [vmem:[#allocation86_spill] sm:$0xff] }
 0x1c1   :  { %7938 = vst [vmem:[#allocation127_spill] sm:$0xff] %v5144_v49  ;;  %v1465_v53 = vsel %vm394_vm0, %v7941_v36, %v7940_v32  ;;  %v1498_v32 = vrot.slane %v5144_v49, 4  ;;  %v5177_v58 = vperm.slane %v1811_v18, %v4211_v35  ;;  %v1785_v0 = vperm.slane %v1777_v4, %v4135_v60  ;;  %v7950_v4 = vld [vmem:[#allocation63_spill] sm:$0xff]  ;;  %v7955_v49 = vld [vmem:[#allocation81_spill] sm:$0xff] }
 0x1c2   :  { %v791_v7 = vsel %vm394_vm0, %v7943_v61, %v7907_v41  ;;  %v5182_v10 = vsel %vm394_vm0, %v1502_v24, %v4913_v11  ;;  %v5186_v52 = vsel %vm394_vm0, %v1838_v39, %v4909_v1  ;;  %v5189_v41 = vperm.slane %v1923_v40, %v4211_v35 }
 0x1c3   :  { %7944 = vst [vmem:[#allocation68_spill] sm:$0xff] %v5177_v58  ;;  %v1897_v8 = vperm.slane %v1889_v54, %v4135_v60  ;;  %2314 = vperm.xlu2 %3674, %v5182_v10   ;;  %2326 = vperm.xlu0 %3675, %v5186_v52   ;;  %v5196_v47 = vperm.slane %v1465_v53, %v4211_v35  ;;  %v1824_v18 = vrot.slane %v1773_v28, 4  ;;  %v7951_v40 = vrot.slane %v4857_v26, 4 }
 0x1c4   :  { %7945 = vst [vmem:[#allocation94_spill] sm:$0xff] %v5182_v10  ;;  %v5199_v24 = vperm.slane %v791_v7, %v4211_v35  ;;  %v657_v56 = vsel %vm394_vm0, %v362_v59, %v656_v31  ;;  %v1936_v54 = vrot.slane %v5171_v46, 4  ;;  %v5210_v61 = vsel %vm394_vm0, %v1498_v32, %v5128_v57  ;;  %v7960_v10 = vld [vmem:[#allocation90_spill] sm:$0xff] }
 0x1c5   :  { %7946 = vst [vmem:[#allocation56_spill] sm:$0xff] %v5186_v52  ;;  %v1899_v36 = vsel %vm394_vm0, %v7951_v40, %v7950_v4  ;;  %v1834_v53 = vrot.slane %v5177_v58, 4  ;;  %v5214_v7 = vperm.slane %v1489_v15, %v4211_v35  ;;  %v644_v39 = vrot.slane %v7954_v19, 4 }
 0x1c6   :  { %7947 = vst [vmem:[#allocation128_spill] sm:$0xff] %v5189_v41  ;;  %v1822_v1 = vrot.slane %v1785_v0, 4  ;;  %2311 = vperm.xlu1 %3673, %v5210_v61   ;;  %v1946_v31 = vrot.slane %v5189_v41, 4  ;;  %v7956_v40 = vrot.slane %v7955_v49, 4  ;;  %v5224_v32 = vperm.slane %v657_v56, %v4135_v60  ;;  %v7962_v41 = vld [vmem:[#allocation72_spill] sm:$0xff] }
 0x1c7   :  { %7948 = vst [vmem:[#allocation129_spill] sm:$0xff] %v5196_v47  ;;  %v1937_v57 = vsel %vm394_vm0, %v1897_v8, %v1936_v54  ;;  %v1825_v15 = vsel %vm394_vm0, %v1785_v0, %v1824_v18  ;;  %v7959_v52 = vrot.slane %v7958_v2, 4  ;;  %v642_v58 = vrot.slane %v7962_v41, 4  ;;  %v5239_v54 = vpop.permute.xlu0 %363 }
 0x1c8   :  { %7949 = vst [vmem:[#allocation130_spill] sm:$0xff] %v5199_v24  ;;  %v1577_v34 = vsel %vm394_vm0, %v7957_v63, %v7956_v40  ;;  %v645_v48 = vsel %vm394_vm0, %v7962_v41, %v644_v39  ;;  %v5237_v40 = vperm.slane %v1899_v36, %v4211_v35  ;;  %v654_v56 = vrot.slane %v362_v59, 4  ;;  %v7969_v36 = vld [vmem:[#allocation13_spill] sm:$0xff] }
 0x1c9   :  { %7952 = vst [vmem:[#allocation63_spill] sm:$0xff] %v5210_v61  ;;  %v1565_v5 = vsel %vm394_vm0, %v7960_v10, %v7959_v52  ;;  %v7961_v61 = vld [vmem:[#allocation71_spill] sm:$0xff]  ;;  %v1934_v11 = vrot.slane %v1897_v8, 4  ;;  %v5243_v0 = vsel %vm394_vm0, %v1834_v53, %v4937_v37  ;;  %v1510_v52 = vrot.slane %v5214_v7, 4  ;;  %v7968_v8 = vld [vmem:[#allocation29_spill] sm:$0xff] }
 0x1ca   :  { %7953 = vst [vmem:[#allocation131_spill] sm:$0xff] %v5214_v7  ;;  %v754_v62 = vrot.slane %v7961_v61, 4  ;;  %v5248_v18 = vsel %vm394_vm0, %v1946_v31, %v5237_v40  ;;  %v5251_v6 = vperm.slane %v1825_v15, %v4211_v35  ;;  %v5254_v41 = vperm.slane %v1937_v57, %v4211_v35  ;;  %v7971_v57 = vld [vmem:[#allocation42_spill] sm:$0xff] }
 0x1cb   :  { %7963 = vst [vmem:[#allocation31_spill] sm:$0xff] %v5237_v40  ;;  %v1823_v59 = vsel %vm394_vm0, %v1822_v1, %v1773_v28  ;;  %v1974_v39 = vrot.slane %v7968_v8, 4  ;;  %v7970_v14 = vrot.slane %v7969_v36, 4  ;;  %v702_v7 = vrot.slane %v5224_v32, 4  ;;  %2323 = vperm.xlu2 %3674, %v5243_v0   ;;  %2335 = vperm.xlu0 %3675, %v5248_v18   ;;  %v7972_v28 = vld [vmem:[#allocation62_spill] sm:$0xff] }
 0x1cc   :  { %7964 = vst [vmem:[#allocation81_spill] sm:$0xff] %v5243_v0  ;;  %v5266_v31 = vperm.slane %v1577_v34, %v4211_v35  ;;  %v755_v15 = vsel %vm394_vm0, %v754_v62, %v7971_v57  ;;  %v766_v1 = vrot.slane %v5239_v54, 4  ;;  %v7973_v40 = vrot.slane %v7972_v28, 4  ;;  %v5283_v34 = vpop.permute.xlu1 %365 }
 0x1cd   :  { %7965 = vst [vmem:[#allocation8_spill] sm:$0xff] %v5248_v18  ;;  %v1977_v53 = vsel %vm394_vm0, %v7968_v8, %v7970_v14  ;;  %v5276_v14 = vperm.slane %v1565_v5, %v4211_v35  ;;  %v643_v8 = vsel %vm394_vm0, %v642_v58, %v7954_v19  ;;  %v5281_v18 = vperm.slane %v645_v48, %v4135_v60 }
 0x1ce   :  { %7966 = vst [vmem:[#allocation86_spill] sm:$0xff] %v5251_v6  ;;  %v1913_v37 = vsel %vm394_vm0, %v4795_v50, %v7973_v40  ;;  %v5287_v62 = vsel %vm394_vm0, %v1510_v52, %v5196_v47  ;;  %v5290_v0 = vperm.slane %v1823_v59, %v4211_v35  ;;  %v655_v40 = vsel %vm394_vm0, %v654_v56, %v7942_v13  ;;  %v7977_v52 = vld [vmem:[#allocation16_spill] sm:$0xff] }
 0x1cf   :  { %7967 = vst [vmem:[#allocation90_spill] sm:$0xff] %v5254_v41  ;;  %2320 = vperm.xlu1 %3673, %v5287_v62   ;;  %v1846_v5 = vrot.slane %v5251_v6, 4  ;;  %v1958_v58 = vrot.slane %v5254_v41, 4  ;;  %v1935_v48 = vsel %vm394_vm0, %v1934_v11, %v5171_v46  ;;  %v5300_v19 = vperm.slane %v1977_v53, %v4135_v60  ;;  %v7981_v46 = vld [vmem:[#allocation55_spill] sm:$0xff] }
 0x1d0   :  { %7974 = vst [vmem:[#allocation71_spill] sm:$0xff] %v5276_v14  ;;  %v7978_v47 = vrot.slane %v7977_v52, 4  ;;  %v5307_v27 = vperm.slane %v1913_v37, %v4211_v35  ;;  %v703_v13 = vsel %vm394_vm0, %v702_v7, %v5281_v18  ;;  %v649_v56 = vperm.slane %v643_v8, %v4135_v60 }
 0x1d1   :  { %7975 = vst [vmem:[#allocation72_spill] sm:$0xff] %v5287_v62  ;;  %v1924_v41 = vrot.slane %v5137_v22, 4  ;;  %v1102_v11 = vrot.slane %v5283_v34, 4  ;;  %v767_v53 = vsel %vm394_vm0, %v766_v1, %v7981_v46  ;;  %v5317_v62 = vperm.slane %v755_v15, %v4135_v60 }
 0x1d2   :  { %7976 = vst [vmem:[#allocation29_spill] sm:$0xff] %v5290_v0  ;;  %v1641_v59 = vsel %vm394_vm0, %v7979_v30, %v7978_v47  ;;  %v661_v47 = vperm.slane %v655_v40, %v4135_v60  ;;  %v1842_v37 = vrot.slane %v5290_v0, 4  ;;  %v5322_v6 = vperm.slane %v1935_v48, %v4211_v35  ;;  %v5342_v48 = vpop.permute.xlu2 %367 }
 0x1d3   :  { %7980 = vst [vmem:[#allocation13_spill] sm:$0xff] %v5307_v27  ;;  %v5326_v7 = vsel %vm394_vm0, %v1846_v5, %v4974_v16  ;;  %v5330_v22 = vsel %vm394_vm0, %v1958_v58, %v5307_v27  ;;  %v5333_v1 = vperm.slane %v703_v13, %v4211_v35  ;;  %v1925_v15 = vsel %vm394_vm0, %v5086_v25, %v1924_v41  ;;  %v7986_v41 = vld [vmem:[#allocation51_spill] sm:$0xff]  ;;  %v7988_v27 = vld [vmem:[#allocation70_spill] sm:$0xff] }
 0x1d4   :  { %7982 = vst [vmem:[#allocation42_spill] sm:$0xff] %v5326_v7  ;;  %v5339_v8 = vsel %vm394_vm0, %v1974_v39, %v7969_v36  ;;  %v1638_v40 = vrot.slane %v7979_v30, 4  ;;  %v773_v5 = vperm.slane %v767_v53, %v4135_v60  ;;  %2332 = vperm.xlu2 %3674, %v5326_v7   ;;  %2344 = vperm.xlu0 %3675, %v5330_v22   ;;  %v7985_v58 = vrot.slane %v7960_v10, 4  ;;  %v7990_v7 = vld [vmem:[#allocation84_spill] sm:$0xff] }
 0x1d5   :  { %7983 = vst [vmem:[#allocation62_spill] sm:$0xff] %v5330_v22  ;;  %v692_v25 = vrot.slane %v649_v56, 4  ;;  %v1103_v39 = vsel %vm394_vm0, %v1102_v11, %v7986_v41  ;;  %v7987_v30 = vrot.slane %v4795_v50, 4  ;;  %v7989_v53 = vrot.slane %v4765_v55, 4 }
 0x1d6   :  { %7984 = vst [vmem:[#allocation16_spill] sm:$0xff] %v5333_v1  ;;  %v1563_v13 = vsel %vm394_vm0, %v7985_v58, %v7958_v2  ;;  %v804_v22 = vrot.slane %v5317_v62, 4  ;;  %v1090_v10 = vrot.slane %v7990_v7, 4  ;;  %v5365_v2 = vsel %vm394_vm0, %v1842_v37, %v4977_v33 }
 0x1d7   :  { %v1911_v36 = vsel %vm394_vm0, %v7987_v30, %v7972_v28  ;;  %v679_v0 = vsel %vm394_vm0, %v7989_v53, %v7988_v27  ;;  %7991 = vst [vmem:[#allocation30_spill] sm:$0xff] %v5365_v2  ;;  %v5368_v11 = vperm.slane %v1925_v15, %v4211_v35  ;;  %v690_v58 = vrot.slane %v661_v47, 4  ;;  %2329 = vperm.xlu1 %3673, %v5365_v2  }
 0x1d8   :  { %v1954_v50 = vrot.slane %v5322_v6, 4  ;;  %v722_v28 = vrot.slane %v5333_v1, 4  ;;  %v693_v30 = vsel %vm394_vm0, %v661_v47, %v692_v25  ;;  %v5375_v53 = vperm.slane %v1641_v59, %v4135_v60 }
 0x1d9   :  { %7992 = vst [vmem:[#allocation55_spill] sm:$0xff] %v5368_v11  ;;  %v5378_v16 = vperm.slane %v1103_v39, %v4135_v60  ;;  %v805_v37 = vsel %vm394_vm0, %v773_v5, %v804_v22  ;;  %v5382_v15 = vperm.slane %v1563_v13, %v4211_v35  ;;  %v5385_v33 = vperm.slane %v1911_v36, %v4211_v35  ;;  %v7996_v13 = vld [vmem:[#allocation41_spill] sm:$0xff] }
 0x1da   :  { %v5388_v2 = vperm.slane %v679_v0, %v4211_v35  ;;  %v7994_v1 = vrot.slane %v7950_v4, 4  ;;  %v7995_v47 = vrot.slane %v7957_v63, 4  ;;  %v1639_v22 = vsel %vm394_vm0, %v1638_v40, %v7977_v52 }
 0x1db   :  { %v1091_v39 = vsel %vm394_vm0, %v1090_v10, %v7996_v13  ;;  %v1950_v36 = vrot.slane %v5368_v11, 4  ;;  %v5404_v0 = vperm.slane %v693_v30, %v4211_v35  ;;  %v5408_v4 = vsel %vm394_vm0, %v1954_v50, %v5385_v33 }
 0x1dc   :  { %7993 = vst [vmem:[#allocation51_spill] sm:$0xff] %v5388_v2  ;;  %v1901_v59 = vsel %vm394_vm0, %v4857_v26, %v7994_v1  ;;  %v1575_v25 = vsel %vm394_vm0, %v7995_v47, %v7955_v49  ;;  %v5412_v26 = vsel %vm394_vm0, %v722_v28, %v5388_v2  ;;  %v5415_v63 = vperm.slane %v805_v37, %v4211_v35  ;;  %v8001_v37 = vld [vmem:[#allocation77_spill] sm:$0xff]  ;;  %v5437_v47 = vpop.permute.xlu2 %373 }
 0x1dd   :  { %7997 = vst [vmem:[#allocation70_spill] sm:$0xff] %v5408_v4  ;;  %v691_v49 = vsel %vm394_vm0, %v690_v58, %v649_v56  ;;  %v756_v52 = vrot.slane %v7971_v57, 4  ;;  %v1138_v1 = vrot.slane %v5378_v16, 4  ;;  %v802_v40 = vrot.slane %v773_v5, 4  ;;  %2341 = vperm.xlu2 %3674, %v5408_v4   ;;  %2353 = vperm.xlu0 %3675, %v5412_v26  }
 0x1de   :  { %7998 = vst [vmem:[#allocation84_spill] sm:$0xff] %v5412_v26  ;;  %v5423_v10 = vperm.slane %v1901_v59, %v4211_v35  ;;  %v1092_v50 = vrot.slane %v7996_v13, 4  ;;  %v1104_v28 = vrot.slane %v7986_v41, 4  ;;  %v768_v30 = vrot.slane %v7981_v46, 4  ;;  %v5544_v26 = vpop.permute.xlu0 %369 }
 0x1df   :  { %7999 = vst [vmem:[#allocation41_spill] sm:$0xff] %v5415_v63  ;;  %v8002_v56 = vrot.slane %v8001_v37, 4  ;;  %v757_v5 = vsel %vm394_vm0, %v7961_v61, %v756_v52  ;;  %v5435_v58 = vperm.slane %v1091_v39, %v4135_v60  ;;  %v5444_v41 = vperm.slane %v691_v49, %v4211_v35 }
 0x1e0   :  { %8000 = vst [vmem:[#allocation132_spill] sm:$0xff] %v5423_v10  ;;  %v5441_v59 = vsel %vm394_vm0, %v1950_v36, %v5423_v10  ;;  %v1093_v46 = vsel %vm394_vm0, %v7990_v7, %v1092_v50  ;;  %v769_v13 = vsel %vm394_vm0, %v5239_v54, %v768_v30  ;;  %v718_v61 = vrot.slane %v5404_v0, 4  ;;  %v8005_v50 = vld [vmem:[#allocation58_spill] sm:$0xff] }
 0x1e1   :  { %v669_v57 = vsel %vm394_vm0, %v4802_v21, %v8002_v56  ;;  %8003 = vst [vmem:[#allocation77_spill] sm:$0xff] %v5441_v59  ;;  %2338 = vperm.xlu1 %3673, %v5441_v59   ;;  %v830_v39 = vrot.slane %v5415_v63, 4  ;;  %v704_v52 = vrot.slane %v5281_v18, 4  ;;  %v803_v49 = vsel %vm394_vm0, %v802_v40, %v5317_v62 }
 0x1e2   :  { %8004 = vst [vmem:[#allocation133_spill] sm:$0xff] %v5444_v41  ;;  %v5455_v36 = vperm.slane %v669_v57, %v4211_v35  ;;  %v1139_v7 = vsel %vm394_vm0, %v1138_v1, %v5435_v58  ;;  %v1216_v56 = vrot.slane %v8005_v50, 4  ;;  %v765_v54 = vperm.slane %v757_v5, %v4135_v60 }
 0x1e3   :  { %v1105_v30 = vsel %vm394_vm0, %v5283_v34, %v1104_v28  ;;  %v8006_v63 = vrot.slane %v4802_v21, 4  ;;  %v5470_v57 = vperm.slane %v1093_v46, %v4135_v60  ;;  %v705_v62 = vsel %vm394_vm0, %v5224_v32, %v704_v52  ;;  %v8013_v52 = vld [vmem:[#allocation65_spill] sm:$0xff] }
 0x1e4   :  { %v777_v1 = vperm.slane %v769_v13, %v4135_v60  ;;  %v714_v40 = vrot.slane %v5444_v41, 4  ;;  %v5478_v5 = vsel %vm394_vm0, %v718_v61, %v5455_v36  ;;  %v5482_v34 = vsel %vm394_vm0, %v830_v39, %v5036_v20  ;;  %v5511_v20 = vpop.permute.xlu2 %2254 }
 0x1e5   :  { %v667_v18 = vsel %vm394_vm0, %v8006_v63, %v8001_v37  ;;  %8007 = vst [vmem:[#allocation58_spill] sm:$0xff] %v5478_v5  ;;  %v5485_v21 = vperm.slane %v803_v49, %v4211_v35  ;;  %v5488_v63 = vperm.slane %v1139_v7, %v4211_v35  ;;  %v1113_v28 = vperm.slane %v1105_v30, %v4135_v60  ;;  %v8015_v30 = vld [vmem:[#allocation34_spill] sm:$0xff] }
 0x1e6   :  { %8008 = vst [vmem:[#allocation134_spill] sm:$0xff] %v5482_v34  ;;  %2350 = vperm.xlu2 %3674, %v5478_v5   ;;  %2362 = vperm.xlu0 %3675, %v5482_v34   ;;  %v5495_v37 = vperm.slane %v667_v18, %v4211_v35  ;;  %v5498_v46 = vperm.slane %v1575_v25, %v4211_v35  ;;  %v816_v61 = vrot.slane %v765_v54, 4  ;;  %v8014_v49 = vrot.slane %v5121_v29, 4  ;;  %v8022_v34 = vld [vmem:[#allocation64_spill] sm:$0xff] }
 0x1e7   :  { %8009 = vst [vmem:[#allocation135_spill] sm:$0xff] %v5485_v21  ;;  %v5501_v13 = vperm.slane %v1639_v22, %v4135_v60  ;;  %v1217_v39 = vsel %vm394_vm0, %v5342_v48, %v1216_v56  ;;  %v1204_v32 = vrot.slane %v8015_v30, 4  ;;  %v1152_v18 = vrot.slane %v5470_v57, 4 }
 0x1e8   :  { %8010 = vst [vmem:[#allocation136_spill] sm:$0xff] %v5488_v63  ;;  %v1115_v7 = vsel %vm394_vm0, %v8014_v49, %v8013_v52  ;;  %v5515_v25 = vsel %vm394_vm0, %v714_v40, %v5495_v37  ;;  %v5518_v22 = vperm.slane %v705_v62, %v4211_v35  ;;  %v814_v2 = vrot.slane %v777_v1, 4 }
 0x1e9   :  { %8011 = vst [vmem:[#allocation137_spill] sm:$0xff] %v5495_v37  ;;  %v817_v56 = vsel %vm394_vm0, %v777_v1, %v816_v61  ;;  %2347 = vperm.xlu1 %3673, %v5515_v25   ;;  %v826_v49 = vrot.slane %v5485_v21, 4  ;;  %v1162_v41 = vrot.slane %v5488_v63, 4  ;;  %v5525_v11 = vperm.slane %v1217_v39, %v4135_v60  ;;  %v8020_v1 = vld [vmem:[#allocation85_spill] sm:$0xff] }
 0x1ea   :  { %8012 = vst [vmem:[#allocation138_spill] sm:$0xff] %v5498_v46  ;;  %v1153_v10 = vsel %vm394_vm0, %v1113_v28, %v1152_v18  ;;  %v5529_v40 = vperm.slane %v1115_v7, %v4211_v35  ;;  %v8019_v62 = vrot.slane %v7988_v27, 4  ;;  %v1538_v61 = vrot.slane %v8020_v1, 4 }
 0x1eb   :  { %8016 = vst [vmem:[#allocation65_spill] sm:$0xff] %v5515_v25  ;;  %v8021_v25 = vld [vmem:[#allocation83_spill] sm:$0xff]  ;;  %v8023_v39 = vrot.slane %v8022_v34, 4  ;;  %v1214_v7 = vrot.slane %v5342_v48, 4  ;;  %v1150_v5 = vrot.slane %v1113_v28, 4  ;;  %v726_v27 = vrot.slane %v5518_v22, 4 }
 0x1ec   :  { %8017 = vst [vmem:[#allocation34_spill] sm:$0xff] %v5518_v22  ;;  %v681_v37 = vsel %vm394_vm0, %v4765_v55, %v8019_v62  ;;  %v1202_v59 = vrot.slane %v8021_v25, 4  ;;  %v1205_v63 = vsel %vm394_vm0, %v8021_v25, %v1204_v32  ;;  %v5548_v55 = vperm.slane %v817_v56, %v4211_v35 }
 0x1ed   :  { %8018 = vst [vmem:[#allocation139_spill] sm:$0xff] %v5529_v40  ;;  %v1129_v18 = vsel %vm394_vm0, %v5083_v12, %v8023_v39  ;;  %v5552_v62 = vsel %vm394_vm0, %v826_v49, %v5080_v38  ;;  %v5556_v32 = vsel %vm394_vm0, %v1162_v41, %v5529_v40  ;;  %v5559_v25 = vperm.slane %v1153_v10, %v4211_v35  ;;  %v8029_v41 = vld [vmem:[#allocation44_spill] sm:$0xff] }
 0x1ee   :  { %8024 = vst [vmem:[#allocation85_spill] sm:$0xff] %v5548_v55  ;;  %v815_v48 = vsel %vm394_vm0, %v814_v2, %v765_v54  ;;  %v1262_v56 = vrot.slane %v5525_v11, 4  ;;  %2359 = vperm.xlu2 %3674, %v5552_v62   ;;  %2371 = vperm.xlu0 %3675, %v5556_v32   ;;  %v5568_v49 = vperm.slane %v681_v37, %v4211_v35  ;;  %v1550_v10 = vrot.slane %v5544_v26, 4  ;;  %v8031_v54 = vld [vmem:[#allocation82_spill] sm:$0xff]  ;;  %v5585_v37 = vpop.permute.xlu1 %371 }
 0x1ef   :  { %8025 = vst [vmem:[#allocation83_spill] sm:$0xff] %v5552_v62  ;;  %v1539_v40 = vsel %vm394_vm0, %v1538_v61, %v8029_v41  ;;  %v5574_v2 = vperm.slane %v1129_v18, %v4211_v35  ;;  %v8032_v28 = vrot.slane %v8031_v54, 4  ;;  %v1203_v22 = vsel %vm394_vm0, %v1202_v59, %v8015_v30  ;;  %v5587_v62 = vpop.permute.xlu2 %2263 }
 0x1f0   :  { %8026 = vst [vmem:[#allocation64_spill] sm:$0xff] %v5556_v32  ;;  %v5583_v32 = vperm.slane %v1205_v63, %v4135_v60  ;;  %v5591_v61 = vsel %vm394_vm0, %v726_v27, %v5568_v49  ;;  %v5594_v18 = vperm.slane %v815_v48, %v4211_v35  ;;  %v838_v59 = vrot.slane %v5548_v55, 4 }
 0x1f1   :  { %8027 = vst [vmem:[#allocation140_spill] sm:$0xff] %v5559_v25  ;;  %v1241_v39 = vsel %vm394_vm0, %v5052_v43, %v8032_v28  ;;  %v1215_v28 = vsel %vm394_vm0, %v1214_v7, %v8005_v50  ;;  %2356 = vperm.xlu1 %3673, %v5591_v61   ;;  %v1174_v63 = vrot.slane %v5559_v25, 4  ;;  %v1151_v30 = vsel %vm394_vm0, %v1150_v5, %v5470_v57 }
 0x1f2   :  { %8028 = vst [vmem:[#allocation141_spill] sm:$0xff] %v5568_v49  ;;  %v8035_v4 = vrot.slane %v5083_v12, 4  ;;  %v8036_v48 = vrot.slane %v5052_v43, 4  ;;  %v1263_v50 = vsel %vm394_vm0, %v1262_v56, %v5583_v32  ;;  %v5614_v7 = vperm.slane %v1241_v39, %v4211_v35  ;;  %v8038_v12 = vld [vmem:[#allocation57_spill] sm:$0xff] }
 0x1f3   :  { %8030 = vst [vmem:[#allocation44_spill] sm:$0xff] %v5574_v2  ;;  %v1209_v25 = vperm.slane %v1203_v22, %v4135_v60  ;;  %v1140_v57 = vrot.slane %v5435_v58, 4  ;;  %v1662_v5 = vrot.slane %v5585_v37, 4  ;;  %v1221_v43 = vperm.slane %v1215_v28, %v4135_v60 }
 0x1f4   :  { %8033 = vst [vmem:[#allocation82_spill] sm:$0xff] %v5591_v61  ;;  %v1127_v27 = vsel %vm394_vm0, %v8035_v4, %v8022_v34  ;;  %v1239_v49 = vsel %vm394_vm0, %v8036_v48, %v8031_v54  ;;  %v1551_v4 = vsel %vm394_vm0, %v1550_v10, %v8038_v12  ;;  %v5622_v34 = vperm.slane %v1539_v40, %v4135_v60  ;;  %v8043_v10 = vld [vmem:[#allocation37_spill] sm:$0xff]  ;;  %v8049_v61 = vld [vmem:[#allocation91_spill] sm:$0xff] }
 0x1f5   :  { %8034 = vst [vmem:[#allocation142_spill] sm:$0xff] %v5594_v18  ;;  %v834_v54 = vrot.slane %v5594_v18, 4  ;;  %v5627_v56 = vperm.slane %v1151_v30, %v4211_v35  ;;  %v5631_v22 = vsel %vm394_vm0, %v838_v59, %v5100_v42  ;;  %v5635_v58 = vsel %vm394_vm0, %v1174_v63, %v5574_v2  ;;  %v8045_v30 = vld [vmem:[#allocation19_spill] sm:$0xff] }
 0x1f6   :  { %8037 = vst [vmem:[#allocation143_spill] sm:$0xff] %v5614_v7  ;;  %v5638_v39 = vperm.slane %v1263_v50, %v4211_v35  ;;  %v1141_v40 = vsel %vm394_vm0, %v5378_v16, %v1140_v57  ;;  %v1557_v48 = vperm.slane %v1551_v4, %v4135_v60  ;;  %2368 = vperm.xlu2 %3674, %v5631_v22   ;;  %v8044_v59 = vrot.slane %v8013_v52, 4  ;;  %v8047_v16 = vld [vmem:[#allocation54_spill] sm:$0xff] }
 0x1f7   :  { %8039 = vst [vmem:[#allocation57_spill] sm:$0xff] %v5627_v56  ;;  %2380 = vperm.xlu0 %3675, %v5635_v58   ;;  %v8046_v2 = vrot.slane %v8045_v30, 4  ;;  %v1252_v18 = vrot.slane %v1209_v25, 4  ;;  %v1663_v57 = vsel %vm394_vm0, %v1662_v5, %v8047_v16  ;;  %v5657_v4 = vperm.slane %v1127_v27, %v4211_v35 }
 0x1f8   :  { %8040 = vst [vmem:[#allocation144_spill] sm:$0xff] %v5631_v22  ;;  %v1117_v63 = vsel %vm394_vm0, %v5121_v29, %v8044_v59  ;;  %v5660_v28 = vperm.slane %v1239_v49, %v4211_v35  ;;  %v1588_v52 = vrot.slane %v5622_v34, 4  ;;  %v5664_v29 = vpop.permute.xlu0 %375  ;;  %v5666_v59 = vpop.permute.xlu2 %2269  ;;  %v5673_v5 = vperm.slane %v1141_v40, %v4211_v35 }
 0x1f9   :  { %8041 = vst [vmem:[#allocation145_spill] sm:$0xff] %v5635_v58  ;;  %v1229_v50 = vsel %vm394_vm0, %v5094_v44, %v8046_v2  ;;  %v1650_v58 = vrot.slane %v8049_v61, 4  ;;  %v5670_v2 = vsel %vm394_vm0, %v834_v54, %v5199_v24  ;;  %v1250_v27 = vrot.slane %v1221_v43, 4  ;;  %v8053_v24 = vld [vmem:[#allocation43_spill] sm:$0xff] }
 0x1fa   :  { %8042 = vst [vmem:[#allocation146_spill] sm:$0xff] %v5638_v39  ;;  %2365 = vperm.xlu1 %3673, %v5670_v2   ;;  %v1170_v49 = vrot.slane %v5627_v56, 4  ;;  %v1282_v22 = vrot.slane %v5638_v39, 4  ;;  %v1253_v55 = vsel %vm394_vm0, %v1221_v43, %v1252_v18  ;;  %v1540_v42 = vrot.slane %v8029_v41, 4  ;;  %v8055_v43 = vld [vmem:[#allocation66_spill] sm:$0xff] }
 0x1fb   :  { %8048 = vst [vmem:[#allocation37_spill] sm:$0xff] %v5660_v28  ;;  %v5681_v21 = vperm.slane %v1663_v57, %v4135_v60  ;;  %v5684_v54 = vperm.slane %v1117_v63, %v4211_v35  ;;  %v1589_v40 = vsel %vm394_vm0, %v1557_v48, %v1588_v52  ;;  %v1652_v38 = vrot.slane %v8053_v24, 4 }
 0x1fc   :  { %8050 = vst [vmem:[#allocation19_spill] sm:$0xff] %v5670_v2  ;;  %v5689_v2 = vperm.slane %v1229_v50, %v4211_v35  ;;  %v8054_v39 = vrot.slane %v5094_v44, 4  ;;  %v8056_v41 = vrot.slane %v8055_v43, 4  ;;  %v1541_v63 = vsel %vm394_vm0, %v8020_v1, %v1540_v42 }
 0x1fd   :  { %8051 = vst [vmem:[#allocation54_spill] sm:$0xff] %v5673_v5  ;;  %v1651_v52 = vsel %vm394_vm0, %v1650_v58, %v8053_v24  ;;  %v1166_v56 = vrot.slane %v5673_v5, 4  ;;  %v5705_v50 = vperm.slane %v1253_v55, %v4211_v35  ;;  %v5709_v44 = vsel %vm394_vm0, %v1170_v49, %v5657_v4 }
 0x1fe   :  { %8052 = vst [vmem:[#allocation91_spill] sm:$0xff] %v5684_v54  ;;  %v1227_v18 = vsel %vm394_vm0, %v8054_v39, %v8045_v30  ;;  %v1689_v57 = vsel %vm394_vm0, %v5375_v53, %v8056_v41  ;;  %v5713_v39 = vsel %vm394_vm0, %v1282_v22, %v5660_v28  ;;  %v5716_v30 = vperm.slane %v1589_v40, %v4211_v35  ;;  %v2252_v28 = vpop.permute.xlu1 %2251 }
 0x1ff   :  { %8057 = vst [vmem:[#allocation43_spill] sm:$0xff] %v5705_v50  ;;  %v1251_v42 = vsel %vm394_vm0, %v1250_v27, %v1209_v25  ;;  %v1552_v24 = vrot.slane %v8038_v12, 4  ;;  %v1698_v1 = vrot.slane %v5681_v21, 4  ;;  %v1586_v58 = vrot.slane %v1557_v48, 4  ;;  %2377 = vperm.xlu2 %3674, %v5709_v44   ;;  %2389 = vperm.xlu0 %3675, %v5713_v39  }
 0x200   :  { %8058 = vst [vmem:[#allocation66_spill] sm:$0xff] %v5709_v44  ;;  %v5724_v55 = vperm.slane %v1227_v18, %v4211_v35  ;;  %v1664_v22 = vrot.slane %v8047_v16, 4  ;;  %v5728_v49 = vperm.slane %v1541_v63, %v4135_v60  ;;  %v1653_v25 = vsel %vm394_vm0, %v8049_v61, %v1652_v38  ;;  %v5740_v40 = vpop.permute.xlu2 %2278  ;;  %v5746_v18 = vpop.permute.xlu0 %2257  ;;  %v8065_v63 = vld [vmem:[#allocation61_spill] sm:$0xff] }
 0x201   :  { %8059 = vst [vmem:[#allocation147_spill] sm:$0xff] %v5713_v39  ;;  %v5733_v12 = vperm.slane %v1689_v57, %v4211_v35  ;;  %v5736_v48 = vperm.slane %v1651_v52, %v4135_v60  ;;  %v1553_v27 = vsel %vm394_vm0, %v5544_v26, %v1552_v24  ;;  %v5744_v16 = vsel %vm394_vm0, %v1166_v56, %v5684_v54 }
 0x202   :  { %8060 = vst [vmem:[#allocation148_spill] sm:$0xff] %v5716_v30  ;;  %v5749_v41 = vperm.slane %v1251_v42, %v4211_v35  ;;  %v1264_v38 = vrot.slane %v5583_v32, 4  ;;  %v1665_v61 = vsel %vm394_vm0, %v5585_v37, %v1664_v22  ;;  %2374 = vperm.xlu1 %3673, %v5744_v16   ;;  %v1278_v26 = vrot.slane %v5705_v50, 4 }
 0x203   :  { %8061 = vst [vmem:[#allocation149_spill] sm:$0xff] %v5724_v55  ;;  %v1614_v57 = vrot.slane %v5716_v30, 4  ;;  %v2000_v52 = vrot.slane %v8065_v63, 4  ;;  %v5759_v56 = vperm.slane %v1653_v25, %v4135_v60  ;;  %v1587_v42 = vsel %vm394_vm0, %v1586_v58, %v5622_v34 }
 0x204   :  { %8062 = vst [vmem:[#allocation150_spill] sm:$0xff] %v5733_v12  ;;  %v1699_v32 = vsel %vm394_vm0, %v1698_v1, %v5736_v48  ;;  %v1600_v24 = vrot.slane %v5728_v49, 4  ;;  %v1265_v37 = vsel %vm394_vm0, %v5525_v11, %v1264_v38  ;;  %v1561_v22 = vperm.slane %v1553_v27, %v4135_v60 }
 0x205   :  { %8063 = vst [vmem:[#allocation151_spill] sm:$0xff] %v5744_v16  ;;  %v8066_v30 = vrot.slane %v5375_v53, 4  ;;  %v2001_v34 = vsel %vm394_vm0, %v5437_v47, %v2000_v52  ;;  %v1673_v58 = vperm.slane %v1665_v61, %v4135_v60  ;;  %v2442_v1 = vlaneseq  ;;  %v8072_v61 = vld [vmem:[#allocation88_spill] sm:$0xff] }
 0x206   :  { %8064 = vst [vmem:[#allocation152_spill] sm:$0xff] %v5749_v41  ;;  %v1274_v5 = vrot.slane %v5749_v41, 4  ;;  %v5781_v11 = vsel %vm394_vm0, %v1278_v26, %v5689_v2  ;;  %v5785_v27 = vsel %vm394_vm0, %v1614_v57, %v5276_v14  ;;  %v5788_v53 = vperm.slane %v1587_v42, %v4211_v35  ;;  %v8073_v26 = vld [vmem:[#allocation67_spill] sm:$0xff] }
 0x207   :  { %v5773_v25 = vsel %vm394_vm0, %v8066_v30, %v8055_v43  ;;  %8067 = vst [vmem:[#allocation61_spill] sm:$0xff] %v5781_v11  ;;  %v5791_v43 = vperm.slane %v1699_v32, %v4211_v35  ;;  %v8071_v30 = vld [vmem:[#allocation59_spill] sm:$0xff]  ;;  %v1986_v52 = vrot.slane %v8072_v61, 4  ;;  %v1712_v41 = vrot.slane %v5759_v56, 4  ;;  %2386 = vperm.xlu2 %3674, %v5781_v11   ;;  %2398 = vperm.xlu0 %3675, %v5785_v27  }
 0x208   :  { %8068 = vst [vmem:[#allocation153_spill] sm:$0xff] %v5785_v27  ;;  %v2098_v38 = vrot.slane %v8071_v30, 4  ;;  %v8074_v57 = vrot.slane %v5501_v13, 4  ;;  %v8075_v42 = vrot.slane %v8043_v10, 4  ;;  %v1998_v54 = vrot.slane %v5437_v47, 4  ;;  %v5814_v44 = vpop.permute.xlu2 %2287  ;;  %v5820_v50 = vpop.permute.xlu0 %2272 }
 0x209   :  { %8069 = vst [vmem:[#allocation154_spill] sm:$0xff] %v5788_v53  ;;  %v5808_v16 = vperm.slane %v2001_v34, %v4135_v60  ;;  %v1601_v39 = vsel %vm394_vm0, %v1561_v22, %v1600_v24  ;;  %v1713_v11 = vsel %vm394_vm0, %v1673_v58, %v1712_v41  ;;  %v5812_v27 = vand.u32 127, %v2442_v1  ;;  %v8079_v1 = vld [vmem:[#allocation47_spill] sm:$0xff] }
 0x20a   :  { %8070 = vst [vmem:[#allocation155_spill] sm:$0xff] %v5791_v43  ;;  %v1675_v14 = vsel %vm394_vm0, %v8074_v57, %v8073_v26  ;;  %v1989_v32 = vsel %vm394_vm0, %v8072_v61, %v8075_v42  ;;  %v5818_v57 = vsel %vm394_vm0, %v1274_v5, %v5724_v55  ;;  %v5823_v61 = vperm.slane %v1265_v37, %v4211_v35 }
 0x20b   :  { %8076 = vst [vmem:[#allocation59_spill] sm:$0xff] %v5818_v57  ;;  %v1598_v47 = vrot.slane %v1561_v22, 4  ;;  %2383 = vperm.xlu1 %3673, %v5818_v57   ;;  %v1610_v24 = vrot.slane %v5788_v53, 4  ;;  %v5828_v41 = vperm.slane %v1675_v14, %v4211_v35  ;;  %v1722_v34 = vrot.slane %v5791_v43, 4  ;;  %v2261_v14 = vpop.permute.xlu1 %2260 }
 0x20c   :  { %8077 = vst [vmem:[#allocation88_spill] sm:$0xff] %v5823_v61  ;;  %v2099_v42 = vsel %vm394_vm0, %v2098_v38, %v8079_v1  ;;  %v5834_v5 = vperm.slane %v1989_v32, %v4135_v60  ;;  %v2444_v55 = vperm.slane %v2252_v28, %v5812_v27  ;;  %v5838_v37 = vperm.slane %v1601_v39, %v4211_v35 }
 0x20d   :  { %8078 = vst [vmem:[#allocation67_spill] sm:$0xff] %v5828_v41  ;;  %v1987_v22 = vsel %vm394_vm0, %v1986_v52, %v8043_v10  ;;  %v1710_v57 = vrot.slane %v1673_v58, 4  ;;  %v5843_v53 = vperm.slane %v1713_v11, %v4211_v35  ;;  %v1999_v38 = vsel %vm394_vm0, %v1998_v54, %v8065_v63 }
 0x20e   :  { %v2046_v32 = vrot.slane %v5808_v16, 4  ;;  %v2445_v28 = vperm.slane %v5511_v20, %v5812_v27  ;;  %v1286_v39 = vrot.slane %v5823_v61, 4  ;;  %v2110_v43 = vrot.slane %v5664_v29, 4 }
 0x20f   :  { %8080 = vst [vmem:[#allocation47_spill] sm:$0xff] %v5843_v53  ;;  %v5854_v10 = vsel %vm394_vm0, %v1610_v24, %v5382_v15  ;;  %v5858_v58 = vsel %vm394_vm0, %v1722_v34, %v5828_v41  ;;  %v1599_v54 = vsel %vm394_vm0, %v1598_v47, %v5728_v49  ;;  %v2447_v20 = vperm.slane %v2261_v14, %v5812_v27 }
 0x210   :  { %v2509_v63 = vsel %vm2508_vm1, %v2445_v28, %v2444_v55  ;;  %2395 = vperm.xlu2 %3674, %v5854_v10   ;;  %2407 = vperm.xlu0 %3675, %v5858_v58   ;;  %v1622_v11 = vrot.slane %v5838_v37, 4  ;;  %v2446_v52 = vperm.slane %v5746_v18, %v5812_v27  ;;  %v1734_v24 = vrot.slane %v5843_v53, 4  ;;  %v5878_v34 = vpop.permute.xlu2 %2296  ;;  %v5884_v28 = vpop.permute.xlu0 %2281 }
 0x211   :  { %v1711_v49 = vsel %vm394_vm0, %v1710_v57, %v5759_v56  ;;  %v5873_v55 = vperm.slane %v2099_v42, %v4135_v60  ;;  %v5876_v47 = vperm.slane %v1987_v22, %v4135_v60  ;;  %v5882_v14 = vsel %vm394_vm0, %v1286_v39, %v5614_v7  ;;  %v8083_v22 = vld [vmem:[#allocation60_spill] sm:$0xff] }
 0x212   :  { %8081 = vst [vmem:[#allocation156_spill] sm:$0xff] %v5882_v14  ;;  %v5887_v18 = vperm.slane %v1599_v54, %v4211_v35  ;;  %v1700_v53 = vrot.slane %v5736_v48, 4  ;;  %v2005_v56 = vperm.slane %v1999_v38, %v4135_v60  ;;  %v2511_v57 = vsel %vm2510_vm2, %v2446_v52, %v2509_v63 }
 0x213   :  { %2392 = vperm.xlu1 %3673, %v5882_v14   ;;  %v2047_v42 = vsel %vm394_vm0, %v2046_v32, %v5834_v5  ;;  %v2111_v39 = vsel %vm394_vm0, %v2110_v43, %v8083_v22  ;;  %v2513_v41 = vsel %vm2512_vm3, %v2447_v20, %v2511_v57  ;;  %v5899_v54 = vperm.slane %v1711_v49, %v4211_v35  ;;  %v2267_v38 = vpop.permute.xlu1 %2266  ;;  %v8094_v14 = vld [vmem:[#allocation17_spill] sm:$0xff] }
 0x214   :  { %8082 = vst [vmem:[#allocation157_spill] sm:$0xff] %v5887_v18  ;;  %v2448_v48 = vperm.slane %v5587_v62, %v5812_v27  ;;  %v5905_v63 = vsel %vm394_vm0, %v1622_v11, %v5266_v31  ;;  %v5909_v32 = vsel %vm394_vm0, %v1734_v24, %v5733_v12  ;;  %v2449_v43 = vperm.slane %v2267_v38, %v5812_v27 }
 0x215   :  { %8084 = vst [vmem:[#allocation60_spill] sm:$0xff] %v5905_v63  ;;  %v1618_v20 = vrot.slane %v5887_v18, 4  ;;  %v5914_v52 = vperm.slane %v2047_v42, %v4211_v35  ;;  %v2450_v62 = vperm.slane %v5666_v59, %v5812_v27  ;;  %v1701_v11 = vsel %vm394_vm0, %v5681_v21, %v1700_v53  ;;  %v8087_v21 = vld [vmem:[#allocation89_spill] sm:$0xff] }
 0x216   :  { %8085 = vst [vmem:[#allocation158_spill] sm:$0xff] %v5909_v32  ;;  %v2515_v49 = vsel %vm2514_vm4, %v2448_v48, %v2513_v41  ;;  %v5922_v24 = vperm.slane %v2111_v39, %v4135_v60  ;;  %v2451_v57 = vperm.slane %v5820_v50, %v5812_v27  ;;  %v2148_v59 = vrot.slane %v5873_v55, 4 }
 0x217   :  { %8086 = vst [vmem:[#allocation159_spill] sm:$0xff] %v5914_v52  ;;  %v2517_v38 = vsel %vm2516_vm5, %v2449_v43, %v2515_v49  ;;  %v2036_v41 = vrot.slane %v5876_v47, 4  ;;  %v8088_v53 = vrot.slane %v5300_v19, 4  ;;  %v2034_v48 = vrot.slane %v2005_v56, 4 }
 0x218   :  { %2404 = vperm.xlu2 %3674, %v5905_v63   ;;  %2416 = vperm.xlu0 %3675, %v5909_v32   ;;  %v2519_v42 = vsel %vm2518_vm6, %v2450_v62, %v2517_v38  ;;  %v5937_v12 = vpop.permute.xlu2 %2305  ;;  %v5941_v43 = vsel %vm394_vm0, %v1618_v20, %v5498_v46  ;;  %v5943_v49 = vpop.permute.xlu0 %2290  ;;  %v5946_v18 = vperm.slane %v1701_v11, %v4211_v35  ;;  %v1676_v62 = vrot.slane %v8073_v26, 4  ;;  %v3683_v38 = vld [vmem:[#allocation2 + $0x78] sm:$0xff]  ;;  %v8092_v46 = vld [vmem:[#allocation22_spill] sm:$0xff] }
 0x219   :  { %v2023_v39 = vsel %vm394_vm0, %v8088_v53, %v8087_v21  ;;  %v2521_v50 = vsel %vm2520_vm7, %v2451_v57, %v2519_v42  ;;  %8089 = vst [vmem:[#allocation89_spill] sm:$0xff] %v5941_v43  ;;  %v2076_v61 = vrot.slane %v3683_v38, 4  ;;  %v1730_v57 = vrot.slane %v5899_v54, 4  ;;  %v8091_v53 = vld [vmem:[#allocation92_spill] sm:$0xff] }
 0x21a   :  { %8090 = vst [vmem:[#allocation160_spill] sm:$0xff] %v5946_v18  ;;  %v2066_v42 = vrot.slane %v5914_v52, 4  ;;  %v2124_v20 = vrot.slane %v8091_v53, 4  ;;  %v5956_v7 = vperm.slane %v8092_v46, %v4135_v60  ;;  %v2037_v11 = vsel %vm394_vm0, %v2005_v56, %v2036_v41  ;;  %v8095_v56 = vld [vmem:[#allocation93_spill] sm:$0xff] }
 0x21b   :  { %2580 = vst.msk [vmem:[#allocation5] sm:$0xff] %vm2579_vm8, %v2521_v50  ;;  %2401 = vperm.xlu1 %3673, %v5941_v43   ;;  %v2149_v26 = vsel %vm394_vm0, %v5922_v24, %v2148_v59  ;;  %v1981_v50 = vperm.slane %v5339_v8, %v4135_v60  ;;  %v2276_v38 = vpop.permute.xlu1 %2275  ;;  %v5965_v43 = vperm.slane %v5773_v25, %v4211_v35  ;;  %v2088_v32 = vrot.slane %v8094_v14, 4  ;;  %v8097_v14 = vld [vmem:[#allocation18_spill] sm:$0xff] }
 0x21c   :  { %v5968_v52 = vperm.slane %v2023_v39, %v4211_v35  ;;  %v1677_v46 = vsel %vm394_vm0, %v5501_v13, %v1676_v62  ;;  %v2012_v41 = vrot.slane %v8095_v56, 4  ;;  %v1726_v59 = vrot.slane %v5946_v18, 4 }
 0x21d   :  { %v2035_v8 = vsel %vm394_vm0, %v2034_v48, %v5876_v47  ;;  %v5979_v63 = vsel %vm394_vm0, %v1730_v57, %v5965_v43  ;;  %v5986_v39 = vperm.slane %v2037_v11, %v4211_v35  ;;  %v5989_v13 = vperm.slane %v2149_v26, %v4211_v35 }
 0x21e   :  { %8093 = vst [vmem:[#allocation92_spill] sm:$0xff] %v5968_v52  ;;  %v5983_v25 = vsel %vm394_vm0, %v2066_v42, %v5968_v52  ;;  %v2077_v62 = vsel %vm394_vm0, %v8097_v14, %v2076_v61  ;;  %v2100_v18 = vrot.slane %v8079_v1, 4  ;;  %v2146_v47 = vrot.slane %v5922_v24, 4 }
 0x21f   :  { %8096 = vst [vmem:[#allocation22_spill] sm:$0xff] %v5989_v13  ;;  %v5998_v48 = vperm.slane %v1677_v46, %v4211_v35  ;;  %v2010_v57 = vrot.slane %v1981_v50, 4  ;;  %v2452_v42 = vperm.slane %v2276_v38, %v5812_v27  ;;  %v2013_v11 = vsel %vm394_vm0, %v1981_v50, %v2012_v41 }
 0x220   :  { %2413 = vperm.xlu2 %3674, %v5979_v63   ;;  %2425 = vperm.xlu0 %3675, %v5983_v25   ;;  %v2125_v26 = vsel %vm394_vm0, %v5956_v7, %v2124_v20  ;;  %v2112_v61 = vrot.slane %v8083_v22, 4  ;;  %v2101_v1 = vsel %vm394_vm0, %v8071_v30, %v2100_v18  ;;  %v6007_v24 = vpop.permute.xlu2 %2314  ;;  %v6013_v46 = vpop.permute.xlu0 %2299  ;;  %v6016_v38 = vperm.slane %v2035_v8, %v4211_v35 }
 0x221   :  { %8098 = vst [vmem:[#allocation17_spill] sm:$0xff] %v5998_v48  ;;  %v6011_v14 = vsel %vm394_vm0, %v1726_v59, %v5998_v48  ;;  %v2122_v50 = vrot.slane %v5956_v7, 4  ;;  %v2453_v20 = vperm.slane %v5740_v40, %v5812_v27  ;;  %v2062_v30 = vrot.slane %v5986_v39, 4 }
 0x222   :  { %v2174_v18 = vrot.slane %v5989_v13, 4  ;;  %v2048_v22 = vrot.slane %v5834_v5, 4  ;;  %v2113_v41 = vsel %vm394_vm0, %v5664_v29, %v2112_v61  ;;  %v6028_v59 = vperm.slane %v2125_v26, %v4211_v35 }
 0x223   :  { %2410 = vperm.xlu1 %3673, %v6011_v14   ;;  %v2147_v7 = vsel %vm394_vm0, %v2146_v47, %v5873_v55  ;;  %v2109_v8 = vperm.slane %v2101_v1, %v4135_v60  ;;  %v2522_v40 = vsel %vm2508_vm1, %v2453_v20, %v2452_v42  ;;  %v2285_v52 = vpop.permute.xlu1 %2284  ;;  %v6035_v48 = vperm.slane %v2013_v11, %v4211_v35 }
 0x224   :  { %v2011_v5 = vsel %vm394_vm0, %v2010_v57, %v8095_v56  ;;  %v2049_v29 = vsel %vm394_vm0, %v5808_v16, %v2048_v22  ;;  %v2454_v26 = vperm.slane %v5884_v28, %v5812_v27  ;;  %v2455_v61 = vperm.slane %v2285_v52, %v5812_v27  ;;  %v8099_v57 = vld [vmem:[#allocation20_spill] sm:$0xff] }
 0x225   :  { %v2058_v55 = vrot.slane %v6016_v38, 4  ;;  %v2121_v47 = vperm.slane %v2113_v41, %v4135_v60  ;;  %v6048_v42 = vsel %vm394_vm0, %v2062_v30, %v6035_v48  ;;  %v6052_v11 = vsel %vm394_vm0, %v2174_v18, %v6028_v59 }
 0x226   :  { %v6055_v56 = vperm.slane %v2147_v7, %v4211_v35  ;;  %v2085_v16 = vperm.slane %v2077_v62, %v4135_v60  ;;  %v2523_v28 = vsel %vm2510_vm2, %v2454_v26, %v2522_v40  ;;  %v6062_v52 = vperm.slane %v2011_v5, %v4211_v35 }
 0x227   :  { %v2089_v1 = vsel %vm394_vm0, %v8099_v57, %v2088_v32  ;;  %v2160_v20 = vrot.slane %v2109_v8, 4  ;;  %v2524_v30 = vsel %vm2512_vm3, %v2455_v61, %v2523_v28  ;;  %v2456_v18 = vperm.slane %v5814_v44, %v5812_v27 }
 0x228   :  { %2422 = vperm.xlu2 %3674, %v6048_v42   ;;  %2434 = vperm.xlu0 %3675, %v6052_v11   ;;  %v6069_v22 = vpop.permute.xlu2 %2323  ;;  %v6073_v62 = vsel %vm394_vm0, %v2058_v55, %v6062_v52  ;;  %v6075_v41 = vpop.permute.xlu0 %2308  ;;  %v2123_v7 = vsel %vm394_vm0, %v2122_v50, %v8091_v53  ;;  %v6080_v40 = vperm.slane %v2049_v29, %v4211_v35  ;;  %v2024_v32 = vrot.slane %v8087_v21, 4 }
 0x229   :  { %v2158_v5 = vrot.slane %v2121_v47, 4  ;;  %v2161_v26 = vsel %vm394_vm0, %v2121_v47, %v2160_v20  ;;  %v2170_v44 = vrot.slane %v6055_v56, 4  ;;  %v2136_v61 = vrot.slane %v2085_v16, 4  ;;  %v8100_v20 = vld [vmem:[#allocation32_spill] sm:$0xff] }
 0x22a   :  { %v2525_v55 = vsel %vm2514_vm4, %v2456_v18, %v2524_v30  ;;  %v496_v28 = vrot.slane %v4356_v23, 4  ;;  %v2097_v57 = vperm.slane %v2089_v1, %v4135_v60  ;;  %v2457_v53 = vperm.slane %v5943_v49, %v5812_v27 }
 0x22b   :  { %2419 = vperm.xlu1 %3673, %v6073_v62   ;;  %v2294_v50 = vpop.permute.xlu1 %2293  ;;  %v6092_v21 = vperm.slane %v2123_v7, %v4211_v35  ;;  %v2025_v29 = vsel %vm394_vm0, %v5300_v19, %v2024_v32  ;;  %v2070_v23 = vrot.slane %v6080_v40, 4  ;;  %v6103_v60 = vperm.slane %v2161_v26, %v4211_v35 }
 0x22c   :  { %v2458_v47 = vperm.slane %v2294_v50, %v5812_v27  ;;  %v6099_v13 = vsel %vm394_vm0, %v8100_v20, %v496_v28  ;;  %v2459_v49 = vperm.slane %v5878_v34, %v5812_v27  ;;  %v2526_v1 = vsel %vm2516_vm5, %v2457_v53, %v2525_v55 }
 0x22d   :  { %v6110_v30 = vsel %vm394_vm0, %v2170_v44, %v6092_v21  ;;  %v2159_v19 = vsel %vm394_vm0, %v2158_v5, %v2109_v8  ;;  %v6117_v7 = vperm.slane %v2025_v29, %v4211_v35  ;;  %v2134_v32 = vrot.slane %v2097_v57, 4 }
 0x22e   :  { %v2527_v18 = vsel %vm2518_vm6, %v2458_v47, %v2526_v1  ;;  %v2137_v5 = vsel %vm394_vm0, %v2097_v57, %v2136_v61  ;;  %v6129_v55 = vperm.slane %v2159_v19, %v4211_v35  ;;  %v2182_v28 = vrot.slane %v6103_v60, 4  ;;  %v8101_v57 = vld [vmem:[#allocation103_spill] sm:$0xff] }
 0x22f   :  { %v2528_v34 = vsel %vm2520_vm7, %v2459_v49, %v2527_v18  ;;  %v6125_v44 = vsel %vm394_vm0, %v2070_v23, %v6117_v7  ;;  %v6134_v50 = vperm.slane %v2137_v5, %v4211_v35  ;;  %v612_v29 = vrot.slane %v4560_v3, 4 }
 0x230   :  { %2431 = vperm.xlu2 %3674, %v6110_v30   ;;  %2985 = vperm.xlu0 %3675, %v6099_v13   ;;  %2581 = vst.msk [vmem:[#allocation5 + $0x8] sm:$0xff] %vm2579_vm8, %v2528_v34  ;;  %v6121_v26 = vpop.permute.xlu2 %2332  ;;  %v2318_v8 = vpop.permute.xlu0 %2317  ;;  %v2135_v47 = vsel %vm394_vm0, %v2134_v32, %v2085_v16  ;;  %v2178_v23 = vrot.slane %v6129_v55, 4  ;;  %v2460_v1 = vperm.slane %v6013_v46, %v5812_v27 }
 0x231   :  { %v6142_v61 = vsel %vm394_vm0, %v2182_v28, %v6134_v50  ;;  %v6146_v49 = vsel %vm394_vm0, %v8101_v57, %v612_v29  ;;  %v6153_v3 = vperm.slane %v2135_v47, %v4211_v35  ;;  %v2462_v34 = vperm.slane %v5937_v12, %v5812_v27 }
 0x232   :  { %8102 = vst [vmem:[#allocation93_spill] sm:$0xff] %v6146_v49  ;;  %v944_v35 = vrot.slane %v4637_v51, 4  ;;  %v2463_v28 = vperm.slane %v6075_v41, %v5812_v27  ;;  %v2465_v51 = vperm.slane %v6007_v24, %v5812_v27 }
 0x233   :  { %2428 = vperm.xlu1 %3673, %v6125_v44   ;;  %v2303_v53 = vpop.permute.xlu1 %2302  ;;  %v6160_v18 = vsel %vm394_vm0, %v2178_v23, %v6153_v3  ;;  %v8104_v23 = vld [vmem:[#allocation95_spill] sm:$0xff] }
 0x234   :  { %v2461_v20 = vperm.slane %v2303_v53, %v5812_v27  ;;  %v6172_v29 = vsel %vm394_vm0, %v4817_v17, %v944_v35 }
 0x235   :  { %8103 = vst [vmem:[#allocation18_spill] sm:$0xff] %v6172_v29 }
 0x236   :  { %v2529_v16 = vsel %vm2508_vm1, %v2461_v20, %v2460_v1  ;;  %v7672_v20 = vmov 1   ;;  %v8105_v1 = vld [vmem:[#allocation23_spill] sm:$0xff] }
 0x237   :  { %v2530_v46 = vsel %vm2510_vm2, %v2462_v34, %v2529_v16  ;;  %v2466_v16 = vperm.slane %v2318_v8, %v5812_v27 }
 0x238   :  { %2440 = vperm.xlu2 %3674, %v6142_v61   ;;  %3000 = vperm.xlu0 %3675, %v6146_v49   ;;  %v6156_v19 = vpop.permute.xlu2 %2341  ;;  %v2327_v32 = vpop.permute.xlu0 %2326  ;;  %v2531_v47 = vsel %vm2512_vm3, %v2463_v28, %v2530_v46  ;;  %v1052_v46 = vrot.slane %v4426_v45, 4 }
 0x239   :  { %v2469_v45 = vperm.slane %v2327_v32, %v5812_v27 }
 0x23a   :  { %v6190_v24 = vsel %vm394_vm0, %v4897_v9, %v1052_v46  ;;  %v2468_v9 = vperm.slane %v6069_v22, %v5812_v27 }
 0x23b   :  { %2437 = vperm.xlu1 %3673, %v6160_v18   ;;  %v2312_v5 = vpop.permute.xlu1 %2311  ;;  %8106 = vst [vmem:[#allocation20_spill] sm:$0xff] %v6190_v24 }
 0x23c   :  { %v2464_v53 = vperm.slane %v2312_v5, %v5812_v27  ;;  %v2536_v46 = vsel %vm2508_vm1, %v2469_v45, %v2468_v9 }
 0x23e   :  { %v2532_v12 = vsel %vm2514_vm4, %v2464_v53, %v2531_v47  ;;  %v8107_v53 = vld [vmem:[#allocation49_spill] sm:$0xff] }
 0x23f   :  { %v2533_v17 = vsel %vm2516_vm5, %v2465_v51, %v2532_v12  ;;  %v8108_v12 = vld [vmem:[#allocation14_spill] sm:$0xff]  ;;  %v8109_v51 = vld [vmem:[#allocation79_spill] sm:$0xff] }
 0x240   :  { %3677 = vset.pattern.permute.xlu2 %v7672_v20  ;;  %3009 = vperm.xlu0 %3675, %v6172_v29   ;;  %v2351_v41 = vpop.permute.xlu2 %2350  ;;  %v2336_v57 = vpop.permute.xlu0 %2335  ;;  %v2534_v35 = vsel %vm2518_vm6, %v2466_v16, %v2533_v17  ;;  %v1064_v17 = vrot.slane %v8109_v51, 4  ;;  %v8110_v16 = vld [vmem:[#allocation115_spill] sm:$0xff] }
 0x241   :  { %2595 = vperm.xlu2 %3677, %v8104_v23  }
 0x243   :  { %3676 = vset.pattern.permute.xlu1 %v7672_v20  ;;  %v2321_v34 = vpop.permute.xlu1 %2320  ;;  %v8125_v20 = vld [vmem:[#allocation68_spill] sm:$0xff] }
 0x244   :  { %2592 = vperm.xlu1 %3676, %v8105_v1   ;;  %v2467_v5 = vperm.slane %v2321_v34, %v5812_v27  ;;  %v6204_v34 = vsel %vm394_vm0, %v8110_v16, %v1064_v17  ;;  %v8114_v17 = vld [vmem:[#allocation100_spill] sm:$0xff] }
 0x245   :  { %8111 = vst [vmem:[#allocation32_spill] sm:$0xff] %v6204_v34  ;;  %v1396_v45 = vrot.slane %v8114_v17, 4  ;;  %v8119_v17 = vld [vmem:[#allocation26_spill] sm:$0xff] }
 0x246   :  { %v2535_v28 = vsel %vm2520_vm7, %v2467_v5, %v2534_v35  ;;  %v8112_v5 = vld [vmem:[#allocation102_spill] sm:$0xff]  ;;  %v2471_v35 = vperm.slane %v6121_v26, %v5812_v27 }
 0x247   :  { %2582 = vst.msk [vmem:[#allocation5 + $0x10] sm:$0xff] %vm2579_vm8, %v2535_v28 }
 0x248   :  { %3018 = vperm.xlu0 %3675, %v6190_v24   ;;  %v2360_v8 = vpop.permute.xlu2 %2359  ;;  %v2345_v47 = vpop.permute.xlu0 %2344 }
 0x249   :  { %2601 = vperm.xlu2 %3677, %v8107_v53  }
 0x24b   :  { %v2330_v23 = vpop.permute.xlu1 %2329 }
 0x24c   :  { %2598 = vperm.xlu1 %3676, %v8108_v12   ;;  %v2470_v1 = vperm.slane %v2330_v23, %v5812_v27  ;;  %v8113_v12 = vld [vmem:[#allocation35_spill] sm:$0xff]  ;;  %v2472_v23 = vperm.slane %v2336_v57, %v5812_v27 }
 0x24e   :  { %v2537_v32 = vsel %vm2510_vm2, %v2470_v1, %v2536_v46  ;;  %v2474_v1 = vperm.slane %v6156_v19, %v5812_v27  ;;  %v8115_v46 = vld [vmem:[#allocation52_spill] sm:$0xff] }
 0x24f   :  { %v2538_v22 = vsel %vm2512_vm3, %v2471_v35, %v2537_v32  ;;  %v6222_v26 = vsel %vm394_vm0, %v8115_v46, %v1396_v45  ;;  %v2475_v32 = vperm.slane %v2345_v47, %v5812_v27  ;;  %v8117_v35 = vld [vmem:[#allocation104_spill] sm:$0xff]  ;;  %v1504_v45 = vrot.slane %v8119_v17, 4  ;;  %v8120_v47 = vld [vmem:[#allocation122_spill] sm:$0xff] }
 0x250   :  { %3027 = vperm.xlu0 %3675, %v6204_v34   ;;  %v2369_v28 = vpop.permute.xlu2 %2368  ;;  %v2354_v53 = vpop.permute.xlu0 %2353  ;;  %v2539_v16 = vsel %vm2514_vm4, %v2472_v23, %v2538_v22  ;;  %8116 = vst [vmem:[#allocation103_spill] sm:$0xff] %v6222_v26  ;;  %v8118_v22 = vld [vmem:[#allocation53_spill] sm:$0xff] }
 0x251   :  { %2610 = vperm.xlu2 %3677, %v8112_v5  }
 0x253   :  { %v2339_v51 = vpop.permute.xlu1 %2338 }
 0x254   :  { %2607 = vperm.xlu1 %3676, %v8113_v12   ;;  %v2473_v9 = vperm.slane %v2339_v51, %v5812_v27 }
 0x256   :  { %v2540_v5 = vsel %vm2516_vm5, %v2473_v9, %v2539_v16  ;;  %v6235_v9 = vsel %vm394_vm0, %v8120_v47, %v1504_v45  ;;  %v8122_v16 = vld [vmem:[#allocation109_spill] sm:$0xff]  ;;  %v2478_v45 = vperm.slane %v2354_v53, %v5812_v27 }
 0x257   :  { %v2541_v57 = vsel %vm2518_vm6, %v2474_v1, %v2540_v5  ;;  %8121 = vst [vmem:[#allocation95_spill] sm:$0xff] %v6235_v9  ;;  %v2477_v5 = vperm.slane %v2351_v41, %v5812_v27 }
 0x258   :  { %3036 = vperm.xlu0 %3675, %v6222_v26   ;;  %v2542_v12 = vsel %vm2520_vm7, %v2475_v32, %v2541_v57  ;;  %v2363_v19 = vpop.permute.xlu0 %2362  ;;  %v8123_v57 = vld [vmem:[#allocation116_spill] sm:$0xff] }
 0x259   :  { %2619 = vperm.xlu2 %3677, %v8117_v35   ;;  %v2378_v51 = vpop.permute.xlu2 %2377  ;;  %2583 = vst.msk [vmem:[#allocation5 + $0x18] sm:$0xff] %vm2579_vm8, %v2542_v12 }
 0x25b   :  { %v2348_v23 = vpop.permute.xlu1 %2347 }
 0x25c   :  { %2616 = vperm.xlu1 %3676, %v8118_v22   ;;  %v2476_v1 = vperm.slane %v2348_v23, %v5812_v27  ;;  %v8124_v22 = vld [vmem:[#allocation114_spill] sm:$0xff] }
 0x25d   :  { %v1836_v17 = vrot.slane %v8124_v22, 4 }
 0x25e   :  { %v2543_v35 = vsel %vm2508_vm1, %v2477_v5, %v2476_v1  ;;  %v2480_v1 = vperm.slane %v2360_v8, %v5812_v27 }
 0x25f   :  { %v6248_v23 = vsel %vm394_vm0, %v8125_v20, %v1836_v17  ;;  %v2481_v20 = vperm.slane %v2363_v19, %v5812_v27  ;;  %v8132_v19 = vld [vmem:[#allocation12_spill] sm:$0xff] }
 0x260   :  { %3045 = vperm.xlu0 %3675, %v6235_v9   ;;  %v2372_v32 = vpop.permute.xlu0 %2371  ;;  %8126 = vst [vmem:[#allocation23_spill] sm:$0xff] %v6248_v23  ;;  %v8129_v9 = vld [vmem:[#allocation119_spill] sm:$0xff] }
 0x261   :  { %2628 = vperm.xlu2 %3677, %v8122_v16   ;;  %v2387_v46 = vpop.permute.xlu2 %2386  ;;  %v2544_v16 = vsel %vm2510_vm2, %v2478_v45, %v2543_v35  ;;  %v1848_v35 = vrot.slane %v8129_v9, 4 }
 0x263   :  { %v2357_v12 = vpop.permute.xlu1 %2356 }
 0x264   :  { %2625 = vperm.xlu1 %3676, %v8123_v57   ;;  %v2479_v47 = vperm.slane %v2357_v12, %v5812_v27  ;;  %v8127_v57 = vld [vmem:[#allocation117_spill] sm:$0xff]  ;;  %v8128_v12 = vld [vmem:[#allocation27_spill] sm:$0xff] }
 0x266   :  { %v2545_v41 = vsel %vm2512_vm3, %v2479_v47, %v2544_v16  ;;  %v2483_v47 = vperm.slane %v2369_v28, %v5812_v27 }
 0x267   :  { %v2546_v53 = vsel %vm2514_vm4, %v2480_v1, %v2545_v41 }
 0x268   :  { %3054 = vperm.xlu0 %3675, %v6248_v23   ;;  %v2547_v16 = vsel %vm2516_vm5, %v2481_v20, %v2546_v53  ;;  %v1956_v53 = vrot.slane %v5385_v33, 4 }
 0x269   :  { %2637 = vperm.xlu2 %3677, %v8127_v57   ;;  %v2381_v22 = vpop.permute.xlu0 %2380  ;;  %v8130_v57 = vld [vmem:[#allocation86_spill] sm:$0xff] }
 0x26a   :  { %v6255_v5 = vpop.permute.xlu2 %2395  ;;  %v6266_v8 = vsel %vm394_vm0, %v8130_v57, %v1848_v35  ;;  %v2484_v35 = vperm.slane %v2372_v32, %v5812_v27  ;;  %v2486_v57 = vperm.slane %v2378_v51, %v5812_v27 }
 0x26b   :  { %8131 = vst [vmem:[#allocation49_spill] sm:$0xff] %v6266_v8 }
 0x26c   :  { %2634 = vperm.xlu1 %3676, %v8128_v12   ;;  %v2366_v17 = vpop.permute.xlu1 %2365  ;;  %v8133_v12 = vld [vmem:[#allocation123_spill] sm:$0xff] }
 0x26d   :  { %v2482_v45 = vperm.slane %v2366_v17, %v5812_v27  ;;  %v6278_v17 = vsel %vm394_vm0, %v5322_v6, %v1956_v53  ;;  %v720_v6 = vrot.slane %v5455_v36, 4 }
 0x26e   :  { %8134 = vst [vmem:[#allocation14_spill] sm:$0xff] %v6278_v17 }
 0x26f   :  { %v2548_v23 = vsel %vm2518_vm6, %v2482_v45, %v2547_v16 }
 0x270   :  { %3063 = vperm.xlu0 %3675, %v6266_v8   ;;  %v2549_v41 = vsel %vm2520_vm7, %v2483_v47, %v2548_v23  ;;  %v8135_v23 = vld [vmem:[#allocation38_spill] sm:$0xff] }
 0x271   :  { %2646 = vperm.xlu2 %3677, %v8132_v19   ;;  %2584 = vst.msk [vmem:[#allocation5 + $0x80] sm:$0xff] %vm2579_vm8, %v2549_v41  ;;  %v2390_v1 = vpop.permute.xlu0 %2389  ;;  %v8136_v41 = vld [vmem:[#allocation94_spill] sm:$0xff] }
 0x272   :  { %v2405_v9 = vpop.permute.xlu2 %2404 }
 0x274   :  { %2643 = vperm.xlu1 %3676, %v8133_v12   ;;  %v2375_v28 = vpop.permute.xlu1 %2374  ;;  %v2487_v12 = vperm.slane %v2381_v22, %v5812_v27 }
 0x275   :  { %v2485_v20 = vperm.slane %v2375_v28, %v5812_v27  ;;  %v6292_v28 = vsel %vm394_vm0, %v5404_v0, %v720_v6 }
 0x276   :  { %8137 = vst [vmem:[#allocation79_spill] sm:$0xff] %v6292_v28 }
 0x277   :  { %v2550_v45 = vsel %vm2508_vm1, %v2485_v20, %v2484_v35  ;;  %v8138_v20 = vld [vmem:[#allocation56_spill] sm:$0xff]  ;;  %v2489_v35 = vperm.slane %v2387_v46, %v5812_v27 }
 0x278   :  { %3072 = vperm.xlu0 %3675, %v6278_v17   ;;  %v2551_v33 = vsel %vm2510_vm2, %v2486_v57, %v2550_v45  ;;  %v8139_v45 = vld [vmem:[#allocation81_spill] sm:$0xff]  ;;  %v2490_v57 = vperm.slane %v2390_v1, %v5812_v27 }
 0x279   :  { %2655 = vperm.xlu2 %3677, %v8135_v23   ;;  %v2399_v16 = vpop.permute.xlu0 %2398  ;;  %v2552_v53 = vsel %vm2512_vm3, %v2487_v12, %v2551_v33  ;;  %v8141_v12 = vld [vmem:[#allocation135_spill] sm:$0xff] }
 0x27a   :  { %v2414_v47 = vpop.permute.xlu2 %2413 }
 0x27c   :  { %2652 = vperm.xlu1 %3676, %v8136_v41   ;;  %v8140_v41 = vld [vmem:[#allocation48_spill] sm:$0xff] }
 0x27d   :  { %v2384_v19 = vpop.permute.xlu1 %2383 }
 0x27e   :  { %v2488_v32 = vperm.slane %v2384_v19, %v5812_v27  ;;  %v828_v19 = vrot.slane %v8140_v41, 4 }
 0x280   :  { %3081 = vperm.xlu0 %3675, %v6292_v28   ;;  %v2553_v51 = vsel %vm2514_vm4, %v2488_v32, %v2552_v53  ;;  %v6307_v32 = vsel %vm394_vm0, %v8141_v12, %v828_v19  ;;  %v8143_v53 = vld [vmem:[#allocation8_spill] sm:$0xff]  ;;  %v8146_v19 = vld [vmem:[#allocation85_spill] sm:$0xff]  ;;  %v8148_v12 = vld [vmem:[#allocation62_spill] sm:$0xff] }
 0x281   :  { %2664 = vperm.xlu2 %3677, %v8138_v20   ;;  %v2554_v22 = vsel %vm2516_vm5, %v2489_v35, %v2553_v51  ;;  %8142 = vst [vmem:[#allocation115_spill] sm:$0xff] %v6307_v32  ;;  %v2493_v20 = vperm.slane %v2399_v16, %v5812_v27  ;;  %v8144_v35 = vld [vmem:[#allocation42_spill] sm:$0xff]  ;;  %v8194_v28 = vld [vmem:[#allocation25_spill] sm:$0xff] }
 0x282   :  { %v2423_v23 = vpop.permute.xlu2 %2422  ;;  %v2408_v36 = vpop.permute.xlu0 %2407  ;;  %v2555_v6 = vsel %vm2518_vm6, %v2490_v57, %v2554_v22  ;;  %v8145_v22 = vld [vmem:[#allocation73_spill] sm:$0xff] }
 0x283   :  { %v840_v57 = vrot.slane %v8145_v22, 4  ;;  %v8149_v22 = vld [vmem:[#allocation70_spill] sm:$0xff] }
 0x284   :  { %2661 = vperm.xlu1 %3676, %v8139_v45  }
 0x285   :  { %v2393_v0 = vpop.permute.xlu1 %2392 }
 0x286   :  { %v2491_v33 = vperm.slane %v2393_v0, %v5812_v27  ;;  %v2492_v0 = vperm.slane %v6255_v5, %v5812_v27 }
 0x288   :  { %v2556_v46 = vsel %vm2520_vm7, %v2491_v33, %v2555_v6  ;;  %3090 = vperm.xlu0 %3675, %v6307_v32   ;;  %v6321_v33 = vsel %vm394_vm0, %v8146_v19, %v840_v57  ;;  %v2557_v6 = vsel %vm2508_vm1, %v2493_v20, %v2492_v0  ;;  %v1172_v19 = vrot.slane %v5657_v4, 4 }
 0x289   :  { %2585 = vst.msk [vmem:[#allocation5 + $0x88] sm:$0xff] %vm2579_vm8, %v2556_v46  ;;  %2673 = vperm.xlu2 %3677, %v8143_v53   ;;  %v2495_v46 = vperm.slane %v2405_v9, %v5812_v27  ;;  %v2498_v0 = vperm.slane %v2414_v47, %v5812_v27 }
 0x28a   :  { %v2432_v1 = vpop.permute.xlu2 %2431  ;;  %v2417_v51 = vpop.permute.xlu0 %2416  ;;  %8147 = vst [vmem:[#allocation102_spill] sm:$0xff] %v6321_v33 }
 0x28c   :  { %2670 = vperm.xlu1 %3676, %v8144_v35  }
 0x28d   :  { %v2402_v45 = vpop.permute.xlu1 %2401 }
 0x28e   :  { %v2494_v41 = vperm.slane %v2402_v45, %v5812_v27  ;;  %v2496_v45 = vperm.slane %v2408_v36, %v5812_v27 }
 0x290   :  { %3099 = vperm.xlu0 %3675, %v6321_v33   ;;  %v2558_v16 = vsel %vm2510_vm2, %v2494_v41, %v2557_v6  ;;  %v8150_v6 = vld [vmem:[#allocation57_spill] sm:$0xff] }
 0x291   :  { %2682 = vperm.xlu2 %3677, %v8148_v12   ;;  %v2559_v5 = vsel %vm2512_vm3, %v2495_v46, %v2558_v16  ;;  %v6337_v9 = vsel %vm394_vm0, %v8150_v6, %v1172_v19  ;;  %v2499_v12 = vperm.slane %v2417_v51, %v5812_v27  ;;  %v8152_v46 = vld [vmem:[#allocation84_spill] sm:$0xff]  ;;  %v1280_v51 = vrot.slane %v5689_v2, 4 }
 0x292   :  { %v2441_v53 = vpop.permute.xlu2 %2440  ;;  %v2426_v35 = vpop.permute.xlu0 %2425  ;;  %v2560_v41 = vsel %vm2514_vm4, %v2496_v45, %v2559_v5  ;;  %8151 = vst [vmem:[#allocation35_spill] sm:$0xff] %v6337_v9  ;;  %v8153_v5 = vld [vmem:[#allocation58_spill] sm:$0xff]  ;;  %v2501_v6 = vperm.slane %v2423_v23, %v5812_v27 }
 0x294   :  { %2679 = vperm.xlu1 %3676, %v8149_v22  }
 0x295   :  { %v2411_v57 = vpop.permute.xlu1 %2410 }
 0x296   :  { %v2497_v20 = vperm.slane %v2411_v57, %v5812_v27  ;;  %v8154_v57 = vld [vmem:[#allocation43_spill] sm:$0xff] }
 0x297   :  { %v6352_v19 = vsel %vm394_vm0, %v8154_v57, %v1280_v51 }
 0x298   :  { %v2561_v16 = vsel %vm2516_vm5, %v2497_v20, %v2560_v41  ;;  %3108 = vperm.xlu0 %3675, %v6337_v9   ;;  %8155 = vst [vmem:[#allocation100_spill] sm:$0xff] %v6352_v19 }
 0x299   :  { %v2562_v36 = vsel %vm2518_vm6, %v2498_v0, %v2561_v16  ;;  %2691 = vperm.xlu2 %3677, %v8152_v46   ;;  %v8156_v0 = vld [vmem:[#allocation134_spill] sm:$0xff]  ;;  %v8157_v16 = vld [vmem:[#allocation83_spill] sm:$0xff]  ;;  %v1612_v46 = vrot.slane %v5382_v15, 4 }
 0x29a   :  { %v2563_v4 = vsel %vm2520_vm7, %v2499_v12, %v2562_v36  ;;  %v2435_v22 = vpop.permute.xlu0 %2434 }
 0x29b   :  { %2586 = vst.msk [vmem:[#allocation5 + $0x90] sm:$0xff] %vm2579_vm8, %v2563_v4  ;;  %v6346_v47 = vpop.permute.xlu2 %2595  ;;  %v2502_v4 = vperm.slane %v2426_v35, %v5812_v27 }
 0x29c   :  { %2688 = vperm.xlu1 %3676, %v8153_v5  }
 0x29d   :  { %v2420_v45 = vpop.permute.xlu1 %2419 }
 0x29e   :  { %v2500_v20 = vperm.slane %v2420_v45, %v5812_v27  ;;  %v8158_v45 = vld [vmem:[#allocation154_spill] sm:$0xff] }
 0x29f   :  { %v6369_v51 = vsel %vm394_vm0, %v8158_v45, %v1612_v46 }
 0x2a0   :  { %3117 = vperm.xlu0 %3675, %v6352_v19   ;;  %v2564_v2 = vsel %vm2508_vm1, %v2501_v6, %v2500_v20  ;;  %8159 = vst [vmem:[#allocation52_spill] sm:$0xff] %v6369_v51  ;;  %v2504_v20 = vperm.slane %v2432_v1, %v5812_v27  ;;  %v8186_v19 = vld [vmem:[#allocation101_spill] sm:$0xff] }
 0x2a1   :  { %2700 = vperm.xlu2 %3677, %v8156_v0   ;;  %v2565_v57 = vsel %vm2510_vm2, %v2502_v4, %v2564_v2  ;;  %v8160_v0 = vld [vmem:[#allocation64_spill] sm:$0xff]  ;;  %v1624_v2 = vrot.slane %v5266_v31, 4 }
 0x2a2   :  { %v6357_v41 = vpop.permute.xlu0 %2985 }
 0x2a3   :  { %v6360_v12 = vpop.permute.xlu2 %2601  ;;  %v6389_v1 = vsel %vm394_vm0, %v5838_v37, %v1624_v2  ;;  %v8167_v2 = vld [vmem:[#allocation61_spill] sm:$0xff] }
 0x2a4   :  { %2697 = vperm.xlu1 %3676, %v8157_v16   ;;  %v8161_v16 = vld [vmem:[#allocation144_spill] sm:$0xff]  ;;  %8162 = vst [vmem:[#allocation104_spill] sm:$0xff] %v6389_v1 }
 0x2a5   :  { %v2429_v36 = vpop.permute.xlu1 %2428 }
 0x2a6   :  { %v2503_v5 = vperm.slane %v2429_v36, %v5812_v27  ;;  %v2505_v36 = vperm.slane %v2435_v22, %v5812_v27  ;;  %v8163_v22 = vld [vmem:[#allocation145_spill] sm:$0xff] }
 0x2a8   :  { %3126 = vperm.xlu0 %3675, %v6369_v51   ;;  %v2566_v23 = vsel %vm2512_vm3, %v2503_v5, %v2565_v57  ;;  %v2507_v5 = vperm.slane %v2441_v53, %v5812_v27  ;;  %v8164_v53 = vld [vmem:[#allocation66_spill] sm:$0xff]  ;;  %v8185_v51 = vld [vmem:[#allocation39_spill] sm:$0xff] }
 0x2a9   :  { %2709 = vperm.xlu2 %3677, %v8160_v0   ;;  %v2567_v35 = vsel %vm2514_vm4, %v2504_v20, %v2566_v23  ;;  %v1732_v20 = vrot.slane %v5965_v43, 4 }
 0x2aa   :  { %v6376_v6 = vpop.permute.xlu0 %3000  ;;  %v2568_v45 = vsel %vm2516_vm5, %v2505_v36, %v2567_v35 }
 0x2ab   :  { %v6378_v15 = vpop.permute.xlu2 %2610  ;;  %v6406_v35 = vsel %vm394_vm0, %v5899_v54, %v1732_v20  ;;  %v8169_v54 = vld [vmem:[#allocation153_spill] sm:$0xff]  ;;  %v8171_v20 = vld [vmem:[#allocation60_spill] sm:$0xff] }
 0x2ac   :  { %2706 = vperm.xlu1 %3676, %v8161_v16   ;;  %8165 = vst [vmem:[#allocation53_spill] sm:$0xff] %v6406_v35  ;;  %v8166_v16 = vld [vmem:[#allocation147_spill] sm:$0xff] }
 0x2ad   :  { %v2438_v46 = vpop.permute.xlu1 %2437 }
 0x2ae   :  { %v2506_v4 = vperm.slane %v2438_v46, %v5812_v27 }
 0x2b0   :  { %v2569_v57 = vsel %vm2518_vm6, %v2506_v4, %v2568_v45  ;;  %3135 = vperm.xlu0 %3675, %v6389_v1   ;;  %v2064_v4 = vrot.slane %v6035_v48, 4  ;;  %v8184_v1 = vld [vmem:[#allocation75_spill] sm:$0xff] }
 0x2b1   :  { %v2570_v23 = vsel %vm2520_vm7, %v2507_v5, %v2569_v57  ;;  %2718 = vperm.xlu2 %3677, %v8163_v22  }
 0x2b2   :  { %2587 = vst.msk [vmem:[#allocation5 + $0x98] sm:$0xff] %vm2579_vm8, %v2570_v23  ;;  %v6396_v31 = vpop.permute.xlu0 %3009  ;;  %v6420_v43 = vsel %vm394_vm0, %v5986_v39, %v2064_v4  ;;  %v2172_v23 = vrot.slane %v6092_v21, 4 }
 0x2b3   :  { %v6398_v0 = vpop.permute.xlu2 %2619  ;;  %8168 = vst [vmem:[#allocation26_spill] sm:$0xff] %v6420_v43 }
 0x2b4   :  { %2715 = vperm.xlu1 %3676, %v8164_v53   ;;  %v6434_v48 = vsel %vm394_vm0, %v6055_v56, %v2172_v23  ;;  %v8173_v56 = vld [vmem:[#allocation158_spill] sm:$0xff] }
 0x2b5   :  { %8170 = vst [vmem:[#allocation122_spill] sm:$0xff] %v6434_v48 }
 0x2b6   :  { %v6402_v37 = vpop.permute.xlu1 %2592 }
 0x2b8   :  { %3144 = vperm.xlu0 %3675, %v6406_v35  }
 0x2b9   :  { %2727 = vperm.xlu2 %3677, %v8166_v16  }
 0x2ba   :  { %v6410_v36 = vpop.permute.xlu0 %3018 }
 0x2bb   :  { %v6412_v46 = vpop.permute.xlu2 %2628 }
 0x2bc   :  { %2724 = vperm.xlu1 %3676, %v8167_v2  }
 0x2be   :  { %v6416_v5 = vpop.permute.xlu1 %2598 }
 0x2c0   :  { %3153 = vperm.xlu0 %3675, %v6420_v43   ;;  %v8181_v43 = vld [vmem:[#allocation112_spill] sm:$0xff] }
 0x2c1   :  { %2736 = vperm.xlu2 %3677, %v8169_v54   ;;  %v8174_v54 = vmov 1  }
 0x2c2   :  { %v6424_v45 = vpop.permute.xlu0 %3027 }
 0x2c3   :  { %v6426_v57 = vpop.permute.xlu2 %2637 }
 0x2c4   :  { %2733 = vperm.xlu1 %3676, %v5854_v10   ;;  %v2184_v10 = vrot.slane %v6134_v50, 4  ;;  %v8175_v50 = vld [vmem:[#allocation36_spill] sm:$0xff] }
 0x2c6   :  { %v6430_v22 = vpop.permute.xlu1 %2607  ;;  %v6448_v21 = vsel %vm394_vm0, %v6103_v60, %v2184_v10  ;;  %v8177_v10 = vld [vmem:[#allocation107_spill] sm:$0xff] }
 0x2c7   :  { %8172 = vst [vmem:[#allocation109_spill] sm:$0xff] %v6448_v21 }
 0x2c8   :  { %3162 = vperm.xlu0 %3675, %v6434_v48   ;;  %v8180_v48 = vmov 0  }
 0x2c9   :  { %2745 = vperm.xlu2 %3677, %v5858_v58  }
 0x2ca   :  { %v6438_v39 = vpop.permute.xlu0 %3036 }
 0x2cb   :  { %v6440_v53 = vpop.permute.xlu2 %2646 }
 0x2cc   :  { %2742 = vperm.xlu1 %3676, %v8171_v20  }
 0x2ce   :  { %v6444_v16 = vpop.permute.xlu1 %2616 }
 0x2d0   :  { %3171 = vperm.xlu0 %3675, %v6448_v21  }
 0x2d1   :  { %2754 = vperm.xlu2 %3677, %v8173_v56  }
 0x2d2   :  { %v6452_v2 = vpop.permute.xlu0 %3045 }
 0x2d3   :  { %v6454_v58 = vpop.permute.xlu2 %2655 }
 0x2d4   :  { %2751 = vperm.xlu1 %3676, %v5979_v63  }
 0x2d6   :  { %v6457_v4 = vpop.permute.xlu1 %2625 }
 0x2d8   :  { %3680 = vset.pattern.permute.xlu0 %v8174_v54 }
 0x2d9   :  { %2763 = vperm.xlu2 %3677, %v5983_v25   ;;  %2589 = vperm.xlu0 %3680, %v8175_v50   ;;  %v8179_v50 = vld [vmem:[#allocation76_spill] sm:$0xff] }
 0x2da   :  { %v6462_v60 = vpop.permute.xlu0 %3054  ;;  %v492_v21 = vrot.slane %v8179_v50, 4  ;;  %v504_v50 = vrot.slane %v8184_v1, 4 }
 0x2db   :  { %8176 = vst [vmem:[#allocation116_spill] sm:$0xff] %v6462_v60  ;;  %v6464_v23 = vpop.permute.xlu2 %2664 }
 0x2dc   :  { %2760 = vperm.xlu1 %3676, %v6048_v42   ;;  %v8182_v42 = vld [vmem:[#allocation50_spill] sm:$0xff] }
 0x2dd   :  { %v6483_v35 = vsel %vm394_vm0, %v8182_v42, %v492_v21  ;;  %v8189_v42 = vld [vmem:[#allocation74_spill] sm:$0xff] }
 0x2de   :  { %v6467_v20 = vpop.permute.xlu1 %2634  ;;  %v500_v9 = vrot.slane %v8189_v42, 4 }
 0x2e1   :  { %2772 = vperm.xlu2 %3677, %v6052_v11   ;;  %2604 = vperm.xlu0 %3680, %v8177_v10  }
 0x2e2   :  { %v6471_v63 = vpop.permute.xlu0 %3063 }
 0x2e3   :  { %8178 = vst [vmem:[#allocation114_spill] sm:$0xff] %v6471_v63  ;;  %v6473_v56 = vpop.permute.xlu2 %2673 }
 0x2e4   :  { %2769 = vperm.xlu1 %3676, %v6110_v30  }
 0x2e6   :  { %v6476_v25 = vpop.permute.xlu1 %2643 }
 0x2e9   :  { %3678 = vset.pattern.permute.xlu2 %v8180_v48  ;;  %2613 = vperm.xlu0 %3680, %v8181_v43   ;;  %v6497_v43 = vsel %vm394_vm0, %v8186_v19, %v504_v50  ;;  %v8192_v19 = vld [vmem:[#allocation9_spill] sm:$0xff]  ;;  %v8193_v50 = vld [vmem:[#allocation28_spill] sm:$0xff] }
 0x2ea   :  { %2982 = vperm.xlu2 %3678, %v6483_v35   ;;  %v6486_v11 = vpop.permute.xlu0 %3072  ;;  %8187 = vst [vmem:[#allocation117_spill] sm:$0xff] %v6497_v43  ;;  %v608_v1 = vrot.slane %v8192_v19, 4 }
 0x2eb   :  { %8183 = vst [vmem:[#allocation68_spill] sm:$0xff] %v6486_v11  ;;  %v6488_v10 = vpop.permute.xlu2 %2682 }
 0x2ec   :  { %2778 = vperm.xlu1 %3676, %v6142_v61   ;;  %v8191_v61 = vld [vmem:[#allocation40_spill] sm:$0xff]  ;;  %v6517_v17 = vsel %vm394_vm0, %v8194_v28, %v608_v1  ;;  %v8202_v28 = vld [vmem:[#allocation126_spill] sm:$0xff] }
 0x2ed   :  { %v6508_v32 = vsel %vm394_vm0, %v8191_v61, %v500_v9  ;;  %8195 = vst [vmem:[#allocation86_spill] sm:$0xff] %v6517_v17  ;;  %v8199_v61 = vld [vmem:[#allocation96_spill] sm:$0xff] }
 0x2ee   :  { %v6491_v30 = vpop.permute.xlu1 %2652  ;;  %v8203_v1 = vld [vmem:[#allocation108_spill] sm:$0xff] }
 0x2f1   :  { %2622 = vperm.xlu0 %3680, %v8185_v51  }
 0x2f2   :  { %2991 = vperm.xlu2 %3678, %v6497_v43   ;;  %v6500_v21 = vpop.permute.xlu0 %3081  ;;  %v8235_v43 = vld [vmem:[#allocation77_spill] sm:$0xff] }
 0x2f3   :  { %8188 = vst [vmem:[#allocation27_spill] sm:$0xff] %v6500_v21  ;;  %v6503_v33 = vpop.permute.xlu2 %2691 }
 0x2f4   :  { %8190 = vst [vmem:[#allocation119_spill] sm:$0xff] %v6503_v33  ;;  %3679 = vset.pattern.permute.xlu1 %v8180_v48  ;;  %v8197_v48 = vld [vmem:[#allocation46_spill] sm:$0xff] }
 0x2f5   :  { %2988 = vperm.xlu1 %3679, %v6508_v32   ;;  %v604_v8 = vrot.slane %v8197_v48, 4 }
 0x2f6   :  { %v6511_v51 = vpop.permute.xlu1 %2661 }
 0x2f7   :  { %v6527_v26 = vsel %vm394_vm0, %v8199_v61, %v604_v8  ;;  %v8208_v61 = vld [vmem:[#allocation97_spill] sm:$0xff] }
 0x2f8   :  { %8200 = vst [vmem:[#allocation38_spill] sm:$0xff] %v6527_v26 }
 0x2f9   :  { %2631 = vperm.xlu0 %3680, %v8193_v50   ;;  %v8201_v50 = vld [vmem:[#allocation98_spill] sm:$0xff] }
 0x2fa   :  { %2997 = vperm.xlu2 %3678, %v6517_v17   ;;  %v6520_v42 = vpop.permute.xlu0 %3090  ;;  %v940_v34 = vrot.slane %v8201_v50, 4 }
 0x2fb   :  { %8196 = vst [vmem:[#allocation12_spill] sm:$0xff] %v6520_v42  ;;  %v6523_v9 = vpop.permute.xlu2 %2700  ;;  %v8206_v42 = vld [vmem:[#allocation21_spill] sm:$0xff] }
 0x2fc   :  { %8198 = vst [vmem:[#allocation123_spill] sm:$0xff] %v6523_v9  ;;  %v6536_v21 = vsel %vm394_vm0, %v8203_v1, %v940_v34  ;;  %v616_v24 = vrot.slane %v8206_v42, 4  ;;  %v8210_v34 = vld [vmem:[#allocation63_spill] sm:$0xff]  ;;  %v8211_v1 = vld [vmem:[#allocation113_spill] sm:$0xff] }
 0x2fd   :  { %2994 = vperm.xlu1 %3679, %v6527_v26   ;;  %8204 = vst [vmem:[#allocation94_spill] sm:$0xff] %v6536_v21 }
 0x2fe   :  { %v6530_v19 = vpop.permute.xlu1 %2670  ;;  %v6546_v11 = vsel %vm394_vm0, %v8208_v61, %v616_v24  ;;  %v8216_v61 = vld [vmem:[#allocation11_spill] sm:$0xff] }
 0x301   :  { %2640 = vperm.xlu0 %3680, %v8202_v28   ;;  %v8209_v28 = vld [vmem:[#allocation10_spill] sm:$0xff] }
 0x302   :  { %3006 = vperm.xlu2 %3678, %v6536_v21   ;;  %v6539_v48 = vpop.permute.xlu0 %3099  ;;  %v952_v29 = vrot.slane %v8209_v28, 4 }
 0x303   :  { %8205 = vst [vmem:[#allocation56_spill] sm:$0xff] %v6539_v48  ;;  %v6542_v8 = vpop.permute.xlu2 %2709  ;;  %v8214_v48 = vld [vmem:[#allocation33_spill] sm:$0xff] }
 0x304   :  { %8207 = vst [vmem:[#allocation81_spill] sm:$0xff] %v6542_v8  ;;  %v6555_v21 = vsel %vm394_vm0, %v8211_v1, %v952_v29  ;;  %v948_v8 = vrot.slane %v8214_v48, 4  ;;  %v8218_v29 = vld [vmem:[#allocation72_spill] sm:$0xff]  ;;  %v8219_v1 = vld [vmem:[#allocation121_spill] sm:$0xff] }
 0x305   :  { %3003 = vperm.xlu1 %3679, %v6546_v11   ;;  %8212 = vst [vmem:[#allocation48_spill] sm:$0xff] %v6555_v21 }
 0x306   :  { %v6549_v50 = vpop.permute.xlu1 %2679  ;;  %v6565_v63 = vsel %vm394_vm0, %v8216_v61, %v948_v8  ;;  %v8224_v61 = vld [vmem:[#allocation105_spill] sm:$0xff] }
 0x309   :  { %2649 = vperm.xlu0 %3680, %v8210_v34   ;;  %v8217_v34 = vld [vmem:[#allocation80_spill] sm:$0xff] }
 0x30a   :  { %3015 = vperm.xlu2 %3678, %v6555_v21   ;;  %v6558_v42 = vpop.permute.xlu0 %3108  ;;  %v1060_v17 = vrot.slane %v8217_v34, 4 }
 0x30b   :  { %8213 = vst [vmem:[#allocation135_spill] sm:$0xff] %v6558_v42  ;;  %v6561_v24 = vpop.permute.xlu2 %2718  ;;  %v8222_v42 = vld [vmem:[#allocation78_spill] sm:$0xff] }
 0x30c   :  { %8215 = vst [vmem:[#allocation8_spill] sm:$0xff] %v6561_v24  ;;  %v6574_v21 = vsel %vm394_vm0, %v8219_v1, %v1060_v17  ;;  %v1056_v24 = vrot.slane %v8222_v42, 4  ;;  %v8227_v17 = vld [vmem:[#allocation30_spill] sm:$0xff]  ;;  %v8228_v1 = vld [vmem:[#allocation15_spill] sm:$0xff] }
 0x30d   :  { %3012 = vperm.xlu1 %3679, %v6565_v63   ;;  %8220 = vst [vmem:[#allocation42_spill] sm:$0xff] %v6574_v21 }
 0x30e   :  { %v6568_v28 = vpop.permute.xlu1 %2688  ;;  %v6584_v49 = vsel %vm394_vm0, %v8224_v61, %v1056_v24  ;;  %v8232_v61 = vld [vmem:[#allocation110_spill] sm:$0xff] }
 0x311   :  { %2658 = vperm.xlu0 %3680, %v8218_v29   ;;  %v8226_v29 = vld [vmem:[#allocation106_spill] sm:$0xff] }
 0x312   :  { %3024 = vperm.xlu2 %3678, %v6574_v21   ;;  %v6577_v48 = vpop.permute.xlu0 %3117  ;;  %v1392_v9 = vrot.slane %v8226_v29, 4 }
 0x313   :  { %8221 = vst [vmem:[#allocation73_spill] sm:$0xff] %v6577_v48  ;;  %v6580_v8 = vpop.permute.xlu2 %2727  ;;  %v8231_v48 = vld [vmem:[#allocation45_spill] sm:$0xff] }
 0x314   :  { %8223 = vst [vmem:[#allocation85_spill] sm:$0xff] %v6580_v8  ;;  %v6593_v21 = vsel %vm394_vm0, %v8228_v1, %v1392_v9  ;;  %v1388_v8 = vrot.slane %v8231_v48, 4  ;;  %v8236_v9 = vld [vmem:[#allocation127_spill] sm:$0xff] }
 0x315   :  { %3021 = vperm.xlu1 %3679, %v6584_v49   ;;  %8229 = vst [vmem:[#allocation70_spill] sm:$0xff] %v6593_v21 }
 0x316   :  { %v6587_v34 = vpop.permute.xlu1 %2697  ;;  %v6601_v60 = vsel %vm394_vm0, %v8232_v61, %v1388_v8  ;;  %v8241_v61 = vld [vmem:[#allocation118_spill] sm:$0xff] }
 0x317   :  { %8225 = vst [vmem:[#allocation62_spill] sm:$0xff] %v6587_v34 }
 0x319   :  { %2667 = vperm.xlu0 %3680, %v8227_v17   ;;  %v8234_v17 = vld [vmem:[#allocation125_spill] sm:$0xff] }
 0x31a   :  { %3033 = vperm.xlu2 %3678, %v6593_v21   ;;  %v6596_v42 = vpop.permute.xlu0 %3126  ;;  %v1500_v34 = vrot.slane %v8234_v17, 4 }
 0x31b   :  { %8230 = vst [vmem:[#allocation57_spill] sm:$0xff] %v6596_v42  ;;  %v2737_v24 = vpop.permute.xlu2 %2736  ;;  %v8239_v42 = vld [vmem:[#allocation99_spill] sm:$0xff] }
 0x31c   :  { %v6610_v1 = vsel %vm394_vm0, %v8236_v9, %v1500_v34  ;;  %v1400_v21 = vrot.slane %v8239_v42, 4  ;;  %v8245_v34 = vld [vmem:[#allocation65_spill] sm:$0xff]  ;;  %v8246_v9 = vld [vmem:[#allocation131_spill] sm:$0xff] }
 0x31d   :  { %3030 = vperm.xlu1 %3679, %v6601_v60   ;;  %8237 = vst [vmem:[#allocation58_spill] sm:$0xff] %v6610_v1 }
 0x31e   :  { %v6604_v29 = vpop.permute.xlu1 %2706  ;;  %v6620_v33 = vsel %vm394_vm0, %v8241_v61, %v1400_v21  ;;  %v8251_v61 = vld [vmem:[#allocation69_spill] sm:$0xff] }
 0x31f   :  { %8233 = vst [vmem:[#allocation84_spill] sm:$0xff] %v6604_v29 }
 0x320   :  { %8242 = vst [vmem:[#allocation83_spill] sm:$0xff] %v6620_v33 }
 0x321   :  { %2676 = vperm.xlu0 %3680, %v8235_v43   ;;  %v8244_v43 = vld [vmem:[#allocation129_spill] sm:$0xff] }
 0x322   :  { %3042 = vperm.xlu2 %3678, %v6610_v1   ;;  %v6613_v48 = vpop.permute.xlu0 %3135  ;;  %v1512_v29 = vrot.slane %v8244_v43, 4 }
 0x323   :  { %8238 = vst [vmem:[#allocation43_spill] sm:$0xff] %v6613_v48  ;;  %v6616_v8 = vpop.permute.xlu2 %2745  ;;  %v8249_v48 = vld [vmem:[#allocation24_spill] sm:$0xff] }
 0x324   :  { %8240 = vst [vmem:[#allocation134_spill] sm:$0xff] %v6616_v8  ;;  %v6629_v1 = vsel %vm394_vm0, %v8246_v9, %v1512_v29  ;;  %v1508_v8 = vrot.slane %v8249_v48, 4  ;;  %v8255_v29 = vld [vmem:[#allocation82_spill] sm:$0xff]  ;;  %v8256_v9 = vld [vmem:[#allocation29_spill] sm:$0xff] }
 0x325   :  { %3039 = vperm.xlu1 %3679, %v6620_v33   ;;  %8247 = vst [vmem:[#allocation64_spill] sm:$0xff] %v6629_v1 }
 0x326   :  { %v6623_v17 = vpop.permute.xlu1 %2715  ;;  %v6639_v33 = vsel %vm394_vm0, %v8251_v61, %v1508_v8  ;;  %v8261_v61 = vld [vmem:[#allocation124_spill] sm:$0xff] }
 0x327   :  { %8243 = vst [vmem:[#allocation154_spill] sm:$0xff] %v6623_v17 }
 0x328   :  { %8252 = vst [vmem:[#allocation66_spill] sm:$0xff] %v6639_v33 }
 0x329   :  { %2685 = vperm.xlu0 %3680, %v8245_v34   ;;  %v8254_v34 = vld [vmem:[#allocation120_spill] sm:$0xff] }
 0x32a   :  { %3051 = vperm.xlu2 %3678, %v6629_v1   ;;  %v6632_v42 = vpop.permute.xlu0 %3144  ;;  %v1844_v17 = vrot.slane %v8254_v34, 4 }
 0x32b   :  { %8248 = vst [vmem:[#allocation144_spill] sm:$0xff] %v6632_v42  ;;  %v6635_v21 = vpop.permute.xlu2 %2754  ;;  %v8259_v42 = vld [vmem:[#allocation111_spill] sm:$0xff] }
 0x32c   :  { %8250 = vst [vmem:[#allocation145_spill] sm:$0xff] %v6635_v21  ;;  %v6648_v1 = vsel %vm394_vm0, %v8256_v9, %v1844_v17  ;;  %v1840_v21 = vrot.slane %v8259_v42, 4  ;;  %v8263_v9 = vld [vmem:[#allocation132_spill] sm:$0xff]  ;;  %v8266_v42 = vld [vmem:[#allocation55_spill] sm:$0xff] }
 0x32d   :  { %3048 = vperm.xlu1 %3679, %v6639_v33   ;;  %8257 = vst [vmem:[#allocation61_spill] sm:$0xff] %v6648_v1 }
 0x32e   :  { %v6642_v43 = vpop.permute.xlu1 %2724  ;;  %v6658_v33 = vsel %vm394_vm0, %v8261_v61, %v1840_v21  ;;  %v8269_v61 = vld [vmem:[#allocation31_spill] sm:$0xff] }
 0x32f   :  { %8253 = vst [vmem:[#allocation147_spill] sm:$0xff] %v6642_v43  ;;  %v1952_v43 = vrot.slane %v8263_v9, 4 }
 0x330   :  { %8262 = vst [vmem:[#allocation158_spill] sm:$0xff] %v6658_v33 }
 0x331   :  { %2694 = vperm.xlu0 %3680, %v8255_v29   ;;  %v2829_v29 = vperm.slane %v2737_v24, %v5812_v27 }
 0x332   :  { %3060 = vperm.xlu2 %3678, %v6648_v1   ;;  %v6651_v48 = vpop.permute.xlu0 %3153 }
 0x333   :  { %8258 = vst [vmem:[#allocation153_spill] sm:$0xff] %v6651_v48  ;;  %v6654_v8 = vpop.permute.xlu2 %2763  ;;  %v8265_v48 = vld [vmem:[#allocation19_spill] sm:$0xff] }
 0x334   :  { %8260 = vst [vmem:[#allocation60_spill] sm:$0xff] %v6654_v8  ;;  %v6670_v8 = vsel %vm394_vm0, %v8266_v42, %v1952_v43  ;;  %v8275_v43 = vld [vmem:[#allocation151_spill] sm:$0xff]  ;;  %v8276_v42 = vld [vmem:[#allocation133_spill] sm:$0xff] }
 0x335   :  { %3057 = vperm.xlu1 %3679, %v6658_v33   ;;  %8267 = vst [vmem:[#allocation107_spill] sm:$0xff] %v6670_v8  ;;  %v1948_v33 = vrot.slane %v8269_v61, 4 }
 0x336   :  { %v2734_v34 = vpop.permute.xlu1 %2733 }
 0x337   :  { %v2828_v17 = vperm.slane %v2734_v34, %v5812_v27  ;;  %v8271_v34 = vld [vmem:[#allocation128_spill] sm:$0xff] }
 0x338   :  { %v6680_v9 = vsel %vm394_vm0, %v8271_v34, %v1948_v33  ;;  %v8280_v33 = vld [vmem:[#allocation90_spill] sm:$0xff] }
 0x339   :  { %v6665_v1 = vsel %vm2508_vm1, %v2829_v29, %v2828_v17  ;;  %2703 = vperm.xlu0 %3680, %v8265_v48   ;;  %8272 = vst [vmem:[#allocation50_spill] sm:$0xff] %v6680_v9  ;;  %v8274_v48 = vld [vmem:[#allocation137_spill] sm:$0xff] }
 0x33a   :  { %8264 = vst [vmem:[#allocation36_spill] sm:$0xff] %v6665_v1  ;;  %3069 = vperm.xlu2 %3678, %v6670_v8   ;;  %v6673_v21 = vpop.permute.xlu0 %3162  ;;  %v716_v17 = vrot.slane %v8274_v48, 4 }
 0x33b   :  { %8268 = vst [vmem:[#allocation76_spill] sm:$0xff] %v6673_v21  ;;  %v6676_v24 = vpop.permute.xlu2 %2772  ;;  %v8279_v21 = vld [vmem:[#allocation13_spill] sm:$0xff] }
 0x33c   :  { %8270 = vst [vmem:[#allocation112_spill] sm:$0xff] %v6676_v24  ;;  %v6689_v8 = vsel %vm394_vm0, %v8276_v42, %v716_v17  ;;  %v1960_v24 = vrot.slane %v8279_v21, 4  ;;  %v8284_v17 = vld [vmem:[#allocation59_spill] sm:$0xff]  ;;  %v8285_v42 = vld [vmem:[#allocation34_spill] sm:$0xff] }
 0x33d   :  { %3066 = vperm.xlu1 %3679, %v6680_v9   ;;  %8277 = vst [vmem:[#allocation39_spill] sm:$0xff] %v6689_v8  ;;  %v8287_v21 = vld [vmem:[#allocation51_spill] sm:$0xff]  ;;  %v8288_v9 = vld [vmem:[#allocation16_spill] sm:$0xff] }
 0x33e   :  { %v6683_v29 = vpop.permute.xlu1 %2742  ;;  %v6697_v34 = vsel %vm394_vm0, %v8280_v33, %v1960_v24  ;;  %v2781_v33 = vperm.slane %v6402_v37, %v5812_v27  ;;  %v8290_v37 = vld [vmem:[#allocation130_spill] sm:$0xff] }
 0x33f   :  { %8273 = vst [vmem:[#allocation75_spill] sm:$0xff] %v6683_v29 }
 0x340   :  { %8281 = vst [vmem:[#allocation74_spill] sm:$0xff] %v6697_v34 }
 0x341   :  { %2712 = vperm.xlu0 %3680, %v8275_v43   ;;  %v8283_v43 = vld [vmem:[#allocation141_spill] sm:$0xff] }
 0x342   :  { %3078 = vperm.xlu2 %3678, %v6689_v8   ;;  %v6692_v61 = vpop.permute.xlu0 %3171  ;;  %v728_v29 = vrot.slane %v8283_v43, 4 }
 0x343   :  { %8278 = vst [vmem:[#allocation101_spill] sm:$0xff] %v6692_v61  ;;  %v724_v61 = vrot.slane %v8287_v21, 4 }
 0x344   :  { %v6699_v1 = vpop.permute.xlu2 %2982  ;;  %v6708_v8 = vsel %vm394_vm0, %v8285_v42, %v728_v29  ;;  %v2782_v29 = vperm.slane %v6346_v47, %v5812_v27 }
 0x345   :  { %3075 = vperm.xlu1 %3679, %v6697_v34   ;;  %8286 = vst [vmem:[#allocation9_spill] sm:$0xff] %v6708_v8 }
 0x346   :  { %v6702_v48 = vpop.permute.xlu1 %2751 }
 0x347   :  { %8282 = vst [vmem:[#allocation40_spill] sm:$0xff] %v6702_v48  ;;  %v6717_v48 = vsel %vm394_vm0, %v8288_v9, %v724_v61  ;;  %v8291_v9 = vld [vmem:[#allocation156_spill] sm:$0xff]  ;;  %v8292_v61 = vld [vmem:[#allocation142_spill] sm:$0xff] }
 0x349   :  { %2721 = vperm.xlu0 %3680, %v8284_v17  }
 0x34a   :  { %3087 = vperm.xlu2 %3678, %v6708_v8   ;;  %v836_v8 = vrot.slane %v8290_v37, 4 }
 0x34b   :  { %v2590_v24 = vpop.permute.xlu0 %2589 }
 0x34c   :  { %v2780_v34 = vperm.slane %v2590_v24, %v5812_v27  ;;  %v6719_v43 = vpop.permute.xlu2 %2991  ;;  %v2783_v24 = vperm.slane %v6416_v5, %v5812_v27  ;;  %v6734_v26 = vsel %vm394_vm0, %v8292_v61, %v836_v8  ;;  %v2786_v8 = vperm.slane %v6430_v22, %v5812_v27  ;;  %v8297_v22 = vld [vmem:[#allocation89_spill] sm:$0xff] }
 0x34d   :  { %3084 = vperm.xlu1 %3679, %v6717_v48   ;;  %8293 = vst [vmem:[#allocation25_spill] sm:$0xff] %v6734_v26 }
 0x34e   :  { %v2844_v17 = vsel %vm2508_vm1, %v2781_v33, %v2780_v34  ;;  %v6725_v42 = vpop.permute.xlu1 %2760  ;;  %v8294_v34 = vld [vmem:[#allocation87_spill] sm:$0xff] }
 0x34f   :  { %8289 = vst [vmem:[#allocation28_spill] sm:$0xff] %v6725_v42  ;;  %v2845_v21 = vsel %vm2510_vm2, %v2782_v29, %v2844_v17  ;;  %v832_v33 = vrot.slane %v8294_v34, 4  ;;  %v2784_v29 = vperm.slane %v6360_v12, %v5812_v27  ;;  %v8295_v42 = vld [vmem:[#allocation41_spill] sm:$0xff] }
 0x350   :  { %v2846_v47 = vsel %vm2512_vm3, %v2783_v24, %v2845_v21  ;;  %v2787_v21 = vperm.slane %v6378_v15, %v5812_v27  ;;  %v8300_v15 = vld [vmem:[#allocation139_spill] sm:$0xff] }
 0x351   :  { %2730 = vperm.xlu0 %3680, %v8291_v9   ;;  %v6744_v5 = vsel %vm394_vm0, %v8295_v42, %v832_v33  ;;  %v2847_v61 = vsel %vm2514_vm4, %v2784_v29, %v2846_v47  ;;  %v8296_v42 = vld [vmem:[#allocation91_spill] sm:$0xff]  ;;  %v8298_v47 = vld [vmem:[#allocation54_spill] sm:$0xff] }
 0x352   :  { %3096 = vperm.xlu2 %3678, %v6734_v26   ;;  %v1168_v33 = vrot.slane %v8296_v42, 4  ;;  %v8301_v26 = vld [vmem:[#allocation136_spill] sm:$0xff]  ;;  %v8303_v42 = vld [vmem:[#allocation149_spill] sm:$0xff] }
 0x353   :  { %v2605_v17 = vpop.permute.xlu0 %2604 }
 0x354   :  { %v2785_v37 = vperm.slane %v2605_v17, %v5812_v27  ;;  %v6746_v9 = vpop.permute.xlu2 %2997  ;;  %v6764_v29 = vsel %vm394_vm0, %v8298_v47, %v1168_v33  ;;  %v1276_v33 = vrot.slane %v8303_v42, 4 }
 0x355   :  { %3093 = vperm.xlu1 %3679, %v6744_v5   ;;  %8299 = vst [vmem:[#allocation46_spill] sm:$0xff] %v6764_v29 }
 0x356   :  { %v2848_v12 = vsel %vm2516_vm5, %v2785_v37, %v2847_v61  ;;  %v6755_v24 = vpop.permute.xlu1 %2769  ;;  %v1164_v37 = vrot.slane %v8300_v15, 4 }
 0x357   :  { %v2849_v34 = vsel %vm2518_vm6, %v2786_v8, %v2848_v12 }
 0x358   :  { %v2850_v17 = vsel %vm2520_vm7, %v2787_v21, %v2849_v34  ;;  %v6770_v8 = vsel %vm394_vm0, %v8301_v26, %v1164_v37  ;;  %v8306_v26 = vld [vmem:[#allocation44_spill] sm:$0xff] }
 0x359   :  { %2909 = vst.msk [vmem:[#allocation5 + $0x20] sm:$0xff] %vm2579_vm8, %v2850_v17  ;;  %2739 = vperm.xlu0 %3680, %v8297_v22   ;;  %v2789_v17 = vperm.slane %v6444_v16, %v5812_v27  ;;  %v8304_v22 = vld [vmem:[#allocation152_spill] sm:$0xff]  ;;  %v1176_v15 = vrot.slane %v8306_v26, 4 }
 0x35a   :  { %3105 = vperm.xlu2 %3678, %v6764_v29   ;;  %v6784_v47 = vsel %vm394_vm0, %v8304_v22, %v1276_v33 }
 0x35b   :  { %v2614_v61 = vpop.permute.xlu0 %2613  ;;  %8305 = vst [vmem:[#allocation98_spill] sm:$0xff] %v6784_v47 }
 0x35c   :  { %v6772_v12 = vpop.permute.xlu2 %3006  ;;  %v2788_v34 = vperm.slane %v2614_v61, %v5812_v27  ;;  %v2790_v61 = vperm.slane %v6398_v0, %v5812_v27  ;;  %v2792_v0 = vperm.slane %v6457_v4, %v5812_v27 }
 0x35d   :  { %3102 = vperm.xlu1 %3679, %v6770_v8  }
 0x35e   :  { %v6775_v21 = vpop.permute.xlu1 %2778  ;;  %v2851_v37 = vsel %vm2508_vm1, %v2789_v17, %v2788_v34  ;;  %v8308_v34 = vld [vmem:[#allocation143_spill] sm:$0xff] }
 0x35f   :  { %8302 = vst [vmem:[#allocation96_spill] sm:$0xff] %v6775_v21  ;;  %v8307_v21 = vld [vmem:[#allocation140_spill] sm:$0xff]  ;;  %v2852_v33 = vsel %vm2510_vm2, %v2790_v61, %v2851_v37  ;;  %v1288_v17 = vrot.slane %v8308_v34, 4  ;;  %v8311_v37 = vld [vmem:[#allocation37_spill] sm:$0xff] }
 0x360   :  { %v6794_v16 = vsel %vm394_vm0, %v8307_v21, %v1176_v15  ;;  %v3173_v15 = vperm.slane %v6699_v1, %v5812_v27  ;;  %v1284_v61 = vrot.slane %v8311_v37, 4 }
 0x361   :  { %2748 = vperm.xlu0 %3680, %v6011_v14  }
 0x362   :  { %3114 = vperm.xlu2 %3678, %v6784_v47  }
 0x363   :  { %v2623_v29 = vpop.permute.xlu0 %2622 }
 0x364   :  { %v2791_v42 = vperm.slane %v2623_v29, %v5812_v27  ;;  %v6796_v14 = vpop.permute.xlu2 %3015  ;;  %v8309_v29 = vld [vmem:[#allocation88_spill] sm:$0xff] }
 0x365   :  { %3111 = vperm.xlu1 %3679, %v6794_v16   ;;  %v6807_v21 = vsel %vm394_vm0, %v8309_v29, %v1288_v17  ;;  %v8312_v17 = vld [vmem:[#allocation146_spill] sm:$0xff] }
 0x366   :  { %v2853_v22 = vsel %vm2512_vm3, %v2791_v42, %v2852_v33  ;;  %8310 = vst [vmem:[#allocation126_spill] sm:$0xff] %v6807_v21  ;;  %v2793_v42 = vperm.slane %v6412_v46, %v5812_v27  ;;  %v6822_v1 = vsel %vm394_vm0, %v8312_v17, %v1284_v61  ;;  %v8313_v61 = vld [vmem:[#allocation138_spill] sm:$0xff] }
 0x367   :  { %v2989_v26 = vpop.permute.xlu1 %2988  ;;  %v2854_v47 = vsel %vm2514_vm4, %v2792_v0, %v2853_v22  ;;  %v2795_v0 = vperm.slane %v6467_v20, %v5812_v27  ;;  %v1620_v17 = vrot.slane %v8313_v61, 4 }
 0x368   :  { %v3175_v4 = vperm.slane %v2989_v26, %v5812_v27  ;;  %v2855_v29 = vsel %vm2516_vm5, %v2793_v42, %v2854_v47  ;;  %v8314_v47 = vld [vmem:[#allocation157_spill] sm:$0xff] }
 0x369   :  { %2757 = vperm.xlu0 %3680, %v6073_v62   ;;  %v3174_v62 = vperm.slane %v6357_v41, %v5812_v27 }
 0x36a   :  { %3123 = vperm.xlu2 %3678, %v6807_v21   ;;  %v3176_v21 = vperm.slane %v6719_v43, %v5812_v27  ;;  %v3178_v43 = vperm.slane %v6746_v9, %v5812_v27  ;;  %v8317_v9 = vld [vmem:[#allocation17_spill] sm:$0xff] }
 0x36b   :  { %v2632_v33 = vpop.permute.xlu0 %2631  ;;  %v3237_v46 = vsel %vm2508_vm1, %v3174_v62, %v3173_v15  ;;  %v6842_v15 = vsel %vm394_vm0, %v8314_v47, %v1620_v17  ;;  %v1728_v61 = vrot.slane %v8317_v9, 4  ;;  %v2798_v47 = vperm.slane %v6476_v25, %v5812_v27 }
 0x36c   :  { %v2794_v34 = vperm.slane %v2632_v33, %v5812_v27  ;;  %v6824_v22 = vpop.permute.xlu2 %3024  ;;  %v3238_v41 = vsel %vm2510_vm2, %v3175_v4, %v3237_v46  ;;  %v8315_v4 = vld [vmem:[#allocation71_spill] sm:$0xff]  ;;  %v8316_v46 = vld [vmem:[#allocation148_spill] sm:$0xff]  ;;  %v2799_v25 = vperm.slane %v6440_v53, %v5812_v27  ;;  %v2060_v53 = vrot.slane %v6062_v52, 4  ;;  %v8321_v52 = vld [vmem:[#allocation150_spill] sm:$0xff] }
 0x36d   :  { %3120 = vperm.xlu1 %3679, %v6822_v1   ;;  %v3239_v42 = vsel %vm2512_vm3, %v3176_v21, %v3238_v41  ;;  %v1616_v62 = vrot.slane %v8315_v4, 4  ;;  %v2796_v21 = vperm.slane %v6426_v57, %v5812_v27  ;;  %v8318_v57 = vld [vmem:[#allocation160_spill] sm:$0xff] }
 0x36e   :  { %v2856_v26 = vsel %vm2518_vm6, %v2794_v34, %v2855_v29  ;;  %v6872_v4 = vsel %vm394_vm0, %v8318_v57, %v1728_v61  ;;  %v3182_v61 = vperm.slane %v6396_v31, %v5812_v27  ;;  %v1736_v57 = vrot.slane %v8321_v52, 4 }
 0x36f   :  { %v2857_v37 = vsel %vm2520_vm7, %v2795_v0, %v2856_v26  ;;  %v2995_v33 = vpop.permute.xlu1 %2994  ;;  %v2802_v31 = vperm.slane %v6454_v58, %v5812_v27 }
 0x370   :  { %2910 = vst.msk [vmem:[#allocation5 + $0x28] sm:$0xff] %vm2579_vm8, %v2857_v37  ;;  %v3177_v20 = vperm.slane %v2995_v33, %v5812_v27  ;;  %v3179_v37 = vperm.slane %v6376_v6, %v5812_v27 }
 0x371   :  { %2766 = vperm.xlu0 %3680, %v6125_v44   ;;  %v6853_v44 = vsel %vm394_vm0, %v8316_v46, %v1616_v62  ;;  %v8319_v62 = vld [vmem:[#allocation67_spill] sm:$0xff] }
 0x372   :  { %3132 = vperm.xlu2 %3678, %v6842_v15   ;;  %v3240_v34 = vsel %vm2514_vm4, %v3177_v20, %v3239_v42 }
 0x373   :  { %v2641_v0 = vpop.permute.xlu0 %2640  ;;  %v3241_v41 = vsel %vm2516_vm5, %v3178_v43, %v3240_v34  ;;  %v1724_v34 = vrot.slane %v8319_v62, 4  ;;  %v8322_v62 = vld [vmem:[#allocation47_spill] sm:$0xff] }
 0x374   :  { %v2797_v29 = vperm.slane %v2641_v0, %v5812_v27  ;;  %v6855_v26 = vpop.permute.xlu2 %3033  ;;  %v3242_v42 = vsel %vm2518_vm6, %v3179_v37, %v3241_v41  ;;  %v3181_v41 = vperm.slane %v6772_v12, %v5812_v27  ;;  %v6902_v12 = vsel %vm394_vm0, %v6016_v38, %v2060_v53 }
 0x375   :  { %3129 = vperm.xlu1 %3679, %v6853_v44   ;;  %v2804_v53 = vperm.slane %v6511_v51, %v5812_v27 }
 0x376   :  { %v2858_v17 = vsel %vm2508_vm1, %v2797_v29, %v2796_v21  ;;  %v8320_v29 = vld [vmem:[#allocation155_spill] sm:$0xff] }
 0x377   :  { %v3004_v33 = vpop.permute.xlu1 %3003  ;;  %v2859_v0 = vsel %vm2510_vm2, %v2798_v47, %v2858_v17  ;;  %v6884_v46 = vsel %vm394_vm0, %v8320_v29, %v1724_v34  ;;  %v2801_v17 = vperm.slane %v6491_v30, %v5812_v27  ;;  %v3244_v47 = vsel %vm2508_vm1, %v3182_v61, %v3181_v41  ;;  %v8323_v61 = vld [vmem:[#allocation92_spill] sm:$0xff] }
 0x378   :  { %v3180_v20 = vperm.slane %v3004_v33, %v5812_v27  ;;  %v2860_v37 = vsel %vm2512_vm3, %v2799_v25, %v2859_v0  ;;  %v6916_v34 = vsel %vm394_vm0, %v8322_v62, %v1736_v57  ;;  %v2072_v29 = vrot.slane %v6117_v7, 4 }
 0x379   :  { %2775 = vperm.xlu0 %3680, %v6160_v18   ;;  %v2808_v62 = vperm.slane %v6473_v56, %v5812_v27  ;;  %v2811_v56 = vperm.slane %v6488_v10, %v5812_v27 }
 0x37a   :  { %v3243_v6 = vsel %vm2520_vm7, %v3180_v20, %v3242_v42  ;;  %3141 = vperm.xlu2 %3678, %v6872_v4  }
 0x37b   :  { %3302 = vst.msk [vmem:[#allocation5 + $0x40] sm:$0xff] %vm2579_vm8, %v3243_v6  ;;  %v2650_v43 = vpop.permute.xlu0 %2649 }
 0x37c   :  { %v2800_v18 = vperm.slane %v2650_v43, %v5812_v27  ;;  %v6886_v21 = vpop.permute.xlu2 %3042 }
 0x37d   :  { %3138 = vperm.xlu1 %3679, %v6884_v46  }
 0x37e   :  { %v2861_v33 = vsel %vm2514_vm4, %v2800_v18, %v2860_v37  ;;  %v3185_v18 = vperm.slane %v6410_v36, %v5812_v27  ;;  %v3187_v37 = vperm.slane %v6824_v22, %v5812_v27  ;;  %v3188_v36 = vperm.slane %v6424_v45, %v5812_v27  ;;  %v8324_v45 = vld [vmem:[#allocation159_spill] sm:$0xff] }
 0x37f   :  { %v3013_v9 = vpop.permute.xlu1 %3012  ;;  %v2862_v42 = vsel %vm2516_vm5, %v2801_v17, %v2861_v33  ;;  %v2068_v22 = vrot.slane %v8323_v61, 4 }
 0x380   :  { %v3183_v20 = vperm.slane %v3013_v9, %v5812_v27  ;;  %v2863_v43 = vsel %vm2518_vm6, %v2802_v31, %v2862_v42  ;;  %v6935_v9 = vsel %vm394_vm0, %v6080_v40, %v2072_v29 }
 0x381   :  { %3317 = vperm.xlu0 %3680, %v6508_v32   ;;  %v3184_v32 = vperm.slane %v6796_v14, %v5812_v27  ;;  %v6951_v42 = vsel %vm394_vm0, %v8324_v45, %v2068_v22  ;;  %v8327_v45 = vld [vmem:[#allocation119_spill] sm:$0xff] }
 0x382   :  { %3150 = vperm.xlu2 %3678, %v6902_v12   ;;  %v3245_v30 = vsel %vm2510_vm2, %v3183_v20, %v3244_v47 }
 0x383   :  { %v2659_v6 = vpop.permute.xlu0 %2658  ;;  %v3246_v58 = vsel %vm2512_vm3, %v3184_v32, %v3245_v30  ;;  %v2807_v30 = vperm.slane %v6530_v19, %v5812_v27 }
 0x384   :  { %v2803_v38 = vperm.slane %v2659_v6, %v5812_v27  ;;  %v6918_v0 = vpop.permute.xlu2 %3051  ;;  %v3247_v33 = vsel %vm2514_vm4, %v3185_v18, %v3246_v58  ;;  %v8325_v58 = vld [vmem:[#allocation22_spill] sm:$0xff] }
 0x385   :  { %3147 = vperm.xlu1 %3679, %v6916_v34  }
 0x386   :  { %v2864_v25 = vsel %vm2520_vm7, %v2803_v38, %v2863_v43  ;;  %v2176_v38 = vrot.slane %v6028_v59, 4  ;;  %v3190_v59 = vperm.slane %v6855_v26, %v5812_v27 }
 0x387   :  { %2911 = vst.msk [vmem:[#allocation5 + $0x30] sm:$0xff] %vm2579_vm8, %v2864_v25  ;;  %v3022_v14 = vpop.permute.xlu1 %3021  ;;  %v2810_v25 = vperm.slane %v6549_v50, %v5812_v27  ;;  %v3191_v50 = vperm.slane %v6438_v39, %v5812_v27  ;;  %v3193_v39 = vperm.slane %v6886_v21, %v5812_v27  ;;  %v3196_v21 = vperm.slane %v6918_v0, %v5812_v27 }
 0x388   :  { %v3186_v41 = vperm.slane %v3022_v14, %v5812_v27 }
 0x389   :  { %3332 = vperm.xlu0 %3680, %v6546_v11   ;;  %v2805_v11 = vperm.slane %v6464_v23, %v5812_v27  ;;  %v2180_v23 = vrot.slane %v6153_v3, 4 }
 0x38a   :  { %v3248_v7 = vsel %vm2516_vm5, %v3186_v41, %v3247_v33  ;;  %3159 = vperm.xlu2 %3678, %v6935_v9  }
 0x38b   :  { %v3249_v17 = vsel %vm2518_vm6, %v3187_v37, %v3248_v7  ;;  %v2668_v20 = vpop.permute.xlu0 %2667  ;;  %v2865_v52 = vsel %vm2508_vm1, %v2805_v11, %v2804_v53  ;;  %v6965_v6 = vsel %vm394_vm0, %v6129_v55, %v2180_v23 }
 0x38c   :  { %v3250_v40 = vsel %vm2520_vm7, %v3188_v36, %v3249_v17  ;;  %v2806_v47 = vperm.slane %v2668_v20, %v5812_v27  ;;  %v6953_v51 = vpop.permute.xlu2 %3060  ;;  %v2813_v20 = vperm.slane %v6568_v28, %v5812_v27 }
 0x38d   :  { %3303 = vst.msk [vmem:[#allocation5 + $0x48] sm:$0xff] %vm2579_vm8, %v3250_v40  ;;  %3156 = vperm.xlu1 %3679, %v6951_v42   ;;  %v8326_v40 = vld [vmem:[#allocation38_spill] sm:$0xff] }
 0x38e   :  { %v2866_v57 = vsel %vm2510_vm2, %v2806_v47, %v2865_v52  ;;  %v2814_v52 = vperm.slane %v8327_v45, %v5812_v27  ;;  %v8340_v45 = vld [vmem:[#allocation94_spill] sm:$0xff] }
 0x38f   :  { %v3031_v31 = vpop.permute.xlu1 %3030  ;;  %v2867_v32 = vsel %vm2512_vm3, %v2807_v30, %v2866_v57  ;;  %v8328_v57 = vld [vmem:[#allocation117_spill] sm:$0xff]  ;;  %v8329_v30 = vld [vmem:[#allocation62_spill] sm:$0xff] }
 0x390   :  { %v3189_v3 = vperm.slane %v3031_v31, %v5812_v27  ;;  %v2868_v18 = vsel %vm2514_vm4, %v2808_v62, %v2867_v32  ;;  %v2816_v32 = vperm.slane %v8329_v30, %v5812_v27  ;;  %v8330_v62 = vld [vmem:[#allocation83_spill] sm:$0xff] }
 0x391   :  { %3341 = vperm.xlu0 %3680, %v6565_v63   ;;  %v6976_v63 = vsel %vm394_vm0, %v8325_v58, %v2176_v38  ;;  %v8332_v58 = vld [vmem:[#allocation123_spill] sm:$0xff] }
 0x392   :  { %3168 = vperm.xlu2 %3678, %v6965_v6   ;;  %v3251_v29 = vsel %vm2508_vm1, %v3190_v59, %v3189_v3  ;;  %v8331_v3 = vld [vmem:[#allocation116_spill] sm:$0xff]  ;;  %v8333_v59 = vld [vmem:[#allocation93_spill] sm:$0xff] }
 0x393   :  { %v2677_v43 = vpop.permute.xlu0 %2676  ;;  %v3252_v10 = vsel %vm2510_vm2, %v3191_v50, %v3251_v29  ;;  %v3199_v50 = vperm.slane %v6953_v51, %v5812_v27 }
 0x394   :  { %v2809_v19 = vperm.slane %v2677_v43, %v5812_v27  ;;  %v6978_v55 = vpop.permute.xlu2 %3069  ;;  %v3197_v43 = vperm.slane %v8331_v3, %v5812_v27  ;;  %v8344_v3 = vld [vmem:[#allocation20_spill] sm:$0xff] }
 0x395   :  { %3165 = vperm.xlu1 %3679, %v6976_v63  }
 0x396   :  { %v2869_v14 = vsel %vm2516_vm5, %v2809_v19, %v2868_v18 }
 0x397   :  { %v2870_v41 = vsel %vm2518_vm6, %v2810_v25, %v2869_v14  ;;  %v3040_v37 = vpop.permute.xlu1 %3039  ;;  %v2817_v25 = vperm.slane %v8332_v58, %v5812_v27 }
 0x398   :  { %v2871_v33 = vsel %vm2520_vm7, %v2811_v56, %v2870_v41  ;;  %v3192_v26 = vperm.slane %v3040_v37, %v5812_v27  ;;  %v8334_v41 = vld [vmem:[#allocation84_spill] sm:$0xff] }
 0x399   :  { %2912 = vst.msk [vmem:[#allocation5 + $0x38] sm:$0xff] %vm2579_vm8, %v2871_v33  ;;  %3350 = vperm.xlu0 %3680, %v6584_v49   ;;  %v3194_v49 = vperm.slane %v6452_v2, %v5812_v27  ;;  %v2819_v37 = vperm.slane %v8334_v41, %v5812_v27 }
 0x39a   :  { %3682 = vset.pattern.permute.xlu2 %v8174_v54  ;;  %v3253_v36 = vsel %vm2512_vm3, %v3192_v26, %v3252_v10  ;;  %v8335_v10 = vld [vmem:[#allocation86_spill] sm:$0xff] }
 0x39b   :  { %3314 = vperm.xlu2 %3682, %v6099_v13   ;;  %v2686_v53 = vpop.permute.xlu0 %2685  ;;  %v3254_v61 = vsel %vm2514_vm4, %v3193_v39, %v3253_v36 }
 0x39c   :  { %v7003_v7 = vpop.permute.xlu2 %3078  ;;  %v2812_v22 = vperm.slane %v2686_v53, %v5812_v27 }
 0x39d   :  { %3681 = vset.pattern.permute.xlu1 %v8174_v54  ;;  %v3255_v54 = vsel %vm2516_vm5, %v3194_v49, %v3254_v61  ;;  %v8336_v61 = vld [vmem:[#allocation114_spill] sm:$0xff] }
 0x39e   :  { %3311 = vperm.xlu1 %3681, %v6483_v35   ;;  %v2872_v11 = vsel %vm2508_vm1, %v2813_v20, %v2812_v22  ;;  %v3200_v49 = vperm.slane %v8336_v61, %v5812_v27  ;;  %v8338_v20 = vld [vmem:[#allocation18_spill] sm:$0xff]  ;;  %v8350_v61 = vld [vmem:[#allocation85_spill] sm:$0xff] }
 0x39f   :  { %v3049_v17 = vpop.permute.xlu1 %3048 }
 0x3a0   :  { %v3195_v13 = vperm.slane %v3049_v17, %v5812_v27  ;;  %v8337_v17 = vld [vmem:[#allocation66_spill] sm:$0xff] }
 0x3a1   :  { %3359 = vperm.xlu0 %3680, %v6601_v60   ;;  %v2873_v60 = vsel %vm2510_vm2, %v2814_v52, %v2872_v11  ;;  %v8341_v52 = vld [vmem:[#allocation68_spill] sm:$0xff] }
 0x3a2   :  { %v3256_v35 = vsel %vm2518_vm6, %v3195_v13, %v3255_v54  ;;  %v3202_v54 = vperm.slane %v6978_v55, %v5812_v27  ;;  %v8342_v55 = vld [vmem:[#allocation154_spill] sm:$0xff] }
 0x3a3   :  { %v3257_v2 = vsel %vm2520_vm7, %v3196_v21, %v3256_v35  ;;  %3323 = vperm.xlu2 %3682, %v8326_v40   ;;  %v2695_v47 = vpop.permute.xlu0 %2694 }
 0x3a4   :  { %3304 = vst.msk [vmem:[#allocation5 + $0x50] sm:$0xff] %vm2579_vm8, %v3257_v2  ;;  %v2815_v28 = vperm.slane %v2695_v47, %v5812_v27  ;;  %v7026_v0 = vpop.permute.xlu2 %3087  ;;  %v8339_v2 = vld [vmem:[#allocation81_spill] sm:$0xff] }
 0x3a5   :  { %v2820_v40 = vperm.slane %v8339_v2, %v5812_v27 }
 0x3a6   :  { %3320 = vperm.xlu1 %3681, %v8328_v57   ;;  %v2874_v31 = vsel %vm2512_vm3, %v2815_v28, %v2873_v60  ;;  %v3203_v28 = vperm.slane %v8341_v52, %v5812_v27 }
 0x3a7   :  { %v3058_v23 = vpop.permute.xlu1 %3057  ;;  %v2875_v19 = vsel %vm2514_vm4, %v2816_v32, %v2874_v31  ;;  %v8343_v32 = vld [vmem:[#allocation158_spill] sm:$0xff] }
 0x3a8   :  { %v3198_v38 = vperm.slane %v3058_v23, %v5812_v27  ;;  %v2876_v33 = vsel %vm2516_vm5, %v2817_v25, %v2875_v19  ;;  %v2822_v23 = vperm.slane %v8342_v55, %v5812_v27  ;;  %v8345_v19 = vld [vmem:[#allocation8_spill] sm:$0xff] }
 0x3a9   :  { %3368 = vperm.xlu0 %3680, %v8330_v62   ;;  %v2823_v58 = vperm.slane %v8345_v19, %v5812_v27 }
 0x3aa   :  { %v3258_v56 = vsel %vm2508_vm1, %v3198_v38, %v3197_v43 }
 0x3ab   :  { %3329 = vperm.xlu2 %3682, %v8333_v59   ;;  %v2704_v18 = vpop.permute.xlu0 %2703  ;;  %v3259_v36 = vsel %vm2510_vm2, %v3199_v50, %v3258_v56  ;;  %v8347_v50 = vld [vmem:[#allocation27_spill] sm:$0xff] }
 0x3ac   :  { %v2818_v14 = vperm.slane %v2704_v18, %v5812_v27  ;;  %v7043_v29 = vpop.permute.xlu2 %3096  ;;  %v3260_v51 = vsel %vm2512_vm3, %v3200_v49, %v3259_v36  ;;  %v3205_v18 = vperm.slane %v7003_v7, %v5812_v27  ;;  %v2826_v49 = vperm.slane %v8350_v61, %v5812_v27 }
 0x3ae   :  { %v2877_v26 = vsel %vm2518_vm6, %v2818_v14, %v2876_v33  ;;  %3326 = vperm.xlu1 %3681, %v8335_v10   ;;  %v8346_v14 = vld [vmem:[#allocation48_spill] sm:$0xff]  ;;  %v3206_v33 = vperm.slane %v8347_v50, %v5812_v27 }
 0x3af   :  { %v2878_v53 = vsel %vm2520_vm7, %v2819_v37, %v2877_v26  ;;  %v3067_v39 = vpop.permute.xlu1 %3066  ;;  %v8348_v26 = vld [vmem:[#allocation147_spill] sm:$0xff] }
 0x3b0   :  { %2913 = vst.msk [vmem:[#allocation5 + $0xa0] sm:$0xff] %vm2579_vm8, %v2878_v53  ;;  %v3201_v22 = vperm.slane %v3067_v39, %v5812_v27  ;;  %v2825_v10 = vperm.slane %v8348_v26, %v5812_v27  ;;  %v8349_v53 = vld [vmem:[#allocation50_spill] sm:$0xff]  ;;  %v3265_v39 = vsel %vm2508_vm1, %v3206_v33, %v3205_v18  ;;  %v8359_v18 = vld [vmem:[#allocation36_spill] sm:$0xff]  ;;  %v8361_v26 = vld [vmem:[#allocation95_spill] sm:$0xff] }
 0x3b1   :  { %3377 = vperm.xlu0 %3680, %v8337_v17   ;;  %v8351_v17 = vld [vmem:[#allocation32_spill] sm:$0xff] }
 0x3b2   :  { %v3261_v13 = vsel %vm2514_vm4, %v3201_v22, %v3260_v51 }
 0x3b3   :  { %3338 = vperm.xlu2 %3682, %v8338_v20   ;;  %v2713_v21 = vpop.permute.xlu0 %2712  ;;  %v3262_v47 = vsel %vm2516_vm5, %v3202_v54, %v3261_v13  ;;  %v3208_v13 = vperm.slane %v7026_v0, %v5812_v27 }
 0x3b4   :  { %v2821_v35 = vperm.slane %v2713_v21, %v5812_v27  ;;  %v7065_v11 = vpop.permute.xlu2 %3105  ;;  %v3263_v30 = vsel %vm2518_vm6, %v3203_v28, %v3262_v47  ;;  %v8353_v47 = vld [vmem:[#allocation12_spill] sm:$0xff]  ;;  %v3211_v28 = vperm.slane %v7043_v29, %v5812_v27  ;;  %v8357_v29 = vld [vmem:[#allocation75_spill] sm:$0xff] }
 0x3b5   :  { %v2831_v19 = vperm.slane %v8357_v29, %v5812_v27 }
 0x3b6   :  { %3335 = vperm.xlu1 %3681, %v8340_v45   ;;  %v2879_v57 = vsel %vm2508_vm1, %v2821_v35, %v2820_v40  ;;  %v8352_v40 = vld [vmem:[#allocation42_spill] sm:$0xff]  ;;  %v3209_v45 = vperm.slane %v8353_v47, %v5812_v27 }
 0x3b7   :  { %v3076_v60 = vpop.permute.xlu1 %3075  ;;  %v2880_v62 = vsel %vm2510_vm2, %v2822_v23, %v2879_v57  ;;  %v8354_v57 = vld [vmem:[#allocation74_spill] sm:$0xff] }
 0x3b8   :  { %v3204_v31 = vperm.slane %v3076_v60, %v5812_v27  ;;  %v2881_v56 = vsel %vm2512_vm3, %v2823_v58, %v2880_v62  ;;  %v8358_v58 = vld [vmem:[#allocation134_spill] sm:$0xff] }
 0x3b9   :  { %3386 = vperm.xlu0 %3680, %v8343_v32   ;;  %v8356_v32 = vld [vmem:[#allocation103_spill] sm:$0xff] }
 0x3ba   :  { %v3264_v38 = vsel %vm2520_vm7, %v3204_v31, %v3263_v30  ;;  %v8355_v31 = vld [vmem:[#allocation56_spill] sm:$0xff] }
 0x3bb   :  { %3305 = vst.msk [vmem:[#allocation5 + $0x58] sm:$0xff] %vm2579_vm8, %v3264_v38  ;;  %3347 = vperm.xlu2 %3682, %v8344_v3   ;;  %v2722_v43 = vpop.permute.xlu0 %2721  ;;  %v3212_v55 = vperm.slane %v8355_v31, %v5812_v27  ;;  %v8368_v31 = vld [vmem:[#allocation28_spill] sm:$0xff] }
 0x3bc   :  { %v2824_v25 = vperm.slane %v2722_v43, %v5812_v27  ;;  %v7086_v59 = vpop.permute.xlu2 %3114 }
 0x3be   :  { %3344 = vperm.xlu1 %3681, %v8346_v14   ;;  %v2882_v41 = vsel %vm2514_vm4, %v2824_v25, %v2881_v56  ;;  %v2832_v25 = vperm.slane %v8358_v58, %v5812_v27  ;;  %v8360_v14 = vld [vmem:[#allocation70_spill] sm:$0xff] }
 0x3bf   :  { %v3085_v37 = vpop.permute.xlu1 %3084  ;;  %v2883_v7 = vsel %vm2516_vm5, %v2825_v10, %v2882_v41 }
 0x3c0   :  { %v3207_v36 = vperm.slane %v3085_v37, %v5812_v27  ;;  %v2884_v54 = vsel %vm2518_vm6, %v2826_v49, %v2883_v7  ;;  %v8362_v7 = vld [vmem:[#allocation40_spill] sm:$0xff]  ;;  %v8363_v49 = vld [vmem:[#allocation145_spill] sm:$0xff] }
 0x3c1   :  { %3395 = vperm.xlu0 %3680, %v8349_v53   ;;  %v2834_v61 = vperm.slane %v8362_v7, %v5812_v27 }
 0x3c2   :  { %v3266_v22 = vsel %vm2510_vm2, %v3207_v36, %v3265_v39  ;;  %v3214_v36 = vperm.slane %v7065_v11, %v5812_v27 }
 0x3c3   :  { %3356 = vperm.xlu2 %3682, %v8351_v17   ;;  %v2731_v51 = vpop.permute.xlu0 %2730  ;;  %v3267_v35 = vsel %vm2512_vm3, %v3208_v13, %v3266_v22  ;;  %v2835_v22 = vperm.slane %v8363_v49, %v5812_v27  ;;  %v8365_v13 = vld [vmem:[#allocation135_spill] sm:$0xff] }
 0x3c4   :  { %v2827_v20 = vperm.slane %v2731_v51, %v5812_v27  ;;  %v7108_v21 = vpop.permute.xlu2 %3123  ;;  %v3268_v60 = vsel %vm2514_vm4, %v3209_v45, %v3267_v35  ;;  %v8364_v51 = vld [vmem:[#allocation58_spill] sm:$0xff]  ;;  %v8366_v45 = vld [vmem:[#allocation73_spill] sm:$0xff] }
 0x3c5   :  { %v3220_v58 = vperm.slane %v7108_v21, %v5812_v27 }
 0x3c6   :  { %v2885_v2 = vsel %vm2520_vm7, %v2827_v20, %v2884_v54  ;;  %3353 = vperm.xlu1 %3681, %v8352_v40   ;;  %v3215_v20 = vperm.slane %v8365_v13, %v5812_v27  ;;  %v3217_v40 = vperm.slane %v7086_v59, %v5812_v27  ;;  %v8376_v13 = vld [vmem:[#allocation14_spill] sm:$0xff] }
 0x3c7   :  { %2914 = vst.msk [vmem:[#allocation5 + $0xa8] sm:$0xff] %vm2579_vm8, %v2885_v2  ;;  %v3094_v52 = vpop.permute.xlu1 %3093 }
 0x3c8   :  { %v3210_v0 = vperm.slane %v3094_v52, %v5812_v27  ;;  %v3218_v52 = vperm.slane %v8366_v45, %v5812_v27 }
 0x3c9   :  { %3404 = vperm.xlu0 %3680, %v8354_v57  }
 0x3ca   :  { %v3269_v23 = vsel %vm2516_vm5, %v3210_v0, %v3268_v60  ;;  %v8367_v60 = vld [vmem:[#allocation23_spill] sm:$0xff] }
 0x3cb   :  { %v3270_v30 = vsel %vm2518_vm6, %v3211_v28, %v3269_v23  ;;  %3365 = vperm.xlu2 %3682, %v8356_v32   ;;  %v2740_v38 = vpop.permute.xlu0 %2739 }
 0x3cc   :  { %v3271_v62 = vsel %vm2520_vm7, %v3212_v55, %v3270_v30  ;;  %v2830_v3 = vperm.slane %v2740_v38, %v5812_v27  ;;  %v7129_v43 = vpop.permute.xlu2 %3132  ;;  %v2837_v55 = vperm.slane %v8368_v31, %v5812_v27 }
 0x3cd   :  { %3306 = vst.msk [vmem:[#allocation5 + $0xc0] sm:$0xff] %vm2579_vm8, %v3271_v62  ;;  %v8370_v62 = vld [vmem:[#allocation64_spill] sm:$0xff] }
 0x3ce   :  { %v2887_v56 = vsel %vm2510_vm2, %v2830_v3, %v8359_v18  ;;  %3362 = vperm.xlu1 %3681, %v8360_v14  }
 0x3cf   :  { %v2888_v41 = vsel %vm2512_vm3, %v2831_v19, %v2887_v56  ;;  %v3103_v37 = vpop.permute.xlu1 %3102  ;;  %v8371_v56 = vld [vmem:[#allocation49_spill] sm:$0xff] }
 0x3d0   :  { %v2889_v50 = vsel %vm2514_vm4, %v2832_v25, %v2888_v41  ;;  %v3213_v33 = vperm.slane %v3103_v37, %v5812_v27 }
 0x3d1   :  { %3413 = vperm.xlu0 %3680, %v6717_v48  }
 0x3d2   :  { %v3272_v48 = vsel %vm2508_vm1, %v3214_v36, %v3213_v33  ;;  %v8372_v33 = vld [vmem:[#allocation112_spill] sm:$0xff] }
 0x3d3   :  { %3374 = vperm.xlu2 %3682, %v8361_v26   ;;  %v2749_v10 = vpop.permute.xlu0 %2748  ;;  %v3273_v47 = vsel %vm2510_vm2, %v3215_v20, %v3272_v48  ;;  %v2841_v21 = vperm.slane %v8372_v33, %v5812_v27  ;;  %v8373_v26 = vld [vmem:[#allocation61_spill] sm:$0xff] }
 0x3d4   :  { %v2833_v53 = vperm.slane %v2749_v10, %v5812_v27  ;;  %v7147_v39 = vpop.permute.xlu2 %3141 }
 0x3d6   :  { %v2890_v17 = vsel %vm2516_vm5, %v2833_v53, %v2889_v50  ;;  %3371 = vperm.xlu1 %3681, %v8364_v51   ;;  %v2840_v50 = vperm.slane %v6755_v24, %v5812_v27  ;;  %v8374_v53 = vld [vmem:[#allocation57_spill] sm:$0xff]  ;;  %v3223_v24 = vperm.slane %v7129_v43, %v5812_v27 }
 0x3d7   :  { %v2891_v11 = vsel %vm2518_vm6, %v2834_v61, %v2890_v17  ;;  %v3112_v54 = vpop.permute.xlu1 %3111  ;;  %v3221_v7 = vperm.slane %v8374_v53, %v5812_v27 }
 0x3d8   :  { %v2892_v35 = vsel %vm2520_vm7, %v2835_v22, %v2891_v11  ;;  %v3216_v2 = vperm.slane %v3112_v54, %v5812_v27  ;;  %v8375_v22 = vld [vmem:[#allocation43_spill] sm:$0xff] }
 0x3d9   :  { %2915 = vst.msk [vmem:[#allocation5 + $0xb0] sm:$0xff] %vm2579_vm8, %v2892_v35  ;;  %3422 = vperm.xlu0 %3680, %v6744_v5   ;;  %v8369_v5 = vld [vmem:[#allocation60_spill] sm:$0xff]  ;;  %v3224_v48 = vperm.slane %v8375_v22, %v5812_v27 }
 0x3da   :  { %v3274_v0 = vsel %vm2512_vm3, %v3216_v2, %v3273_v47  ;;  %v2838_v32 = vperm.slane %v8369_v5, %v5812_v27  ;;  %v8377_v2 = vld [vmem:[#allocation96_spill] sm:$0xff] }
 0x3db   :  { %v3275_v28 = vsel %vm2514_vm4, %v3217_v40, %v3274_v0  ;;  %3383 = vperm.xlu2 %3682, %v8367_v60   ;;  %v2758_v57 = vpop.permute.xlu0 %2757  ;;  %v2843_v43 = vperm.slane %v8377_v2, %v5812_v27  ;;  %v8378_v40 = vld [vmem:[#allocation107_spill] sm:$0xff]  ;;  %v3226_v0 = vperm.slane %v7147_v39, %v5812_v27 }
 0x3dc   :  { %v2836_v59 = vperm.slane %v2758_v57, %v5812_v27  ;;  %v7174_v23 = vpop.permute.xlu2 %3150  ;;  %v3276_v30 = vsel %vm2516_vm5, %v3218_v52, %v3275_v28  ;;  %v8379_v28 = vld [vmem:[#allocation144_spill] sm:$0xff] }
 0x3dd   :  { %v3227_v60 = vperm.slane %v8379_v28, %v5812_v27 }
 0x3de   :  { %v2893_v38 = vsel %vm2508_vm1, %v2837_v55, %v2836_v59  ;;  %3380 = vperm.xlu1 %3681, %v8370_v62   ;;  %v8380_v55 = vld [vmem:[#allocation79_spill] sm:$0xff] }
 0x3df   :  { %v3121_v3 = vpop.permute.xlu1 %3120  ;;  %v2894_v29 = vsel %vm2510_vm2, %v2838_v32, %v2893_v38  ;;  %v8381_v32 = vld [vmem:[#allocation39_spill] sm:$0xff] }
 0x3e0   :  { %v3219_v19 = vperm.slane %v3121_v3, %v5812_v27  ;;  %v8382_v62 = vld [vmem:[#allocation115_spill] sm:$0xff]  ;;  %v3229_v3 = vperm.slane %v7174_v23, %v5812_v27 }
 0x3e1   :  { %3431 = vperm.xlu0 %3680, %v6770_v8  }
 0x3e2   :  { %v3277_v25 = vsel %vm2518_vm6, %v3219_v19, %v3276_v30  ;;  %v8383_v19 = vld [vmem:[#allocation9_spill] sm:$0xff] }
 0x3e3   :  { %v3278_v18 = vsel %vm2520_vm7, %v3220_v58, %v3277_v25  ;;  %3392 = vperm.xlu2 %3682, %v8371_v56   ;;  %v2767_v14 = vpop.permute.xlu0 %2766  ;;  %v8384_v58 = vld [vmem:[#allocation153_spill] sm:$0xff] }
 0x3e4   :  { %3307 = vst.msk [vmem:[#allocation5 + $0xc8] sm:$0xff] %vm2579_vm8, %v3278_v18  ;;  %v2839_v41 = vperm.slane %v2767_v14, %v5812_v27  ;;  %v3160_v37 = vpop.permute.xlu2 %3159  ;;  %v3230_v25 = vperm.slane %v8384_v58, %v5812_v27 }
 0x3e6   :  { %v2895_v8 = vsel %vm2512_vm3, %v2839_v41, %v2894_v29  ;;  %3389 = vperm.xlu1 %3681, %v8373_v26   ;;  %v3232_v41 = vperm.slane %v3160_v37, %v5812_v27 }
 0x3e7   :  { %v2896_v10 = vsel %vm2514_vm4, %v2840_v50, %v2895_v8  ;;  %v3130_v36 = vpop.permute.xlu1 %3129  ;;  %v8385_v50 = vld [vmem:[#allocation76_spill] sm:$0xff]  ;;  %v8386_v8 = vld [vmem:[#allocation102_spill] sm:$0xff] }
 0x3e8   :  { %v3222_v61 = vperm.slane %v3130_v36, %v5812_v27  ;;  %v2897_v49 = vsel %vm2516_vm5, %v2841_v21, %v2896_v10  ;;  %v3233_v33 = vperm.slane %v8385_v50, %v5812_v27  ;;  %v8387_v36 = vld [vmem:[#allocation25_spill] sm:$0xff] }
 0x3e9   :  { %3440 = vperm.xlu0 %3680, %v6794_v16  }
 0x3ea   :  { %v3279_v17 = vsel %vm2508_vm1, %v3222_v61, %v3221_v7 }
 0x3eb   :  { %v3280_v51 = vsel %vm2510_vm2, %v3223_v24, %v3279_v17  ;;  %3401 = vperm.xlu2 %3682, %v8376_v13   ;;  %v2776_v20 = vpop.permute.xlu0 %2775  ;;  %v8390_v13 = vld [vmem:[#allocation46_spill] sm:$0xff] }
 0x3ec   :  { %v2842_v11 = vperm.slane %v2776_v20, %v5812_v27  ;;  %v3169_v54 = vpop.permute.xlu2 %3168  ;;  %v3281_v35 = vsel %vm2512_vm3, %v3224_v48, %v3280_v51  ;;  %v8389_v48 = vld [vmem:[#allocation35_spill] sm:$0xff] }
 0x3ed   :  { %v3235_v37 = vperm.slane %v3169_v54, %v5812_v27 }
 0x3ee   :  { %v2898_v16 = vsel %vm2518_vm6, %v2842_v11, %v2897_v49  ;;  %3398 = vperm.xlu1 %3681, %v8378_v40  }
 0x3ef   :  { %v2899_v47 = vsel %vm2520_vm7, %v2843_v43, %v2898_v16  ;;  %v3139_v45 = vpop.permute.xlu1 %3138 }
 0x3f0   :  { %2916 = vst.msk [vmem:[#allocation5 + $0xb8] sm:$0xff] %vm2579_vm8, %v2899_v47  ;;  %v3225_v52 = vperm.slane %v3139_v45, %v5812_v27  ;;  %v8393_v45 = vld [vmem:[#allocation52_spill] sm:$0xff] }
 0x3f1   :  { %3449 = vperm.xlu0 %3680, %v6822_v1  }
 0x3f2   :  { %v3282_v57 = vsel %vm2514_vm4, %v3225_v52, %v3281_v35  ;;  %v8392_v35 = vld [vmem:[#allocation98_spill] sm:$0xff] }
 0x3f3   :  { %v3283_v31 = vsel %vm2516_vm5, %v3226_v0, %v3282_v57  ;;  %3410 = vperm.xlu2 %3682, %v8380_v55   ;;  %v3318_v5 = vpop.permute.xlu0 %3317 }
 0x3f4   :  { %v3284_v59 = vsel %vm2518_vm6, %v3227_v60, %v3283_v31  ;;  %v8394_v60 = vld [vmem:[#allocation126_spill] sm:$0xff] }
 0x3f5   :  { %v3315_v30 = vpop.permute.xlu2 %3314 }
 0x3f6   :  { %3407 = vperm.xlu1 %3681, %v8381_v32   ;;  %v3503_v16 = vperm.slane %v3315_v30, %v5812_v27 }
 0x3f7   :  { %v3148_v38 = vpop.permute.xlu1 %3147 }
 0x3f8   :  { %v3228_v39 = vperm.slane %v3148_v38, %v5812_v27  ;;  %v8395_v38 = vld [vmem:[#allocation104_spill] sm:$0xff] }
 0x3f9   :  { %3458 = vperm.xlu0 %3680, %v6853_v44   ;;  %v3286_v44 = vsel %vm2508_vm1, %v3230_v25, %v3229_v3 }
 0x3fa   :  { %v3285_v1 = vsel %vm2520_vm7, %v3228_v39, %v3284_v59 }
 0x3fb   :  { %3308 = vst.msk [vmem:[#allocation5 + $0xd0] sm:$0xff] %vm2579_vm8, %v3285_v1  ;;  %3419 = vperm.xlu2 %3682, %v8382_v62   ;;  %v3333_v56 = vpop.permute.xlu0 %3332 }
 0x3fc   :  { %v3509_v32 = vperm.slane %v3333_v56, %v5812_v27 }
 0x3fd   :  { %v3324_v29 = vpop.permute.xlu2 %3323 }
 0x3fe   :  { %3416 = vperm.xlu1 %3681, %v8383_v19   ;;  %v3506_v31 = vperm.slane %v3324_v29, %v5812_v27  ;;  %v8396_v19 = vld [vmem:[#allocation53_spill] sm:$0xff] }
 0x3ff   :  { %v3157_v18 = vpop.permute.xlu1 %3156 }
 0x400   :  { %v3231_v14 = vperm.slane %v3157_v18, %v5812_v27 }
 0x401   :  { %3467 = vperm.xlu0 %3680, %v6884_v46   ;;  %v8388_v46 = vld [vmem:[#allocation101_spill] sm:$0xff] }
 0x402   :  { %v3287_v23 = vsel %vm2510_vm2, %v3231_v14, %v3286_v44  ;;  %v3236_v61 = vperm.slane %v8388_v46, %v5812_v27  ;;  %v8398_v46 = vld [vmem:[#allocation122_spill] sm:$0xff] }
 0x403   :  { %v3288_v21 = vsel %vm2512_vm3, %v3232_v41, %v3287_v23  ;;  %3428 = vperm.xlu2 %3682, %v8386_v8   ;;  %v3342_v49 = vpop.permute.xlu0 %3341 }
 0x404   :  { %v3289_v26 = vsel %vm2514_vm4, %v3233_v33, %v3288_v21  ;;  %v3512_v44 = vperm.slane %v3342_v49, %v5812_v27  ;;  %v8397_v33 = vld [vmem:[#allocation26_spill] sm:$0xff] }
 0x405   :  { %v3330_v10 = vpop.permute.xlu2 %3329 }
 0x406   :  { %3425 = vperm.xlu1 %3681, %v8387_v36   ;;  %v3508_v59 = vperm.slane %v3330_v10, %v5812_v27 }
 0x407   :  { %v3166_v53 = vpop.permute.xlu1 %3165 }
 0x408   :  { %v3234_v7 = vperm.slane %v3166_v53, %v5812_v27 }
 0x409   :  { %3476 = vperm.xlu0 %3680, %v6916_v34   ;;  %v8391_v34 = vld [vmem:[#allocation100_spill] sm:$0xff] }
 0x40a   :  { %v3290_v24 = vsel %vm2516_vm5, %v3234_v7, %v3289_v26 }
 0x40b   :  { %v3291_v22 = vsel %vm2518_vm6, %v3235_v37, %v3290_v24  ;;  %3437 = vperm.xlu2 %3682, %v8389_v48   ;;  %v3351_v11 = vpop.permute.xlu0 %3350 }
 0x40c   :  { %v3292_v17 = vsel %vm2520_vm7, %v3236_v61, %v3291_v22  ;;  %v3515_v26 = vperm.slane %v3351_v11, %v5812_v27 }
 0x40d   :  { %3309 = vst.msk [vmem:[#allocation5 + $0xd8] sm:$0xff] %vm2579_vm8, %v3292_v17  ;;  %v3339_v51 = vpop.permute.xlu2 %3338  ;;  %v8399_v17 = vld [vmem:[#allocation109_spill] sm:$0xff] }
 0x40e   :  { %3434 = vperm.xlu1 %3681, %v8390_v13   ;;  %v3511_v18 = vperm.slane %v3339_v51, %v5812_v27 }
 0x410   :  { %v3312_v20 = vpop.permute.xlu1 %3311 }
 0x411   :  { %3485 = vperm.xlu0 %3680, %v6951_v42   ;;  %v3502_v2 = vperm.slane %v3312_v20, %v5812_v27  ;;  %v3504_v42 = vperm.slane %v3318_v5, %v5812_v27 }
 0x413   :  { %3446 = vperm.xlu2 %3682, %v8391_v34   ;;  %v3566_v40 = vsel %vm2508_vm1, %v3503_v16, %v3502_v2  ;;  %v3360_v0 = vpop.permute.xlu0 %3359 }
 0x414   :  { %v3567_v28 = vsel %vm2510_vm2, %v3504_v42, %v3566_v40  ;;  %v3518_v48 = vperm.slane %v3360_v0, %v5812_v27 }
 0x415   :  { %v3348_v54 = vpop.permute.xlu2 %3347 }
 0x416   :  { %3443 = vperm.xlu1 %3681, %v8392_v35   ;;  %v3514_v21 = vperm.slane %v3348_v54, %v5812_v27 }
 0x418   :  { %v3321_v43 = vpop.permute.xlu1 %3320 }
 0x419   :  { %3494 = vperm.xlu0 %3680, %v6976_v63   ;;  %v3505_v47 = vperm.slane %v3321_v43, %v5812_v27 }
 0x41b   :  { %3455 = vperm.xlu2 %3682, %v8393_v45   ;;  %v3568_v57 = vsel %vm2512_vm3, %v3505_v47, %v3567_v28  ;;  %v3369_v3 = vpop.permute.xlu0 %3368 }
 0x41c   :  { %v3569_v30 = vsel %vm2514_vm4, %v3506_v31, %v3568_v57 }
 0x41d   :  { %v3357_v52 = vpop.permute.xlu2 %3356 }
 0x41e   :  { %3452 = vperm.xlu1 %3681, %v8394_v60   ;;  %v3517_v53 = vperm.slane %v3357_v52, %v5812_v27 }
 0x420   :  { %v3327_v55 = vpop.permute.xlu1 %3326 }
 0x421   :  { %v3507_v63 = vperm.slane %v3327_v55, %v5812_v27 }
 0x423   :  { %v3570_v5 = vsel %vm2516_vm5, %v3507_v63, %v3569_v30  ;;  %3464 = vperm.xlu2 %3682, %v8395_v38   ;;  %v3378_v50 = vpop.permute.xlu0 %3377 }
 0x424   :  { %v3571_v39 = vsel %vm2518_vm6, %v3508_v59, %v3570_v5  ;;  %v3524_v47 = vperm.slane %v3378_v50, %v5812_v27 }
 0x425   :  { %v3572_v1 = vsel %vm2520_vm7, %v3509_v32, %v3571_v39  ;;  %v3366_v62 = vpop.permute.xlu2 %3365 }
 0x426   :  { %3631 = vst.msk [vmem:[#allocation5 + $0x60] sm:$0xff] %vm2579_vm8, %v3572_v1  ;;  %3461 = vperm.xlu1 %3681, %v6842_v15   ;;  %v3520_v13 = vperm.slane %v3366_v62, %v5812_v27 }
 0x428   :  { %v3336_v29 = vpop.permute.xlu1 %3335 }
 0x429   :  { %v3510_v58 = vperm.slane %v3336_v29, %v5812_v27 }
 0x42b   :  { %3473 = vperm.xlu2 %3682, %v8396_v19   ;;  %v3573_v56 = vsel %vm2508_vm1, %v3511_v18, %v3510_v58  ;;  %v3387_v61 = vpop.permute.xlu0 %3386 }
 0x42c   :  { %v3574_v15 = vsel %vm2510_vm2, %v3512_v44, %v3573_v56  ;;  %v3527_v31 = vperm.slane %v3387_v61, %v5812_v27 }
 0x42d   :  { %v3375_v25 = vpop.permute.xlu2 %3374 }
 0x42e   :  { %3470 = vperm.xlu1 %3681, %v6872_v4   ;;  %v3523_v16 = vperm.slane %v3375_v25, %v5812_v27 }
 0x430   :  { %v3345_v14 = vpop.permute.xlu1 %3344 }
 0x431   :  { %v3513_v41 = vperm.slane %v3345_v14, %v5812_v27 }
 0x433   :  { %3482 = vperm.xlu2 %3682, %v8397_v33   ;;  %v3575_v23 = vsel %vm2512_vm3, %v3513_v41, %v3574_v15  ;;  %v3396_v20 = vpop.permute.xlu0 %3395 }
 0x434   :  { %v3576_v4 = vsel %vm2514_vm4, %v3514_v21, %v3575_v23  ;;  %v3530_v39 = vperm.slane %v3396_v20, %v5812_v27 }
 0x435   :  { %v3384_v8 = vpop.permute.xlu2 %3383  ;;  %v3577_v7 = vsel %vm2516_vm5, %v3515_v26, %v3576_v4 }
 0x436   :  { %3479 = vperm.xlu1 %3681, %v6902_v12   ;;  %v3526_v60 = vperm.slane %v3384_v8, %v5812_v27 }
 0x438   :  { %v3354_v10 = vpop.permute.xlu1 %3353  ;;  %v3587_v59 = vsel %vm2508_vm1, %v3527_v31, %v3526_v60 }
 0x439   :  { %v3516_v36 = vperm.slane %v3354_v10, %v5812_v27 }
 0x43b   :  { %v3578_v37 = vsel %vm2518_vm6, %v3516_v36, %v3577_v7  ;;  %3491 = vperm.xlu2 %3682, %v8398_v46   ;;  %v3405_v45 = vpop.permute.xlu0 %3404 }
 0x43c   :  { %v3579_v49 = vsel %vm2520_vm7, %v3517_v53, %v3578_v37  ;;  %v3533_v19 = vperm.slane %v3405_v45, %v5812_v27 }
 0x43d   :  { %3632 = vst.msk [vmem:[#allocation5 + $0x68] sm:$0xff] %vm2579_vm8, %v3579_v49  ;;  %v3393_v12 = vpop.permute.xlu2 %3392 }
 0x43e   :  { %3488 = vperm.xlu1 %3681, %v6935_v9   ;;  %v3521_v9 = vperm.slane %v3369_v3, %v5812_v27  ;;  %v3529_v32 = vperm.slane %v3393_v12, %v5812_v27 }
 0x440   :  { %v3363_v24 = vpop.permute.xlu1 %3362 }
 0x441   :  { %v3519_v22 = vperm.slane %v3363_v24, %v5812_v27 }
 0x443   :  { %3500 = vperm.xlu2 %3682, %v8399_v17   ;;  %v3580_v51 = vsel %vm2508_vm1, %v3519_v22, %v3518_v48  ;;  %v3414_v63 = vpop.permute.xlu0 %3413 }
 0x444   :  { %v3581_v34 = vsel %vm2510_vm2, %v3520_v13, %v3580_v51  ;;  %v3536_v21 = vperm.slane %v3414_v63, %v5812_v27 }
 0x445   :  { %v3402_v54 = vpop.permute.xlu2 %3401  ;;  %v3582_v2 = vsel %vm2512_vm3, %v3521_v9, %v3581_v34 }
 0x446   :  { %3497 = vperm.xlu1 %3681, %v6965_v6   ;;  %v3532_v3 = vperm.slane %v3402_v54, %v5812_v27 }
 0x448   :  { %v3372_v11 = vpop.permute.xlu1 %3371 }
 0x449   :  { %v3522_v35 = vperm.slane %v3372_v11, %v5812_v27 }
 0x44b   :  { %v3583_v43 = vsel %vm2514_vm4, %v3522_v35, %v3582_v2  ;;  %v3423_v25 = vpop.permute.xlu0 %3422 }
 0x44c   :  { %v3584_v40 = vsel %vm2516_vm5, %v3523_v16, %v3583_v43  ;;  %v3539_v7 = vperm.slane %v3423_v25, %v5812_v27 }
 0x44d   :  { %v3585_v52 = vsel %vm2518_vm6, %v3524_v47, %v3584_v40  ;;  %v3411_v0 = vpop.permute.xlu2 %3410 }
 0x44e   :  { %v3535_v50 = vperm.slane %v3411_v0, %v5812_v27 }
 0x450   :  { %v3381_v6 = vpop.permute.xlu1 %3380 }
 0x451   :  { %v3525_v42 = vperm.slane %v3381_v6, %v5812_v27 }
 0x453   :  { %v3586_v28 = vsel %vm2520_vm7, %v3525_v42, %v3585_v52  ;;  %v3432_v15 = vpop.permute.xlu0 %3431 }
 0x454   :  { %3633 = vst.msk [vmem:[#allocation5 + $0x70] sm:$0xff] %vm2579_vm8, %v3586_v28  ;;  %v3542_v20 = vperm.slane %v3432_v15, %v5812_v27 }
 0x455   :  { %v3420_v5 = vpop.permute.xlu2 %3419 }
 0x456   :  { %v3538_v36 = vperm.slane %v3420_v5, %v5812_v27 }
 0x458   :  { %v3390_v57 = vpop.permute.xlu1 %3389 }
 0x459   :  { %v3528_v55 = vperm.slane %v3390_v57, %v5812_v27 }
 0x45b   :  { %v3588_v30 = vsel %vm2510_vm2, %v3528_v55, %v3587_v59  ;;  %v3441_v37 = vpop.permute.xlu0 %3440 }
 0x45c   :  { %v3589_v38 = vsel %vm2512_vm3, %v3529_v32, %v3588_v30  ;;  %v3545_v2 = vperm.slane %v3441_v37, %v5812_v27 }
 0x45d   :  { %v3590_v29 = vsel %vm2514_vm4, %v3530_v39, %v3589_v38  ;;  %v3429_v14 = vpop.permute.xlu2 %3428 }
 0x45e   :  { %v3541_v49 = vperm.slane %v3429_v14, %v5812_v27 }
 0x460   :  { %v3399_v1 = vpop.permute.xlu1 %3398 }
 0x461   :  { %v3531_v62 = vperm.slane %v3399_v1, %v5812_v27 }
 0x463   :  { %v3591_v58 = vsel %vm2516_vm5, %v3531_v62, %v3590_v29  ;;  %v3450_v13 = vpop.permute.xlu0 %3449 }
 0x464   :  { %v3592_v18 = vsel %vm2518_vm6, %v3532_v3, %v3591_v58  ;;  %v3548_v52 = vperm.slane %v3450_v13, %v5812_v27 }
 0x465   :  { %v3593_v56 = vsel %vm2520_vm7, %v3533_v19, %v3592_v18  ;;  %v3438_v8 = vpop.permute.xlu2 %3437 }
 0x466   :  { %3634 = vst.msk [vmem:[#allocation5 + $0x78] sm:$0xff] %vm2579_vm8, %v3593_v56  ;;  %v3544_v9 = vperm.slane %v3438_v8, %v5812_v27 }
 0x468   :  { %v3408_v44 = vpop.permute.xlu1 %3407 }
 0x469   :  { %v3534_v41 = vperm.slane %v3408_v44, %v5812_v27 }
 0x46b   :  { %v3594_v33 = vsel %vm2508_vm1, %v3535_v50, %v3534_v41  ;;  %v3459_v40 = vpop.permute.xlu0 %3458 }
 0x46c   :  { %v3595_v26 = vsel %vm2510_vm2, %v3536_v21, %v3594_v33  ;;  %v3551_v59 = vperm.slane %v3459_v40, %v5812_v27 }
 0x46d   :  { %v3447_v24 = vpop.permute.xlu2 %3446 }
 0x46e   :  { %v3547_v45 = vperm.slane %v3447_v24, %v5812_v27 }
 0x470   :  { %v3417_v23 = vpop.permute.xlu1 %3416 }
 0x471   :  { %v3537_v4 = vperm.slane %v3417_v23, %v5812_v27 }
 0x473   :  { %v3596_v10 = vsel %vm2512_vm3, %v3537_v4, %v3595_v26  ;;  %v3468_v31 = vpop.permute.xlu0 %3467 }
 0x474   :  { %v3597_v53 = vsel %vm2514_vm4, %v3538_v36, %v3596_v10  ;;  %v3554_v62 = vperm.slane %v3468_v31, %v5812_v27 }
 0x475   :  { %v3598_v12 = vsel %vm2516_vm5, %v3539_v7, %v3597_v53  ;;  %v3456_v34 = vpop.permute.xlu2 %3455 }
 0x476   :  { %v3550_v55 = vperm.slane %v3456_v34, %v5812_v27 }
 0x478   :  { %v3426_v46 = vpop.permute.xlu1 %3425  ;;  %v3608_v5 = vsel %vm2508_vm1, %v3551_v59, %v3550_v55 }
 0x479   :  { %v3540_v61 = vperm.slane %v3426_v46, %v5812_v27 }
 0x47b   :  { %v3599_v22 = vsel %vm2518_vm6, %v3540_v61, %v3598_v12  ;;  %v3477_v3 = vpop.permute.xlu0 %3476 }
 0x47c   :  { %v3600_v48 = vsel %vm2520_vm7, %v3541_v49, %v3599_v22  ;;  %v3557_v18 = vperm.slane %v3477_v3, %v5812_v27 }
 0x47d   :  { %3635 = vst.msk [vmem:[#allocation5 + $0xe0] sm:$0xff] %vm2579_vm8, %v3600_v48  ;;  %v3465_v6 = vpop.permute.xlu2 %3464 }
 0x47e   :  { %v3553_v39 = vperm.slane %v3465_v6, %v5812_v27 }
 0x480   :  { %v3435_v17 = vpop.permute.xlu1 %3434 }
 0x481   :  { %v3543_v51 = vperm.slane %v3435_v17, %v5812_v27 }
 0x483   :  { %v3601_v11 = vsel %vm2508_vm1, %v3543_v51, %v3542_v20  ;;  %v3486_v15 = vpop.permute.xlu0 %3485 }
 0x484   :  { %v3602_v54 = vsel %vm2510_vm2, %v3544_v9, %v3601_v11  ;;  %v3560_v26 = vperm.slane %v3486_v15, %v5812_v27 }
 0x485   :  { %v3603_v16 = vsel %vm2512_vm3, %v3545_v2, %v3602_v54  ;;  %v3474_v30 = vpop.permute.xlu2 %3473 }
 0x486   :  { %v3556_v58 = vperm.slane %v3474_v30, %v5812_v27 }
 0x488   :  { %v3444_v35 = vpop.permute.xlu1 %3443 }
 0x489   :  { %v3546_v43 = vperm.slane %v3444_v35, %v5812_v27 }
 0x48b   :  { %v3604_v47 = vsel %vm2514_vm4, %v3546_v43, %v3603_v16  ;;  %v3495_v7 = vpop.permute.xlu0 %3494 }
 0x48c   :  { %v3605_v42 = vsel %vm2516_vm5, %v3547_v45, %v3604_v47  ;;  %v3563_v49 = vperm.slane %v3495_v7, %v5812_v27 }
 0x48d   :  { %v3606_v60 = vsel %vm2518_vm6, %v3548_v52, %v3605_v42  ;;  %v3483_v56 = vpop.permute.xlu2 %3482 }
 0x48e   :  { %v3559_v21 = vperm.slane %v3483_v56, %v5812_v27 }
 0x490   :  { %v3453_v0 = vpop.permute.xlu1 %3452 }
 0x491   :  { %v3549_v28 = vperm.slane %v3453_v0, %v5812_v27 }
 0x493   :  { %v3607_v57 = vsel %vm2520_vm7, %v3549_v28, %v3606_v60 }
 0x494   :  { %3636 = vst.msk [vmem:[#allocation5 + $0xe8] sm:$0xff] %vm2579_vm8, %v3607_v57 }
 0x495   :  { %v3492_v23 = vpop.permute.xlu2 %3491 }
 0x496   :  { %v3562_v37 = vperm.slane %v3492_v23, %v5812_v27 }
 0x498   :  { %v3462_v63 = vpop.permute.xlu1 %3461 }
 0x499   :  { %v3552_v32 = vperm.slane %v3462_v63, %v5812_v27 }
 0x49b   :  { %v3609_v38 = vsel %vm2510_vm2, %v3552_v32, %v3608_v5 }
 0x49c   :  { %v3610_v1 = vsel %vm2512_vm3, %v3553_v39, %v3609_v38 }
 0x49d   :  { %v3611_v25 = vsel %vm2514_vm4, %v3554_v62, %v3610_v1  ;;  %v3501_v46 = vpop.permute.xlu2 %3500 }
 0x49e   :  { %v3565_v22 = vperm.slane %v3501_v46, %v5812_v27 }
 0x4a0   :  { %v3471_v29 = vpop.permute.xlu1 %3470 }
 0x4a1   :  { %v3555_v19 = vperm.slane %v3471_v29, %v5812_v27 }
 0x4a3   :  { %v3612_v14 = vsel %vm2516_vm5, %v3555_v19, %v3611_v25 }
 0x4a4   :  { %v3613_v44 = vsel %vm2518_vm6, %v3556_v58, %v3612_v14 }
 0x4a5   :  { %v3614_v41 = vsel %vm2520_vm7, %v3557_v18, %v3613_v44 }
 0x4a6   :  { %3637 = vst.msk [vmem:[#allocation5 + $0xf0] sm:$0xff] %vm2579_vm8, %v3614_v41 }
 0x4a8   :  { %v3480_v50 = vpop.permute.xlu1 %3479 }
 0x4a9   :  { %v3558_v33 = vperm.slane %v3480_v50, %v5812_v27 }
 0x4ab   :  { %v3615_v8 = vsel %vm2508_vm1, %v3559_v21, %v3558_v33 }
 0x4ac   :  { %v3616_v36 = vsel %vm2510_vm2, %v3560_v26, %v3615_v8 }
 0x4b0   :  { %v3489_v4 = vpop.permute.xlu1 %3488 }
 0x4b1   :  { %v3561_v10 = vperm.slane %v3489_v4, %v5812_v27 }
 0x4b3   :  { %v3617_v53 = vsel %vm2512_vm3, %v3561_v10, %v3616_v36 }
 0x4b4   :  { %v3618_v61 = vsel %vm2514_vm4, %v3562_v37, %v3617_v53 }
 0x4b5   :  { %v3619_v48 = vsel %vm2516_vm5, %v3563_v49, %v3618_v61 }
 0x4b8   :  { %v3498_v12 = vpop.permute.xlu1 %3497 }
 0x4b9   :  { %v3564_v24 = vperm.slane %v3498_v12, %v5812_v27 }
 0x4bb   :  { %v3620_v17 = vsel %vm2518_vm6, %v3564_v24, %v3619_v48 }
 0x4bc   :  { %v3621_v51 = vsel %vm2520_vm7, %v3565_v22, %v3620_v17 }
 0x4bd   :  { %3638 = vst.msk [vmem:[#allocation5 + $0xf8] sm:$0xff] %vm2579_vm8, %v3621_v51 }
 0x4be   :  { %3651 = dma.vmem_to_hbm [thread:$0]  %s3644_s20, 4096, %s3646_s23, [#allocation4], %s3737_s11, %s3737_s11, %s3738_s12  }
 0x4bf   :  { %3734 = dma.done.wait [#allocation4], 4096  }
 0x4c0   :  { %3735 = vsyncadd [#allocation4], 4294963200 }
 0x4c1   :  { %3656 = vsyncpa [#allocation3], 1 }
 0x4c2   :  { %3657 = vsyncpa [#allocation4], 1 }

</bundles_post_ra>
